<compile_context>
chip_gen: v5e
topology: v5e:2x2
jax: 0.10.0
libtpu: 0.0.40
codegen_flags: <defaults>
</compile_context>

<pallas_src>
import functools

import numpy as np
import jax
import jax.numpy as jnp
from jax import lax
from jax.experimental import pallas as pl
from jax.experimental.pallas import tpu as pltpu


# ----------------------------------------------------------------------------
# Fused kernel
# ----------------------------------------------------------------------------
def transformer_block_kernel(
    q_ref, k_ref, v_ref, mask_ref,            # activations + compact key mask
    wq_ref, wk_ref, wv_ref,                   # (E,E) bf16 block-diag per-head proj
    wfc_ref, bfc_ref,                         # fc_out: (E,E) bf16 pre-T, (1,E) f32
    g1_ref, be1_ref,                          # LayerNorm1 gamma/beta (1,E) f32
    w1_ref, b1_ref,                           # FFN in : (E,F) bf16 pre-T, (1,F) f32
    w2_ref, b2_ref,                           # FFN out: (F,E) bf16 pre-T, (1,E) f32
    g2_ref, be2_ref,                          # LayerNorm2 gamma/beta (1,E) f32
    out_ref,                                  # (B, L, E) f32
    *, heads,
):
    B, L, E = q_ref.shape
    D = E // heads

    # Flatten (B,L,E) -> (B*L,E): leading-dim merge, lane-dense (free view).
    qf = q_ref[...].reshape(B * L, E)          # f32, kept for residual 1
    kf = k_ref[...].reshape(B * L, E)
    vf = v_ref[...].reshape(B * L, E)

    # Per-head Linear(D,D,bias=False) folded into one lane-dense (E,E) matmul.
    # bf16 MXU inputs, f32 accumulation.  1/sqrt(E) already folded into wq.
    qp = jnp.dot(qf.astype(jnp.bfloat16), wq_ref[...],
                 preferred_element_type=jnp.float32).reshape(B, L, E)
    kp = jnp.dot(kf.astype(jnp.bfloat16), wk_ref[...],
                 preferred_element_type=jnp.float32).reshape(B, L, E)
    vp = jnp.dot(vf.astype(jnp.bfloat16), wv_ref[...],
                 preferred_element_type=jnp.float32).reshape(B, L, E)

    # Compact key-padding mask (B,1,L): 0 = masked.  Broadcast against the
    # (B, Lq, Lk) score tile in-kernel (sublane broadcast, essentially free).
    masked = mask_ref[...] == 0.0              # (B, 1, L) bool, tiny

    # Per-head attention (static unroll, heads is small).  D=32 lane slices
    # are sub-128-lane; at these toy L the relayout is negligible — at scale
    # group 4 heads per 128-lane tile / go flash-style instead.
    heads_out = []
    for h in range(heads):
        lo = h * D
        q_h = qp[:, :, lo:lo + D].astype(jnp.bfloat16)   # (B, L, D)
        k_h = kp[:, :, lo:lo + D].astype(jnp.bfloat16)
        v_h = vp[:, :, lo:lo + D].astype(jnp.bfloat16)

        e_h = jnp.einsum("bqd,bkd->bqk", q_h, k_h,
                         preferred_element_type=jnp.float32)       # (B,L,L) f32
        e_h = jnp.where(masked, -1e20, e_h)
        e_h = e_h - jnp.max(e_h, axis=-1, keepdims=True)
        p = jnp.exp(e_h)
        p = p * pl.reciprocal(jnp.sum(p, axis=-1, keepdims=True), approx=True)
        heads_out.append(
            jnp.einsum("bqk,bkd->bqd", p.astype(jnp.bfloat16), v_h,
                       preferred_element_type=jnp.float32))        # (B,L,D) f32

    # Concatenate heads on the lane axis -> ONE full-K fc_out matmul
    # (B*L,E)x(E,E) instead of 8 K=32 matmuls + accumulator adds.
    o = jnp.concatenate(heads_out, axis=-1).reshape(B * L, E)
    attn = jnp.dot(o.astype(jnp.bfloat16), wfc_ref[...],
                   preferred_element_type=jnp.float32) + bfc_ref[...]

    def layernorm(x, g, b):                    # f32 vector math
        mu = jnp.mean(x, axis=-1, keepdims=True)
        xc = x - mu
        var = jnp.mean(xc * xc, axis=-1, keepdims=True)
        return xc * lax.rsqrt(var + 1e-5) * g + b

    # residual 1 + norm1 (dropout = identity at inference)
    x = layernorm(attn + qf, g1_ref[...], be1_ref[...])

    # feed-forward: Linear(E,4E) -> ReLU -> Linear(4E,E), bf16 MXU inputs.
    hmid = jnp.maximum(
        jnp.dot(x.astype(jnp.bfloat16), w1_ref[...],
                preferred_element_type=jnp.float32) + b1_ref[...],
        0.0)
    ff = jnp.dot(hmid.astype(jnp.bfloat16), w2_ref[...],
                 preferred_element_type=jnp.float32) + b2_ref[...]

    # residual 2 + norm2 (dropout = identity at inference)
    y = layernorm(ff + x, g2_ref[...], be2_ref[...])
    out_ref[...] = y.reshape(B, L, E)


# ----------------------------------------------------------------------------
# Wrapper: single fused pallas_call, whole problem resident in VMEM (no grid).
# ----------------------------------------------------------------------------
_VMEM = pl.BlockSpec(memory_space=pltpu.MemorySpace.VMEM)


def transformer_block(value, key_, query, mask, kparams, *, heads):
    B, L, E = query.shape
    F = kparams[7].shape[1]                   # w1 is (E, F)

    if mask is None:
        mask_k = jnp.ones((B, 1, L), jnp.float32)
    else:
        # Compact key-padding mask only (no head/query dependence); a general
        # (B,H,Lq,Lk) mask would need the dense path.
        mask_k = jnp.broadcast_to(mask, (B, 1, 1, L)).reshape(B, 1, L)
        mask_k = mask_k.astype(jnp.float32)

    flops = int(
        3 * 2 * B * L * E * E                       # q/k/v projections
        + 2 * 2 * B * heads * L * L * (E // heads)  # QK^T and P·V
        + 2 * B * L * E * E                         # fc_out
        + 2 * 2 * B * L * E * F                     # feed-forward
    )
    transcendentals = int(B * heads * L * L + B * heads * L + 2 * B * L)
    bytes_accessed = int(
        4 * (3 * B * L * E) + 4 * B * L             # activations in + mask
        + sum(int(w.size) * w.dtype.itemsize for w in kparams)
        + 4 * B * L * E                             # output
    )

    kernel = functools.partial(transformer_block_kernel, heads=heads)
    return pl.pallas_call(
        kernel,
        out_shape=jax.ShapeDtypeStruct((B, L, E), jnp.float32),
        in_specs=[_VMEM] * (4 + len(kparams)),
        out_specs=_VMEM,
        cost_estimate=pl.CostEstimate(
            flops=flops, transcendentals=transcendentals,
            bytes_accessed=bytes_accessed),
        compiler_params=pltpu.CompilerParams(vmem_limit_bytes=32 * 1024 * 1024),
    )(query, key_, value, mask_k, *kparams)


# ----------------------------------------------------------------------------
# Parameters (PyTorch layout) + one-time kernel-layout preparation
# ----------------------------------------------------------------------------
def make_params(key, embed_size, heads, forward_expansion):
    E, H = embed_size, heads
    D = E // H
    F = forward_expansion * E

    def u(k, shape, fan_in):
        b = 1.0 / np.sqrt(fan_in)
        return jax.random.uniform(k, shape, jnp.float32, -b, b)

    ks = jax.random.split(key, 13)
    return {
        "wq": u(ks[0], (D, D), D),            # per-head Linear(D,D), no bias
        "wk": u(ks[1], (D, D), D),
        "wv": u(ks[2], (D, D), D),
        "wfc": u(ks[3], (E, E), E),           # fc_out weight (out,in)
        "bfc": u(ks[4], (E,), E),
        "ln1_g": 1.0 + 0.1 * jax.random.normal(ks[5], (E,), jnp.float32),
        "ln1_b": 0.1 * jax.random.normal(ks[6], (E,), jnp.float32),
        "w1": u(ks[7], (F, E), E),            # FFN Linear(E,F) weight (out,in)
        "b1": u(ks[8], (F,), E),
        "w2": u(ks[9], (E, F), F),            # FFN Linear(F,E) weight (out,in)
        "b2": u(ks[10], (E,), F),
        "ln2_g": 1.0 + 0.1 * jax.random.normal(ks[11], (E,), jnp.float32),
        "ln2_b": 0.1 * jax.random.normal(ks[12], (E,), jnp.float32),
    }


def prepare_kernel_params(p, heads):
    """Torch-layout -> kernel-layout (done once, outside the hot path).

    Matmul weights are pre-transposed, per-head projections folded into a
    block-diagonal (E,E), the 1/sqrt(E) attention scale folded into wq, and
    all MXU weights stored as bf16.  Biases / LayerNorm params stay f32.
    """
    E = p["wfc"].shape[0]
    eye = jnp.eye(heads, dtype=jnp.float32)
    blk = lambda w: jnp.kron(eye, w.T).astype(jnp.bfloat16)
    row = lambda v: v.reshape(1, -1)
    scale = 1.0 / (float(E) ** 0.5)
    return (
        blk(p["wq"] * scale), blk(p["wk"]), blk(p["wv"]),
        p["wfc"].T.astype(jnp.bfloat16), row(p["bfc"]),
        row(p["ln1_g"]), row(p["ln1_b"]),
        p["w1"].T.astype(jnp.bfloat16), row(p["b1"]),
        p["w2"].T.astype(jnp.bfloat16), row(p["b2"]),
        row(p["ln2_g"]), row(p["ln2_b"]),
    )


# ----------------------------------------------------------------------------
# Pure-JAX reference (mirrors the PyTorch forward exactly, f32 HIGHEST)
# ----------------------------------------------------------------------------
_HI = jax.lax.Precision.HIGHEST


def _layernorm_ref(x, g, b, eps=1e-5):
    mu = jnp.mean(x, axis=-1, keepdims=True)
    xc = x - mu
    var = jnp.mean(xc * xc, axis=-1, keepdims=True)
    return xc * lax.rsqrt(var + eps) * g + b


def reference_forward(value, key_, query, mask, p, heads):
    B, L, E = query.shape
    D = E // heads
    hv = lambda x: x.reshape(B, L, heads, D)

    vh = jnp.einsum("nlhd,ed->nlhe", hv(value), p["wv"], precision=_HI)
    kh = jnp.einsum("nlhd,ed->nlhe", hv(key_), p["wk"], precision=_HI)
    qh = jnp.einsum("nlhd,ed->nlhe", hv(query), p["wq"], precision=_HI)

    energy = jnp.einsum("nqhd,nkhd->nhqk", qh, kh, precision=_HI)
    if mask is not None:
        energy = jnp.where(mask == 0, -1e20, energy)
    attn = jax.nn.softmax(energy / (E ** 0.5), axis=3)
    out = jnp.einsum("nhql,nlhd->nqhd", attn, vh, precision=_HI).reshape(B, L, E)
    out = jnp.dot(out, p["wfc"].T, precision=_HI) + p["bfc"]

    x = _layernorm_ref(out + query, p["ln1_g"], p["ln1_b"])
    fwd = jnp.maximum(jnp.dot(x, p["w1"].T, precision=_HI) + p["b1"], 0.0)
    fwd = jnp.dot(fwd, p["w2"].T, precision=_HI) + p["b2"]
    return _layernorm_ref(fwd + x, p["ln2_g"], p["ln2_b"])


if __name__ == "__main__":
    B, L, E, H, FE = 2, 16, 256, 8, 4        # embed_size=256, forward_expansion=4
    root = jax.random.PRNGKey(0)
    kq, kk, kv, kp = jax.random.split(root, 4)
    query = jax.random.normal(kq, (B, L, E), jnp.float32)
    key_ = jax.random.normal(kk, (B, L, E), jnp.float32)
    value = jax.random.normal(kv, (B, L, E), jnp.float32)
    # padding mask: batch 1 cannot attend to the last 3 key positions
    mask = jnp.ones((B, 1, 1, L), jnp.float32).at[1, 0, 0, L - 3:].set(0.0)

    params = make_params(kp, E, H, FE)
    kparams = prepare_kernel_params(params, H)

    out = jax.block_until_ready(
        transformer_block(value, key_, query, mask, kparams, heads=H))
    ref = jax.block_until_ready(
        reference_forward(value, key_, query, mask, params, H))

    assert out.shape == (B, L, E), out.shape
    err = float(np.max(np.abs(np.asarray(out) - np.asarray(ref))))
    # bf16 MXU inputs with f32 accumulation: verified within the 2e-2 tolerance.
    assert np.allclose(np.asarray(out), np.asarray(ref), rtol=2e-2, atol=2e-2), err
    print("KERNEL_OK")
</pallas_src>

<mosaic_0001>
module attributes {stable_mosaic.version = 11 : i64} {
  func.func @transformer_block_kernel(%arg0: memref<2x16x256xf32, #tpu.memory_space<vmem>>, %arg1: memref<2x16x256xf32, #tpu.memory_space<vmem>>, %arg2: memref<2x16x256xf32, #tpu.memory_space<vmem>>, %arg3: memref<2x1x16xf32, #tpu.memory_space<vmem>>, %arg4: memref<256x256xbf16, #tpu.memory_space<vmem>>, %arg5: memref<256x256xbf16, #tpu.memory_space<vmem>>, %arg6: memref<256x256xbf16, #tpu.memory_space<vmem>>, %arg7: memref<256x256xbf16, #tpu.memory_space<vmem>>, %arg8: memref<1x256xf32, #tpu.memory_space<vmem>>, %arg9: memref<1x256xf32, #tpu.memory_space<vmem>>, %arg10: memref<1x256xf32, #tpu.memory_space<vmem>>, %arg11: memref<256x1024xbf16, #tpu.memory_space<vmem>>, %arg12: memref<1x1024xf32, #tpu.memory_space<vmem>>, %arg13: memref<1024x256xbf16, #tpu.memory_space<vmem>>, %arg14: memref<1x256xf32, #tpu.memory_space<vmem>>, %arg15: memref<1x256xf32, #tpu.memory_space<vmem>>, %arg16: memref<1x256xf32, #tpu.memory_space<vmem>>, %arg17: memref<2x16x256xf32, #tpu.memory_space<vmem>>) attributes {dimension_semantics = [], scalar_prefetch = 0 : i64, scratch_operands = 0 : i64, tpu.core_type = #tpu.core_type<tc>} {
    %c0 = arith.constant 0 : index
    %c0_0 = arith.constant 0 : index
    %c0_1 = arith.constant 0 : index
    %0 = vector.load %arg0[%c0, %c0_0, %c0_1] : memref<2x16x256xf32, #tpu.memory_space<vmem>>, vector<2x16x256xf32>
    %1 = vector.shape_cast %0 : vector<2x16x256xf32> to vector<32x256xf32>
    %c0_2 = arith.constant 0 : index
    %c0_3 = arith.constant 0 : index
    %c0_4 = arith.constant 0 : index
    %2 = vector.load %arg1[%c0_2, %c0_3, %c0_4] : memref<2x16x256xf32, #tpu.memory_space<vmem>>, vector<2x16x256xf32>
    %3 = vector.shape_cast %2 : vector<2x16x256xf32> to vector<32x256xf32>
    %c0_5 = arith.constant 0 : index
    %c0_6 = arith.constant 0 : index
    %c0_7 = arith.constant 0 : index
    %4 = vector.load %arg2[%c0_5, %c0_6, %c0_7] : memref<2x16x256xf32, #tpu.memory_space<vmem>>, vector<2x16x256xf32>
    %5 = vector.shape_cast %4 : vector<2x16x256xf32> to vector<32x256xf32>
    %6 = arith.truncf %1 : vector<32x256xf32> to vector<32x256xbf16>
    %c0_8 = arith.constant 0 : index
    %c0_9 = arith.constant 0 : index
    %7 = vector.load %arg4[%c0_8, %c0_9] : memref<256x256xbf16, #tpu.memory_space<vmem>>, vector<256x256xbf16>
    %cst = arith.constant dense<0.000000e+00> : vector<32x256xf32>
    %8 = tpu.matmul %6, %7, %cst {dimension_numbers = #tpu.dot_dimension_numbers<[1], [0], [0], [1], [0, 0, 1, 1], [], []>} : vector<32x256xbf16>, vector<256x256xbf16>, vector<32x256xf32> -> vector<32x256xf32>
    %9 = vector.shape_cast %8 : vector<32x256xf32> to vector<2x16x256xf32>
    %10 = arith.truncf %3 : vector<32x256xf32> to vector<32x256xbf16>
    %c0_10 = arith.constant 0 : index
    %c0_11 = arith.constant 0 : index
    %11 = vector.load %arg5[%c0_10, %c0_11] : memref<256x256xbf16, #tpu.memory_space<vmem>>, vector<256x256xbf16>
    %cst_12 = arith.constant dense<0.000000e+00> : vector<32x256xf32>
    %12 = tpu.matmul %10, %11, %cst_12 {dimension_numbers = #tpu.dot_dimension_numbers<[1], [0], [0], [1], [0, 0, 1, 1], [], []>} : vector<32x256xbf16>, vector<256x256xbf16>, vector<32x256xf32> -> vector<32x256xf32>
    %13 = vector.shape_cast %12 : vector<32x256xf32> to vector<2x16x256xf32>
    %14 = arith.truncf %5 : vector<32x256xf32> to vector<32x256xbf16>
    %c0_13 = arith.constant 0 : index
    %c0_14 = arith.constant 0 : index
    %15 = vector.load %arg6[%c0_13, %c0_14] : memref<256x256xbf16, #tpu.memory_space<vmem>>, vector<256x256xbf16>
    %cst_15 = arith.constant dense<0.000000e+00> : vector<32x256xf32>
    %16 = tpu.matmul %14, %15, %cst_15 {dimension_numbers = #tpu.dot_dimension_numbers<[1], [0], [0], [1], [0, 0, 1, 1], [], []>} : vector<32x256xbf16>, vector<256x256xbf16>, vector<32x256xf32> -> vector<32x256xf32>
    %17 = vector.shape_cast %16 : vector<32x256xf32> to vector<2x16x256xf32>
    %c0_16 = arith.constant 0 : index
    %c0_17 = arith.constant 0 : index
    %c0_18 = arith.constant 0 : index
    %18 = vector.load %arg3[%c0_16, %c0_17, %c0_18] : memref<2x1x16xf32, #tpu.memory_space<vmem>>, vector<2x1x16xf32>
    %cst_19 = arith.constant 0.000000e+00 : f32
    %19 = vector.broadcast %cst_19 : f32 to vector<2x1x16xf32>
    %20 = arith.cmpf oeq, %18, %19 : vector<2x1x16xf32>
    %21 = vector.extract_strided_slice %9 {offsets = [0, 0, 0], sizes = [2, 16, 32], strides = [1, 1, 1]} : vector<2x16x256xf32> to vector<2x16x32xf32>
    %22 = arith.truncf %21 : vector<2x16x32xf32> to vector<2x16x32xbf16>
    %23 = vector.extract_strided_slice %13 {offsets = [0, 0, 0], sizes = [2, 16, 32], strides = [1, 1, 1]} : vector<2x16x256xf32> to vector<2x16x32xf32>
    %24 = arith.truncf %23 : vector<2x16x32xf32> to vector<2x16x32xbf16>
    %25 = vector.extract_strided_slice %17 {offsets = [0, 0, 0], sizes = [2, 16, 32], strides = [1, 1, 1]} : vector<2x16x256xf32> to vector<2x16x32xf32>
    %26 = arith.truncf %25 : vector<2x16x32xf32> to vector<2x16x32xbf16>
    "tpu.trace_start"() <{level = 10 : i32, message = "bqd,bkd->bqk"}> : () -> ()
    %cst_20 = arith.constant dense<0.000000e+00> : vector<2x16x16xf32>
    %27 = tpu.matmul %22, %24, %cst_20 {dimension_numbers = #tpu.dot_dimension_numbers<[2], [2], [1], [1], [0, 0, 0, 1, 1, 1], [0], [0]>} : vector<2x16x32xbf16>, vector<2x16x32xbf16>, vector<2x16x16xf32> -> vector<2x16x16xf32>
    %cst_21 = arith.constant -1.000000e+20 : f32
    "tpu.trace_stop"() : () -> ()
    %28 = vector.shape_cast %20 : vector<2x1x16xi1> to vector<2x1x16xi1>
    %29 = vector.broadcast %28 : vector<2x1x16xi1> to vector<2x16x16xi1>
    %30 = vector.broadcast %cst_21 : f32 to vector<2x16x16xf32>
    %31 = arith.select %29, %30, %27 : vector<2x16x16xi1>, vector<2x16x16xf32>
    %cst_22 = arith.constant dense<0xFF800000> : vector<2x16xf32>
    %32 = vector.multi_reduction <maximumf>, %31, %cst_22 [2] : vector<2x16x16xf32> to vector<2x16xf32>
    %33 = vector.shape_cast %32 : vector<2x16xf32> to vector<2x16x1xf32>
    %34 = vector.broadcast %33 : vector<2x16x1xf32> to vector<2x16x16xf32>
    %35 = arith.subf %31, %34 : vector<2x16x16xf32>
    %36 = math.exp %35 : vector<2x16x16xf32>
    %cst_23 = arith.constant dense<0.000000e+00> : vector<2x16xf32>
    %37 = vector.multi_reduction <add>, %36, %cst_23 [2] : vector<2x16x16xf32> to vector<2x16xf32>
    %38 = vector.shape_cast %37 : vector<2x16xf32> to vector<2x16x1xf32>
    %39 = tpu.reciprocal %38 {approx = true} : vector<2x16x1xf32> -> vector<2x16x1xf32>
    %40 = vector.broadcast %39 : vector<2x16x1xf32> to vector<2x16x16xf32>
    %41 = arith.mulf %36, %40 : vector<2x16x16xf32>
    %42 = arith.truncf %41 : vector<2x16x16xf32> to vector<2x16x16xbf16>
    "tpu.trace_start"() <{level = 10 : i32, message = "bqk,bkd->bqd"}> : () -> ()
    %cst_24 = arith.constant dense<0.000000e+00> : vector<2x16x32xf32>
    %43 = tpu.matmul %42, %26, %cst_24 {dimension_numbers = #tpu.dot_dimension_numbers<[2], [1], [1], [2], [0, 0, 0, 1, 1, 2], [0], [0]>} : vector<2x16x16xbf16>, vector<2x16x32xbf16>, vector<2x16x32xf32> -> vector<2x16x32xf32>
    "tpu.trace_stop"() : () -> ()
    %44 = vector.extract_strided_slice %9 {offsets = [0, 0, 32], sizes = [2, 16, 32], strides = [1, 1, 1]} : vector<2x16x256xf32> to vector<2x16x32xf32>
    %45 = arith.truncf %44 : vector<2x16x32xf32> to vector<2x16x32xbf16>
    %46 = vector.extract_strided_slice %13 {offsets = [0, 0, 32], sizes = [2, 16, 32], strides = [1, 1, 1]} : vector<2x16x256xf32> to vector<2x16x32xf32>
    %47 = arith.truncf %46 : vector<2x16x32xf32> to vector<2x16x32xbf16>
    %48 = vector.extract_strided_slice %17 {offsets = [0, 0, 32], sizes = [2, 16, 32], strides = [1, 1, 1]} : vector<2x16x256xf32> to vector<2x16x32xf32>
    %49 = arith.truncf %48 : vector<2x16x32xf32> to vector<2x16x32xbf16>
    "tpu.trace_start"() <{level = 10 : i32, message = "bqd,bkd->bqk"}> : () -> ()
    %cst_25 = arith.constant dense<0.000000e+00> : vector<2x16x16xf32>
    %50 = tpu.matmul %45, %47, %cst_25 {dimension_numbers = #tpu.dot_dimension_numbers<[2], [2], [1], [1], [0, 0, 0, 1, 1, 1], [0], [0]>} : vector<2x16x32xbf16>, vector<2x16x32xbf16>, vector<2x16x16xf32> -> vector<2x16x16xf32>
    %cst_26 = arith.constant -1.000000e+20 : f32
    "tpu.trace_stop"() : () -> ()
    %51 = vector.shape_cast %20 : vector<2x1x16xi1> to vector<2x1x16xi1>
    %52 = vector.broadcast %51 : vector<2x1x16xi1> to vector<2x16x16xi1>
    %53 = vector.broadcast %cst_26 : f32 to vector<2x16x16xf32>
    %54 = arith.select %52, %53, %50 : vector<2x16x16xi1>, vector<2x16x16xf32>
    %cst_27 = arith.constant dense<0xFF800000> : vector<2x16xf32>
    %55 = vector.multi_reduction <maximumf>, %54, %cst_27 [2] : vector<2x16x16xf32> to vector<2x16xf32>
    %56 = vector.shape_cast %55 : vector<2x16xf32> to vector<2x16x1xf32>
    %57 = vector.broadcast %56 : vector<2x16x1xf32> to vector<2x16x16xf32>
    %58 = arith.subf %54, %57 : vector<2x16x16xf32>
    %59 = math.exp %58 : vector<2x16x16xf32>
    %cst_28 = arith.constant dense<0.000000e+00> : vector<2x16xf32>
    %60 = vector.multi_reduction <add>, %59, %cst_28 [2] : vector<2x16x16xf32> to vector<2x16xf32>
    %61 = vector.shape_cast %60 : vector<2x16xf32> to vector<2x16x1xf32>
    %62 = tpu.reciprocal %61 {approx = true} : vector<2x16x1xf32> -> vector<2x16x1xf32>
    %63 = vector.broadcast %62 : vector<2x16x1xf32> to vector<2x16x16xf32>
    %64 = arith.mulf %59, %63 : vector<2x16x16xf32>
    %65 = arith.truncf %64 : vector<2x16x16xf32> to vector<2x16x16xbf16>
    "tpu.trace_start"() <{level = 10 : i32, message = "bqk,bkd->bqd"}> : () -> ()
    %cst_29 = arith.constant dense<0.000000e+00> : vector<2x16x32xf32>
    %66 = tpu.matmul %65, %49, %cst_29 {dimension_numbers = #tpu.dot_dimension_numbers<[2], [1], [1], [2], [0, 0, 0, 1, 1, 2], [0], [0]>} : vector<2x16x16xbf16>, vector<2x16x32xbf16>, vector<2x16x32xf32> -> vector<2x16x32xf32>
    "tpu.trace_stop"() : () -> ()
    %67 = vector.extract_strided_slice %9 {offsets = [0, 0, 64], sizes = [2, 16, 32], strides = [1, 1, 1]} : vector<2x16x256xf32> to vector<2x16x32xf32>
    %68 = arith.truncf %67 : vector<2x16x32xf32> to vector<2x16x32xbf16>
    %69 = vector.extract_strided_slice %13 {offsets = [0, 0, 64], sizes = [2, 16, 32], strides = [1, 1, 1]} : vector<2x16x256xf32> to vector<2x16x32xf32>
    %70 = arith.truncf %69 : vector<2x16x32xf32> to vector<2x16x32xbf16>
    %71 = vector.extract_strided_slice %17 {offsets = [0, 0, 64], sizes = [2, 16, 32], strides = [1, 1, 1]} : vector<2x16x256xf32> to vector<2x16x32xf32>
    %72 = arith.truncf %71 : vector<2x16x32xf32> to vector<2x16x32xbf16>
    "tpu.trace_start"() <{level = 10 : i32, message = "bqd,bkd->bqk"}> : () -> ()
    %cst_30 = arith.constant dense<0.000000e+00> : vector<2x16x16xf32>
    %73 = tpu.matmul %68, %70, %cst_30 {dimension_numbers = #tpu.dot_dimension_numbers<[2], [2], [1], [1], [0, 0, 0, 1, 1, 1], [0], [0]>} : vector<2x16x32xbf16>, vector<2x16x32xbf16>, vector<2x16x16xf32> -> vector<2x16x16xf32>
    %cst_31 = arith.constant -1.000000e+20 : f32
    "tpu.trace_stop"() : () -> ()
    %74 = vector.shape_cast %20 : vector<2x1x16xi1> to vector<2x1x16xi1>
    %75 = vector.broadcast %74 : vector<2x1x16xi1> to vector<2x16x16xi1>
    %76 = vector.broadcast %cst_31 : f32 to vector<2x16x16xf32>
    %77 = arith.select %75, %76, %73 : vector<2x16x16xi1>, vector<2x16x16xf32>
    %cst_32 = arith.constant dense<0xFF800000> : vector<2x16xf32>
    %78 = vector.multi_reduction <maximumf>, %77, %cst_32 [2] : vector<2x16x16xf32> to vector<2x16xf32>
    %79 = vector.shape_cast %78 : vector<2x16xf32> to vector<2x16x1xf32>
    %80 = vector.broadcast %79 : vector<2x16x1xf32> to vector<2x16x16xf32>
    %81 = arith.subf %77, %80 : vector<2x16x16xf32>
    %82 = math.exp %81 : vector<2x16x16xf32>
    %cst_33 = arith.constant dense<0.000000e+00> : vector<2x16xf32>
    %83 = vector.multi_reduction <add>, %82, %cst_33 [2] : vector<2x16x16xf32> to vector<2x16xf32>
    %84 = vector.shape_cast %83 : vector<2x16xf32> to vector<2x16x1xf32>
    %85 = tpu.reciprocal %84 {approx = true} : vector<2x16x1xf32> -> vector<2x16x1xf32>
    %86 = vector.broadcast %85 : vector<2x16x1xf32> to vector<2x16x16xf32>
    %87 = arith.mulf %82, %86 : vector<2x16x16xf32>
    %88 = arith.truncf %87 : vector<2x16x16xf32> to vector<2x16x16xbf16>
    "tpu.trace_start"() <{level = 10 : i32, message = "bqk,bkd->bqd"}> : () -> ()
    %cst_34 = arith.constant dense<0.000000e+00> : vector<2x16x32xf32>
    %89 = tpu.matmul %88, %72, %cst_34 {dimension_numbers = #tpu.dot_dimension_numbers<[2], [1], [1], [2], [0, 0, 0, 1, 1, 2], [0], [0]>} : vector<2x16x16xbf16>, vector<2x16x32xbf16>, vector<2x16x32xf32> -> vector<2x16x32xf32>
    "tpu.trace_stop"() : () -> ()
    %90 = vector.extract_strided_slice %9 {offsets = [0, 0, 96], sizes = [2, 16, 32], strides = [1, 1, 1]} : vector<2x16x256xf32> to vector<2x16x32xf32>
    %91 = arith.truncf %90 : vector<2x16x32xf32> to vector<2x16x32xbf16>
    %92 = vector.extract_strided_slice %13 {offsets = [0, 0, 96], sizes = [2, 16, 32], strides = [1, 1, 1]} : vector<2x16x256xf32> to vector<2x16x32xf32>
    %93 = arith.truncf %92 : vector<2x16x32xf32> to vector<2x16x32xbf16>
    %94 = vector.extract_strided_slice %17 {offsets = [0, 0, 96], sizes = [2, 16, 32], strides = [1, 1, 1]} : vector<2x16x256xf32> to vector<2x16x32xf32>
    %95 = arith.truncf %94 : vector<2x16x32xf32> to vector<2x16x32xbf16>
    "tpu.trace_start"() <{level = 10 : i32, message = "bqd,bkd->bqk"}> : () -> ()
    %cst_35 = arith.constant dense<0.000000e+00> : vector<2x16x16xf32>
    %96 = tpu.matmul %91, %93, %cst_35 {dimension_numbers = #tpu.dot_dimension_numbers<[2], [2], [1], [1], [0, 0, 0, 1, 1, 1], [0], [0]>} : vector<2x16x32xbf16>, vector<2x16x32xbf16>, vector<2x16x16xf32> -> vector<2x16x16xf32>
    %cst_36 = arith.constant -1.000000e+20 : f32
    "tpu.trace_stop"() : () -> ()
    %97 = vector.shape_cast %20 : vector<2x1x16xi1> to vector<2x1x16xi1>
    %98 = vector.broadcast %97 : vector<2x1x16xi1> to vector<2x16x16xi1>
    %99 = vector.broadcast %cst_36 : f32 to vector<2x16x16xf32>
    %100 = arith.select %98, %99, %96 : vector<2x16x16xi1>, vector<2x16x16xf32>
    %cst_37 = arith.constant dense<0xFF800000> : vector<2x16xf32>
    %101 = vector.multi_reduction <maximumf>, %100, %cst_37 [2] : vector<2x16x16xf32> to vector<2x16xf32>
    %102 = vector.shape_cast %101 : vector<2x16xf32> to vector<2x16x1xf32>
    %103 = vector.broadcast %102 : vector<2x16x1xf32> to vector<2x16x16xf32>
    %104 = arith.subf %100, %103 : vector<2x16x16xf32>
    %105 = math.exp %104 : vector<2x16x16xf32>
    %cst_38 = arith.constant dense<0.000000e+00> : vector<2x16xf32>
    %106 = vector.multi_reduction <add>, %105, %cst_38 [2] : vector<2x16x16xf32> to vector<2x16xf32>
    %107 = vector.shape_cast %106 : vector<2x16xf32> to vector<2x16x1xf32>
    %108 = tpu.reciprocal %107 {approx = true} : vector<2x16x1xf32> -> vector<2x16x1xf32>
    %109 = vector.broadcast %108 : vector<2x16x1xf32> to vector<2x16x16xf32>
    %110 = arith.mulf %105, %109 : vector<2x16x16xf32>
    %111 = arith.truncf %110 : vector<2x16x16xf32> to vector<2x16x16xbf16>
    "tpu.trace_start"() <{level = 10 : i32, message = "bqk,bkd->bqd"}> : () -> ()
    %cst_39 = arith.constant dense<0.000000e+00> : vector<2x16x32xf32>
    %112 = tpu.matmul %111, %95, %cst_39 {dimension_numbers = #tpu.dot_dimension_numbers<[2], [1], [1], [2], [0, 0, 0, 1, 1, 2], [0], [0]>} : vector<2x16x16xbf16>, vector<2x16x32xbf16>, vector<2x16x32xf32> -> vector<2x16x32xf32>
    "tpu.trace_stop"() : () -> ()
    %113 = vector.extract_strided_slice %9 {offsets = [0, 0, 128], sizes = [2, 16, 32], strides = [1, 1, 1]} : vector<2x16x256xf32> to vector<2x16x32xf32>
    %114 = arith.truncf %113 : vector<2x16x32xf32> to vector<2x16x32xbf16>
    %115 = vector.extract_strided_slice %13 {offsets = [0, 0, 128], sizes = [2, 16, 32], strides = [1, 1, 1]} : vector<2x16x256xf32> to vector<2x16x32xf32>
    %116 = arith.truncf %115 : vector<2x16x32xf32> to vector<2x16x32xbf16>
    %117 = vector.extract_strided_slice %17 {offsets = [0, 0, 128], sizes = [2, 16, 32], strides = [1, 1, 1]} : vector<2x16x256xf32> to vector<2x16x32xf32>
    %118 = arith.truncf %117 : vector<2x16x32xf32> to vector<2x16x32xbf16>
    "tpu.trace_start"() <{level = 10 : i32, message = "bqd,bkd->bqk"}> : () -> ()
    %cst_40 = arith.constant dense<0.000000e+00> : vector<2x16x16xf32>
    %119 = tpu.matmul %114, %116, %cst_40 {dimension_numbers = #tpu.dot_dimension_numbers<[2], [2], [1], [1], [0, 0, 0, 1, 1, 1], [0], [0]>} : vector<2x16x32xbf16>, vector<2x16x32xbf16>, vector<2x16x16xf32> -> vector<2x16x16xf32>
    %cst_41 = arith.constant -1.000000e+20 : f32
    "tpu.trace_stop"() : () -> ()
    %120 = vector.shape_cast %20 : vector<2x1x16xi1> to vector<2x1x16xi1>
    %121 = vector.broadcast %120 : vector<2x1x16xi1> to vector<2x16x16xi1>
    %122 = vector.broadcast %cst_41 : f32 to vector<2x16x16xf32>
    %123 = arith.select %121, %122, %119 : vector<2x16x16xi1>, vector<2x16x16xf32>
    %cst_42 = arith.constant dense<0xFF800000> : vector<2x16xf32>
    %124 = vector.multi_reduction <maximumf>, %123, %cst_42 [2] : vector<2x16x16xf32> to vector<2x16xf32>
    %125 = vector.shape_cast %124 : vector<2x16xf32> to vector<2x16x1xf32>
    %126 = vector.broadcast %125 : vector<2x16x1xf32> to vector<2x16x16xf32>
    %127 = arith.subf %123, %126 : vector<2x16x16xf32>
    %128 = math.exp %127 : vector<2x16x16xf32>
    %cst_43 = arith.constant dense<0.000000e+00> : vector<2x16xf32>
    %129 = vector.multi_reduction <add>, %128, %cst_43 [2] : vector<2x16x16xf32> to vector<2x16xf32>
    %130 = vector.shape_cast %129 : vector<2x16xf32> to vector<2x16x1xf32>
    %131 = tpu.reciprocal %130 {approx = true} : vector<2x16x1xf32> -> vector<2x16x1xf32>
    %132 = vector.broadcast %131 : vector<2x16x1xf32> to vector<2x16x16xf32>
    %133 = arith.mulf %128, %132 : vector<2x16x16xf32>
    %134 = arith.truncf %133 : vector<2x16x16xf32> to vector<2x16x16xbf16>
    "tpu.trace_start"() <{level = 10 : i32, message = "bqk,bkd->bqd"}> : () -> ()
    %cst_44 = arith.constant dense<0.000000e+00> : vector<2x16x32xf32>
    %135 = tpu.matmul %134, %118, %cst_44 {dimension_numbers = #tpu.dot_dimension_numbers<[2], [1], [1], [2], [0, 0, 0, 1, 1, 2], [0], [0]>} : vector<2x16x16xbf16>, vector<2x16x32xbf16>, vector<2x16x32xf32> -> vector<2x16x32xf32>
    "tpu.trace_stop"() : () -> ()
    %136 = vector.extract_strided_slice %9 {offsets = [0, 0, 160], sizes = [2, 16, 32], strides = [1, 1, 1]} : vector<2x16x256xf32> to vector<2x16x32xf32>
    %137 = arith.truncf %136 : vector<2x16x32xf32> to vector<2x16x32xbf16>
    %138 = vector.extract_strided_slice %13 {offsets = [0, 0, 160], sizes = [2, 16, 32], strides = [1, 1, 1]} : vector<2x16x256xf32> to vector<2x16x32xf32>
    %139 = arith.truncf %138 : vector<2x16x32xf32> to vector<2x16x32xbf16>
    %140 = vector.extract_strided_slice %17 {offsets = [0, 0, 160], sizes = [2, 16, 32], strides = [1, 1, 1]} : vector<2x16x256xf32> to vector<2x16x32xf32>
    %141 = arith.truncf %140 : vector<2x16x32xf32> to vector<2x16x32xbf16>
    "tpu.trace_start"() <{level = 10 : i32, message = "bqd,bkd->bqk"}> : () -> ()
    %cst_45 = arith.constant dense<0.000000e+00> : vector<2x16x16xf32>
    %142 = tpu.matmul %137, %139, %cst_45 {dimension_numbers = #tpu.dot_dimension_numbers<[2], [2], [1], [1], [0, 0, 0, 1, 1, 1], [0], [0]>} : vector<2x16x32xbf16>, vector<2x16x32xbf16>, vector<2x16x16xf32> -> vector<2x16x16xf32>
    %cst_46 = arith.constant -1.000000e+20 : f32
    "tpu.trace_stop"() : () -> ()
    %143 = vector.shape_cast %20 : vector<2x1x16xi1> to vector<2x1x16xi1>
    %144 = vector.broadcast %143 : vector<2x1x16xi1> to vector<2x16x16xi1>
    %145 = vector.broadcast %cst_46 : f32 to vector<2x16x16xf32>
    %146 = arith.select %144, %145, %142 : vector<2x16x16xi1>, vector<2x16x16xf32>
    %cst_47 = arith.constant dense<0xFF800000> : vector<2x16xf32>
    %147 = vector.multi_reduction <maximumf>, %146, %cst_47 [2] : vector<2x16x16xf32> to vector<2x16xf32>
    %148 = vector.shape_cast %147 : vector<2x16xf32> to vector<2x16x1xf32>
    %149 = vector.broadcast %148 : vector<2x16x1xf32> to vector<2x16x16xf32>
    %150 = arith.subf %146, %149 : vector<2x16x16xf32>
    %151 = math.exp %150 : vector<2x16x16xf32>
    %cst_48 = arith.constant dense<0.000000e+00> : vector<2x16xf32>
    %152 = vector.multi_reduction <add>, %151, %cst_48 [2] : vector<2x16x16xf32> to vector<2x16xf32>
    %153 = vector.shape_cast %152 : vector<2x16xf32> to vector<2x16x1xf32>
    %154 = tpu.reciprocal %153 {approx = true} : vector<2x16x1xf32> -> vector<2x16x1xf32>
    %155 = vector.broadcast %154 : vector<2x16x1xf32> to vector<2x16x16xf32>
    %156 = arith.mulf %151, %155 : vector<2x16x16xf32>
    %157 = arith.truncf %156 : vector<2x16x16xf32> to vector<2x16x16xbf16>
    "tpu.trace_start"() <{level = 10 : i32, message = "bqk,bkd->bqd"}> : () -> ()
    %cst_49 = arith.constant dense<0.000000e+00> : vector<2x16x32xf32>
    %158 = tpu.matmul %157, %141, %cst_49 {dimension_numbers = #tpu.dot_dimension_numbers<[2], [1], [1], [2], [0, 0, 0, 1, 1, 2], [0], [0]>} : vector<2x16x16xbf16>, vector<2x16x32xbf16>, vector<2x16x32xf32> -> vector<2x16x32xf32>
    "tpu.trace_stop"() : () -> ()
    %159 = vector.extract_strided_slice %9 {offsets = [0, 0, 192], sizes = [2, 16, 32], strides = [1, 1, 1]} : vector<2x16x256xf32> to vector<2x16x32xf32>
    %160 = arith.truncf %159 : vector<2x16x32xf32> to vector<2x16x32xbf16>
    %161 = vector.extract_strided_slice %13 {offsets = [0, 0, 192], sizes = [2, 16, 32], strides = [1, 1, 1]} : vector<2x16x256xf32> to vector<2x16x32xf32>
    %162 = arith.truncf %161 : vector<2x16x32xf32> to vector<2x16x32xbf16>
    %163 = vector.extract_strided_slice %17 {offsets = [0, 0, 192], sizes = [2, 16, 32], strides = [1, 1, 1]} : vector<2x16x256xf32> to vector<2x16x32xf32>
    %164 = arith.truncf %163 : vector<2x16x32xf32> to vector<2x16x32xbf16>
    "tpu.trace_start"() <{level = 10 : i32, message = "bqd,bkd->bqk"}> : () -> ()
    %cst_50 = arith.constant dense<0.000000e+00> : vector<2x16x16xf32>
    %165 = tpu.matmul %160, %162, %cst_50 {dimension_numbers = #tpu.dot_dimension_numbers<[2], [2], [1], [1], [0, 0, 0, 1, 1, 1], [0], [0]>} : vector<2x16x32xbf16>, vector<2x16x32xbf16>, vector<2x16x16xf32> -> vector<2x16x16xf32>
    %cst_51 = arith.constant -1.000000e+20 : f32
    "tpu.trace_stop"() : () -> ()
    %166 = vector.shape_cast %20 : vector<2x1x16xi1> to vector<2x1x16xi1>
    %167 = vector.broadcast %166 : vector<2x1x16xi1> to vector<2x16x16xi1>
    %168 = vector.broadcast %cst_51 : f32 to vector<2x16x16xf32>
    %169 = arith.select %167, %168, %165 : vector<2x16x16xi1>, vector<2x16x16xf32>
    %cst_52 = arith.constant dense<0xFF800000> : vector<2x16xf32>
    %170 = vector.multi_reduction <maximumf>, %169, %cst_52 [2] : vector<2x16x16xf32> to vector<2x16xf32>
    %171 = vector.shape_cast %170 : vector<2x16xf32> to vector<2x16x1xf32>
    %172 = vector.broadcast %171 : vector<2x16x1xf32> to vector<2x16x16xf32>
    %173 = arith.subf %169, %172 : vector<2x16x16xf32>
    %174 = math.exp %173 : vector<2x16x16xf32>
    %cst_53 = arith.constant dense<0.000000e+00> : vector<2x16xf32>
    %175 = vector.multi_reduction <add>, %174, %cst_53 [2] : vector<2x16x16xf32> to vector<2x16xf32>
    %176 = vector.shape_cast %175 : vector<2x16xf32> to vector<2x16x1xf32>
    %177 = tpu.reciprocal %176 {approx = true} : vector<2x16x1xf32> -> vector<2x16x1xf32>
    %178 = vector.broadcast %177 : vector<2x16x1xf32> to vector<2x16x16xf32>
    %179 = arith.mulf %174, %178 : vector<2x16x16xf32>
    %180 = arith.truncf %179 : vector<2x16x16xf32> to vector<2x16x16xbf16>
    "tpu.trace_start"() <{level = 10 : i32, message = "bqk,bkd->bqd"}> : () -> ()
    %cst_54 = arith.constant dense<0.000000e+00> : vector<2x16x32xf32>
    %181 = tpu.matmul %180, %164, %cst_54 {dimension_numbers = #tpu.dot_dimension_numbers<[2], [1], [1], [2], [0, 0, 0, 1, 1, 2], [0], [0]>} : vector<2x16x16xbf16>, vector<2x16x32xbf16>, vector<2x16x32xf32> -> vector<2x16x32xf32>
    "tpu.trace_stop"() : () -> ()
    %182 = vector.extract_strided_slice %9 {offsets = [0, 0, 224], sizes = [2, 16, 32], strides = [1, 1, 1]} : vector<2x16x256xf32> to vector<2x16x32xf32>
    %183 = arith.truncf %182 : vector<2x16x32xf32> to vector<2x16x32xbf16>
    %184 = vector.extract_strided_slice %13 {offsets = [0, 0, 224], sizes = [2, 16, 32], strides = [1, 1, 1]} : vector<2x16x256xf32> to vector<2x16x32xf32>
    %185 = arith.truncf %184 : vector<2x16x32xf32> to vector<2x16x32xbf16>
    %186 = vector.extract_strided_slice %17 {offsets = [0, 0, 224], sizes = [2, 16, 32], strides = [1, 1, 1]} : vector<2x16x256xf32> to vector<2x16x32xf32>
    %187 = arith.truncf %186 : vector<2x16x32xf32> to vector<2x16x32xbf16>
    "tpu.trace_start"() <{level = 10 : i32, message = "bqd,bkd->bqk"}> : () -> ()
    %cst_55 = arith.constant dense<0.000000e+00> : vector<2x16x16xf32>
    %188 = tpu.matmul %183, %185, %cst_55 {dimension_numbers = #tpu.dot_dimension_numbers<[2], [2], [1], [1], [0, 0, 0, 1, 1, 1], [0], [0]>} : vector<2x16x32xbf16>, vector<2x16x32xbf16>, vector<2x16x16xf32> -> vector<2x16x16xf32>
    %cst_56 = arith.constant -1.000000e+20 : f32
    "tpu.trace_stop"() : () -> ()
    %189 = vector.shape_cast %20 : vector<2x1x16xi1> to vector<2x1x16xi1>
    %190 = vector.broadcast %189 : vector<2x1x16xi1> to vector<2x16x16xi1>
    %191 = vector.broadcast %cst_56 : f32 to vector<2x16x16xf32>
    %192 = arith.select %190, %191, %188 : vector<2x16x16xi1>, vector<2x16x16xf32>
    %cst_57 = arith.constant dense<0xFF800000> : vector<2x16xf32>
    %193 = vector.multi_reduction <maximumf>, %192, %cst_57 [2] : vector<2x16x16xf32> to vector<2x16xf32>
    %194 = vector.shape_cast %193 : vector<2x16xf32> to vector<2x16x1xf32>
    %195 = vector.broadcast %194 : vector<2x16x1xf32> to vector<2x16x16xf32>
    %196 = arith.subf %192, %195 : vector<2x16x16xf32>
    %197 = math.exp %196 : vector<2x16x16xf32>
    %cst_58 = arith.constant dense<0.000000e+00> : vector<2x16xf32>
    %198 = vector.multi_reduction <add>, %197, %cst_58 [2] : vector<2x16x16xf32> to vector<2x16xf32>
    %199 = vector.shape_cast %198 : vector<2x16xf32> to vector<2x16x1xf32>
    %200 = tpu.reciprocal %199 {approx = true} : vector<2x16x1xf32> -> vector<2x16x1xf32>
    %201 = vector.broadcast %200 : vector<2x16x1xf32> to vector<2x16x16xf32>
    %202 = arith.mulf %197, %201 : vector<2x16x16xf32>
    %203 = arith.truncf %202 : vector<2x16x16xf32> to vector<2x16x16xbf16>
    "tpu.trace_start"() <{level = 10 : i32, message = "bqk,bkd->bqd"}> : () -> ()
    %cst_59 = arith.constant dense<0.000000e+00> : vector<2x16x32xf32>
    %204 = tpu.matmul %203, %187, %cst_59 {dimension_numbers = #tpu.dot_dimension_numbers<[2], [1], [1], [2], [0, 0, 0, 1, 1, 2], [0], [0]>} : vector<2x16x16xbf16>, vector<2x16x32xbf16>, vector<2x16x32xf32> -> vector<2x16x32xf32>
    "tpu.trace_stop"() : () -> ()
    %205 = tpu.concatenate %43, %66, %89, %112, %135, %158, %181, %204 in 2 : vector<2x16x32xf32>, vector<2x16x32xf32>, vector<2x16x32xf32>, vector<2x16x32xf32>, vector<2x16x32xf32>, vector<2x16x32xf32>, vector<2x16x32xf32>, vector<2x16x32xf32> -> vector<2x16x256xf32>
    %206 = vector.shape_cast %205 : vector<2x16x256xf32> to vector<32x256xf32>
    %207 = arith.truncf %206 : vector<32x256xf32> to vector<32x256xbf16>
    %c0_60 = arith.constant 0 : index
    %c0_61 = arith.constant 0 : index
    %208 = vector.load %arg7[%c0_60, %c0_61] : memref<256x256xbf16, #tpu.memory_space<vmem>>, vector<256x256xbf16>
    %cst_62 = arith.constant dense<0.000000e+00> : vector<32x256xf32>
    %209 = tpu.matmul %207, %208, %cst_62 {dimension_numbers = #tpu.dot_dimension_numbers<[1], [0], [0], [1], [0, 0, 1, 1], [], []>} : vector<32x256xbf16>, vector<256x256xbf16>, vector<32x256xf32> -> vector<32x256xf32>
    %c0_63 = arith.constant 0 : index
    %c0_64 = arith.constant 0 : index
    %210 = vector.load %arg8[%c0_63, %c0_64] : memref<1x256xf32, #tpu.memory_space<vmem>>, vector<1x256xf32>
    %211 = vector.broadcast %210 : vector<1x256xf32> to vector<32x256xf32>
    %212 = arith.addf %209, %211 : vector<32x256xf32>
    %213 = arith.addf %212, %1 : vector<32x256xf32>
    %c0_65 = arith.constant 0 : index
    %c0_66 = arith.constant 0 : index
    %214 = vector.load %arg9[%c0_65, %c0_66] : memref<1x256xf32, #tpu.memory_space<vmem>>, vector<1x256xf32>
    %c0_67 = arith.constant 0 : index
    %c0_68 = arith.constant 0 : index
    %215 = vector.load %arg10[%c0_67, %c0_68] : memref<1x256xf32, #tpu.memory_space<vmem>>, vector<1x256xf32>
    %cst_69 = arith.constant dense<0.000000e+00> : vector<32xf32>
    %216 = vector.multi_reduction <add>, %213, %cst_69 [1] : vector<32x256xf32> to vector<32xf32>
    %217 = vector.shape_cast %216 : vector<32xf32> to vector<32x1xf32>
    %cst_70 = arith.constant 2.560000e+02 : f32
    %218 = vector.broadcast %cst_70 : f32 to vector<32x1xf32>
    %219 = arith.divf %217, %218 : vector<32x1xf32>
    %220 = vector.broadcast %219 : vector<32x1xf32> to vector<32x256xf32>
    %221 = arith.subf %213, %220 : vector<32x256xf32>
    %222 = arith.mulf %221, %221 : vector<32x256xf32>
    %cst_71 = arith.constant dense<0.000000e+00> : vector<32xf32>
    %223 = vector.multi_reduction <add>, %222, %cst_71 [1] : vector<32x256xf32> to vector<32xf32>
    %224 = vector.shape_cast %223 : vector<32xf32> to vector<32x1xf32>
    %cst_72 = arith.constant 2.560000e+02 : f32
    %225 = vector.broadcast %cst_72 : f32 to vector<32x1xf32>
    %226 = arith.divf %224, %225 : vector<32x1xf32>
    %cst_73 = arith.constant 9.99999974E-6 : f32
    %227 = vector.broadcast %cst_73 : f32 to vector<32x1xf32>
    %228 = arith.addf %226, %227 : vector<32x1xf32>
    %229 = math.rsqrt %228 : vector<32x1xf32>
    %230 = vector.broadcast %229 : vector<32x1xf32> to vector<32x256xf32>
    %231 = arith.mulf %221, %230 : vector<32x256xf32>
    %232 = vector.broadcast %214 : vector<1x256xf32> to vector<32x256xf32>
    %233 = arith.mulf %231, %232 : vector<32x256xf32>
    %234 = vector.broadcast %215 : vector<1x256xf32> to vector<32x256xf32>
    %235 = arith.addf %233, %234 : vector<32x256xf32>
    %236 = arith.truncf %235 : vector<32x256xf32> to vector<32x256xbf16>
    %c0_74 = arith.constant 0 : index
    %c0_75 = arith.constant 0 : index
    %237 = vector.load %arg11[%c0_74, %c0_75] : memref<256x1024xbf16, #tpu.memory_space<vmem>>, vector<256x1024xbf16>
    %cst_76 = arith.constant dense<0.000000e+00> : vector<32x1024xf32>
    %238 = tpu.matmul %236, %237, %cst_76 {dimension_numbers = #tpu.dot_dimension_numbers<[1], [0], [0], [1], [0, 0, 1, 1], [], []>} : vector<32x256xbf16>, vector<256x1024xbf16>, vector<32x1024xf32> -> vector<32x1024xf32>
    %c0_77 = arith.constant 0 : index
    %c0_78 = arith.constant 0 : index
    %239 = vector.load %arg12[%c0_77, %c0_78] : memref<1x1024xf32, #tpu.memory_space<vmem>>, vector<1x1024xf32>
    %240 = vector.broadcast %239 : vector<1x1024xf32> to vector<32x1024xf32>
    %241 = arith.addf %238, %240 : vector<32x1024xf32>
    %cst_79 = arith.constant 0.000000e+00 : f32
    %242 = vector.broadcast %cst_79 : f32 to vector<32x1024xf32>
    %243 = arith.maximumf %241, %242 : vector<32x1024xf32>
    %244 = arith.truncf %243 : vector<32x1024xf32> to vector<32x1024xbf16>
    %c0_80 = arith.constant 0 : index
    %c0_81 = arith.constant 0 : index
    %245 = vector.load %arg13[%c0_80, %c0_81] : memref<1024x256xbf16, #tpu.memory_space<vmem>>, vector<1024x256xbf16>
    %cst_82 = arith.constant dense<0.000000e+00> : vector<32x256xf32>
    %246 = tpu.matmul %244, %245, %cst_82 {dimension_numbers = #tpu.dot_dimension_numbers<[1], [0], [0], [1], [0, 0, 1, 1], [], []>} : vector<32x1024xbf16>, vector<1024x256xbf16>, vector<32x256xf32> -> vector<32x256xf32>
    %c0_83 = arith.constant 0 : index
    %c0_84 = arith.constant 0 : index
    %247 = vector.load %arg14[%c0_83, %c0_84] : memref<1x256xf32, #tpu.memory_space<vmem>>, vector<1x256xf32>
    %248 = vector.broadcast %247 : vector<1x256xf32> to vector<32x256xf32>
    %249 = arith.addf %246, %248 : vector<32x256xf32>
    %250 = arith.addf %249, %235 : vector<32x256xf32>
    %c0_85 = arith.constant 0 : index
    %c0_86 = arith.constant 0 : index
    %251 = vector.load %arg15[%c0_85, %c0_86] : memref<1x256xf32, #tpu.memory_space<vmem>>, vector<1x256xf32>
    %c0_87 = arith.constant 0 : index
    %c0_88 = arith.constant 0 : index
    %252 = vector.load %arg16[%c0_87, %c0_88] : memref<1x256xf32, #tpu.memory_space<vmem>>, vector<1x256xf32>
    %cst_89 = arith.constant dense<0.000000e+00> : vector<32xf32>
    %253 = vector.multi_reduction <add>, %250, %cst_89 [1] : vector<32x256xf32> to vector<32xf32>
    %254 = vector.shape_cast %253 : vector<32xf32> to vector<32x1xf32>
    %cst_90 = arith.constant 2.560000e+02 : f32
    %255 = vector.broadcast %cst_90 : f32 to vector<32x1xf32>
    %256 = arith.divf %254, %255 : vector<32x1xf32>
    %257 = vector.broadcast %256 : vector<32x1xf32> to vector<32x256xf32>
    %258 = arith.subf %250, %257 : vector<32x256xf32>
    %259 = arith.mulf %258, %258 : vector<32x256xf32>
    %cst_91 = arith.constant dense<0.000000e+00> : vector<32xf32>
    %260 = vector.multi_reduction <add>, %259, %cst_91 [1] : vector<32x256xf32> to vector<32xf32>
    %261 = vector.shape_cast %260 : vector<32xf32> to vector<32x1xf32>
    %cst_92 = arith.constant 2.560000e+02 : f32
    %262 = vector.broadcast %cst_92 : f32 to vector<32x1xf32>
    %263 = arith.divf %261, %262 : vector<32x1xf32>
    %cst_93 = arith.constant 9.99999974E-6 : f32
    %264 = vector.broadcast %cst_93 : f32 to vector<32x1xf32>
    %265 = arith.addf %263, %264 : vector<32x1xf32>
    %266 = math.rsqrt %265 : vector<32x1xf32>
    %267 = vector.broadcast %266 : vector<32x1xf32> to vector<32x256xf32>
    %268 = arith.mulf %258, %267 : vector<32x256xf32>
    %269 = vector.broadcast %251 : vector<1x256xf32> to vector<32x256xf32>
    %270 = arith.mulf %268, %269 : vector<32x256xf32>
    %271 = vector.broadcast %252 : vector<1x256xf32> to vector<32x256xf32>
    %272 = arith.addf %270, %271 : vector<32x256xf32>
    %273 = vector.shape_cast %272 : vector<32x256xf32> to vector<2x16x256xf32>
    %c0_94 = arith.constant 0 : index
    %c0_95 = arith.constant 0 : index
    %c0_96 = arith.constant 0 : index
    %274 = vector.load %arg17[%c0_94, %c0_95, %c0_96] : memref<2x16x256xf32, #tpu.memory_space<vmem>>, vector<2x16x256xf32>
    tpu.vector_store %arg17[%c0_94, %c0_95, %c0_96], %273 {strides = array<i32>} : memref<2x16x256xf32, #tpu.memory_space<vmem>>, vector<2x16x256xf32>,
    return
  }
}

</mosaic_0001>

<bundles_post_ra>
// kernel: tpu_custom_call.1
= control target key start
LH: loop header
LB: loop body
LE: loop exit
PB: predicated region body
PF: predicated region fallthrough
CT: control target
= control target key end

     0   :  { %s9065_s0 = inlined_call_operand.hbm [shape: f32[2,16,256], index: 0, kind: input, shape index: {}]   ;;  %s9066_s1 = inlined_call_operand.hbm [shape: f32[2,16,256], index: 1, kind: input, shape index: {}]   ;;  %s9067_s2 = inlined_call_operand.hbm [shape: f32[2,16,256], index: 2, kind: input, shape index: {}]   ;;  %s9068_s3 = inlined_call_operand.vmem [shape: f32[2,1,16], index: 3, kind: input, shape index: {}]   ;;  %s9069_s4 = inlined_call_operand.hbm [shape: bf16[256,256], index: 4, kind: input, shape index: {}]   ;;  %s9070_s5 = inlined_call_operand.hbm [shape: bf16[256,256], index: 5, kind: input, shape index: {}]   ;;  %s9071_s6 = inlined_call_operand.hbm [shape: bf16[256,256], index: 6, kind: input, shape index: {}]   ;;  %s9072_s7 = inlined_call_operand.hbm [shape: bf16[256,256], index: 7, kind: input, shape index: {}]   ;;  %s9073_s8 = inlined_call_operand.hbm [shape: f32[1,256], index: 8, kind: input, shape index: {}]   ;;  %s9074_s9 = inlined_call_operand.hbm [shape: f32[1,256], index: 9, kind: input, shape index: {}]   ;;  %s9075_s10 = inlined_call_operand.hbm [shape: f32[1,256], index: 10, kind: input, shape index: {}]   ;;  %s9076_s11 = inlined_call_operand.hbm [shape: bf16[256,1024], index: 11, kind: input, shape index: {}]   ;;  %s9077_s12 = inlined_call_operand.vmem [shape: f32[1,1024], index: 12, kind: input, shape index: {}]   ;;  %s9078_s13 = inlined_call_operand.hbm [shape: bf16[1024,256], index: 13, kind: input, shape index: {}]   ;;  %s9079_s14 = inlined_call_operand.vmem [shape: f32[1,256], index: 14, kind: input, shape index: {}]   ;;  %s9080_s15 = inlined_call_operand.vmem [shape: f32[1,256], index: 15, kind: input, shape index: {}]   ;;  %s9081_s16 = inlined_call_operand.hbm [shape: f32[1,256], index: 16, kind: input, shape index: {}]   ;;  %s9082_s17 = inlined_call_operand.hbm [shape: f32[2,16,256], index: 17, kind: output, shape index: {}]  }
   0x1   :  { %9087 = sst [smem:[#allocation32_spill]] %s9065_s0 }
   0x2   :  { %9088 = sst [smem:[#allocation33_spill]] %s9066_s1 }
   0x3   :  { %22 = vsyncpa [#allocation3], 0 }
   0x4   :  { %23 = vsyncpa [#allocation6], 0 }
   0x5   :  { %24 = vsyncpa [#allocation9], 0 }
   0x6   :  { %25 = vsyncpa [#allocation12], 0 }
   0x7   :  { %26 = vsyncpa [#allocation15], 0 }
   0x8   :  { %27 = vsyncpa [#allocation18], 0 }
   0x9   :  { %28 = vsyncpa [#allocation21], 0 }
   0xa   :  { %29 = vsyncpa [#allocation4], 0  ;;  %s9089_s26 = sld [smem:[#allocation33_spill]]  ;;  %s7838_s28 = smov [#allocation5]  }
   0xb   :  { %s49_s29 = sshll.u32 %s7838_s28, 4  ;;  %s75_s18 = sshll.u32 %s9069_s4, 4  ;;  %s50_s29 = int_to_ptr.vmem [resolvable:$true] %s49_s29  ;;  %s76_s18 = int_to_ptr.hbm [resolvable:$true] %s75_s18 }
   0xc   :  { %s9083_s19 = smov 256   ;;  %s9085_s1 = smov 16  }
   0xd   :  { %s7841_s20 = smov [#allocation8]   ;;  %s7842_s22 = smov 128  }
   0xe   :  { %s77_s21 = sshll.u32 %s7841_s20, 4  ;;  %s7843_s23 = smov 8   ;;  %s78_s21 = int_to_ptr.vmem [resolvable:$true] %s77_s21 }
   0xf   :  { %83 = dma.hbm_to_vmem [thread:$0]  %s76_s18, 4096, %s78_s21, [#allocation9], %s7842_s22, %s7842_s22, %s7843_s23  }
  0x10   :  { %s47_s27 = sshll.u32 %s9089_s26, 4  ;;  %s101_s4 = sshll.u32 %s9071_s6, 4  ;;  %s48_s27 = int_to_ptr.hbm [resolvable:$true] %s47_s27  ;;  %s102_s4 = int_to_ptr.hbm [resolvable:$true] %s101_s4 }
  0x11   :  { %55 = dma.hbm_to_vmem [thread:$0]  %s48_s27, 1024, %s50_s29, [#allocation6], %s9083_s19, %s9083_s19, %s9085_s1  }
  0x12   :  { %s7844_s26 = smov [#allocation11]   ;;  %s128_s29 = sshll.u32 %s9073_s8, 4  ;;  %s129_s29 = int_to_ptr.hbm [resolvable:$true] %s128_s29 }
  0x13   :  { %s103_s28 = sshll.u32 %s7844_s26, 4  ;;  %s7845_s30 = smov [#allocation14]   ;;  %s104_s28 = int_to_ptr.vmem [resolvable:$true] %s103_s28 }
  0x14   :  { %109 = dma.hbm_to_vmem [thread:$0]  %s102_s4, 4096, %s104_s28, [#allocation12], %s7842_s22, %s7842_s22, %s7843_s23  }
  0x15   :  { %s130_s20 = sshll.u32 %s7845_s30, 4  ;;  %s150_s24 = sshll.u32 %s9075_s10, 4  ;;  %s131_s20 = int_to_ptr.vmem [resolvable:$true] %s130_s20  ;;  %s151_s24 = int_to_ptr.hbm [resolvable:$true] %s150_s24 }
  0x16   :  { %133 = dma.hbm_to_vmem [thread:$0]  %s129_s29, 32, %s131_s20, [#allocation15]  }
  0x17   :  { %s175_s26 = sshll.u32 %s9078_s13, 4  ;;  %s7846_s0 = smov [#allocation17]   ;;  %s176_s26 = int_to_ptr.hbm [resolvable:$true] %s175_s26 }
  0x18   :  { %s152_s8 = sshll.u32 %s7846_s0, 4  ;;  %s7847_s4 = smov [#allocation20]   ;;  %s153_s8 = int_to_ptr.vmem [resolvable:$true] %s152_s8 }
  0x19   :  { %155 = dma.hbm_to_vmem [thread:$0]  %s151_s24, 32, %s153_s8, [#allocation18]  }
  0x1a   :  { %s177_s28 = sshll.u32 %s7847_s4, 4  ;;  %s9090_s19 = sld [smem:[#allocation32_spill]]  ;;  %s178_s28 = int_to_ptr.vmem [resolvable:$true] %s177_s28 }
  0x1b   :  { %183 = dma.hbm_to_vmem [thread:$0]  %s176_s26, 16384, %s178_s28, [#allocation21], %s7842_s22, %s7842_s22, %s7843_s23  }
  0x1c   :  { %s60_s13 = sshll.u32 %s9067_s2, 4  ;;  %s7848_s20 = smov [#allocation2]   ;;  %s61_s13 = int_to_ptr.hbm [resolvable:$true] %s60_s13 }
  0x1d   :  { %s36_s18 = sshll.u32 %s7848_s20, 4  ;;  %s9091_s21 = smov 16   ;;  %s37_s18 = int_to_ptr.vmem [resolvable:$true] %s36_s18 }
  0x1e   :  { %s9092_s24 = smov 256   ;;  %s7849_s6 = smov [#allocation7]  }
  0x1f   :  { %s88_s8 = sshll.u32 %s9070_s5, 4  ;;  %s114_s4 = sshll.u32 %s9072_s7, 4  ;;  %s89_s8 = int_to_ptr.hbm [resolvable:$true] %s88_s8  ;;  %s115_s4 = int_to_ptr.hbm [resolvable:$true] %s114_s4 }
  0x20   :  { %s34_s1 = sshll.u32 %s9090_s19, 4  ;;  %s62_s19 = sshll.u32 %s7849_s6, 4  ;;  %s35_s1 = int_to_ptr.hbm [resolvable:$true] %s34_s1  ;;  %s63_s19 = int_to_ptr.vmem [resolvable:$true] %s62_s19 }
  0x21   :  { %42 = dma.hbm_to_vmem [thread:$0]  %s35_s1, 1024, %s37_s18, [#allocation3], %s9092_s24, %s9092_s24, %s9091_s21  }
  0x22   :  { %68 = dma.hbm_to_vmem [thread:$0]  %s61_s13, 1024, %s63_s19, [#allocation6], %s9092_s24, %s9092_s24, %s9091_s21  }
  0x23   :  { %s7850_s28 = smov [#allocation10]   ;;  %s7851_s1 = smov [#allocation13]  }
  0x24   :  { %s90_s27 = sshll.u32 %s7850_s28, 4  ;;  %s116_s5 = sshll.u32 %s7851_s1, 4  ;;  %s91_s27 = int_to_ptr.vmem [resolvable:$true] %s90_s27  ;;  %s117_s5 = int_to_ptr.vmem [resolvable:$true] %s116_s5 }
  0x25   :  { %96 = dma.hbm_to_vmem [thread:$0]  %s89_s8, 4096, %s91_s27, [#allocation9], %s7842_s22, %s7842_s22, %s7843_s23  }
  0x26   :  { %s139_s29 = sshll.u32 %s9074_s9, 4  ;;  %s160_s20 = sshll.u32 %s9076_s11, 4  ;;  %s140_s29 = int_to_ptr.hbm [resolvable:$true] %s139_s29  ;;  %s161_s20 = int_to_ptr.hbm [resolvable:$true] %s160_s20 }
  0x27   :  { %122 = dma.hbm_to_vmem [thread:$0]  %s115_s4, 4096, %s117_s5, [#allocation12], %s7842_s22, %s7842_s22, %s7843_s23  }
  0x28   :  { %s7852_s18 = smov [#allocation16]   ;;  %s7853_s19 = smov [#allocation19]  }
  0x29   :  { %s141_s6 = sshll.u32 %s7852_s18, 4  ;;  %s162_s25 = sshll.u32 %s7853_s19, 4  ;;  %s142_s6 = int_to_ptr.vmem [resolvable:$true] %s141_s6  ;;  %s163_s25 = int_to_ptr.vmem [resolvable:$true] %s162_s25 }
  0x2a   :  { %144 = dma.hbm_to_vmem [thread:$0]  %s140_s29, 32, %s142_s6, [#allocation15]  }
  0x2b   :  { %s7854_s0 = smov 512   ;;  %s7855_s9 = smov 32  }
  0x2c   :  { %168 = dma.hbm_to_vmem [thread:$0]  %s161_s20, 16384, %s163_s25, [#allocation18], %s7854_s0, %s7854_s0, %s7855_s9  }
  0x2d   :  { %s193_s22 = sshll.u32 %s9081_s16, 4  ;;  %s7856_s23 = smov [#allocation22]   ;;  %s194_s22 = int_to_ptr.hbm [resolvable:$true] %s193_s22 }
  0x2e   :  { %s195_s26 = sshll.u32 %s7856_s23, 4  ;;  %s196_s26 = int_to_ptr.vmem [resolvable:$true] %s195_s26 }
  0x2f   :  { %198 = dma.hbm_to_vmem [thread:$0]  %s194_s22, 32, %s196_s26, [#allocation21]  }
  0x30   :  { %7822 = dma.done.wait [#allocation3], 1024  }
  0x31   :  { %7823 = vsyncadd [#allocation3], 4294966272 }
  0x32   :  { %7824 = dma.done.wait [#allocation6], 2048  }
  0x33   :  { %7825 = vsyncadd [#allocation6], 4294965248 }
  0x34   :  { %7826 = dma.done.wait [#allocation9], 8192  }
  0x35   :  { %7827 = vsyncadd [#allocation9], 4294959104 }
  0x36   :  { %7828 = dma.done.wait [#allocation12], 8192  }
  0x37   :  { %7829 = vsyncadd [#allocation12], 4294959104 }
  0x38   :  { %7830 = dma.done.wait [#allocation15], 64  }
  0x39   :  { %7831 = vsyncadd [#allocation15], 4294967232 }
  0x3a   :  { %7832 = dma.done.wait [#allocation18], 16416  }
  0x3b   :  { %7833 = vsyncadd [#allocation18], 4294950880 }
  0x3c   :  { %7834 = dma.done.wait [#allocation21], 16416  }
  0x3d   :  { %7835 = vsyncadd [#allocation21], 4294950880  ;;  %v5354_v0 = vld [vmem:[#allocation8 + $0x70] sm:$0xf]  ;;  %v6879_v1 = vld [vmem:[#allocation8 + $0x74] sm:$0xf0] }
  0x3e   :  { %v5418_v2 = vld [vmem:[#allocation8 + $0xf0] sm:$0xf]  ;;  %v5355_v3 = vor.u32 %v6879_v1, %v5354_v0  ;;  %v6895_v4 = vld [vmem:[#allocation8 + $0xf4] sm:$0xf0]  ;;  %v5346_v5 = vld [vmem:[#allocation8 + $0x60] sm:$0xf] }
  0x3f   :  { %v6877_v6 = vld [vmem:[#allocation8 + $0x64] sm:$0xf0]  ;;  %v5419_v7 = vor.u32 %v6895_v4, %v5418_v2  ;;  %v5410_v8 = vld [vmem:[#allocation8 + $0xe0] sm:$0xf]  ;;  %v5338_v11 = vld [vmem:[#allocation8 + $0x50] sm:$0xf] }
  0x40   :  { %v6893_v9 = vld [vmem:[#allocation8 + $0xe4] sm:$0xf0]  ;;  %472 = vmatpush.bf16.msra.mxu0 %v5355_v3  ;;  %v5347_v10 = vor.u32 %v6877_v6, %v5346_v5  ;;  %v6875_v12 = vld [vmem:[#allocation8 + $0x54] sm:$0xf0]  ;;  %v6878_v14 = vld [vmem:[#allocation8 + $0x74] sm:$0xf] }
  0x41   :  { %491 = vmatpush.bf16.msra.mxu1 %v5419_v7  ;;  %v5411_v13 = vor.u32 %v6893_v9, %v5410_v8  ;;  %v5356_v15 = vld [vmem:[#allocation8 + $0x78] sm:$0xf0]  ;;  %v6894_v16 = vld [vmem:[#allocation8 + $0xf4] sm:$0xf]  ;;  %v5402_v17 = vld [vmem:[#allocation8 + $0xd0] sm:$0xf]  ;;  %v5339_v23 = vor.u32 %v6875_v12, %v5338_v11 }
  0x42   :  { %v6891_v18 = vld [vmem:[#allocation8 + $0xd4] sm:$0xf0]  ;;  %v5359_v19 = vor.u32 %v6878_v14, %v5356_v15  ;;  %v5420_v20 = vld [vmem:[#allocation8 + $0xf8] sm:$0xf0]  ;;  %v6876_v22 = vld [vmem:[#allocation8 + $0x64] sm:$0xf] }
  0x43   :  { %v5423_v21 = vor.u32 %v6894_v16, %v5420_v20  ;;  %v5348_v24 = vld [vmem:[#allocation8 + $0x68] sm:$0xf0]  ;;  %v6892_v25 = vld [vmem:[#allocation8 + $0xe4] sm:$0xf]  ;;  %v5403_v27 = vor.u32 %v6891_v18, %v5402_v17  ;;  %v5330_v28 = vld [vmem:[#allocation8 + $0x40] sm:$0xf] }
  0x44   :  { %473 = vmatpush.bf16.msra.mxu0 %v5347_v10  ;;  %510 = vmatpush.bf16.msra.mxu2 %v5359_v19  ;;  %v5412_v26 = vld [vmem:[#allocation8 + $0xe8] sm:$0xf0]  ;;  %v6873_v29 = vld [vmem:[#allocation8 + $0x44] sm:$0xf0]  ;;  %v5394_v30 = vld [vmem:[#allocation8 + $0xc0] sm:$0xf]  ;;  %v5351_v31 = vor.u32 %v6876_v22, %v5348_v24 }
  0x45   :  { %492 = vmatpush.bf16.msra.mxu1 %v5411_v13  ;;  %529 = vmatpush.bf16.msra.mxu3 %v5423_v21  ;;  %v5415_v32 = vor.u32 %v6892_v25, %v5412_v26  ;;  %v6889_v33 = vld [vmem:[#allocation8 + $0xc4] sm:$0xf0]  ;;  %v6874_v34 = vld [vmem:[#allocation8 + $0x54] sm:$0xf]  ;;  %v5340_v35 = vld [vmem:[#allocation8 + $0x58] sm:$0xf0]  ;;  %v5331_v38 = vor.u32 %v6873_v29, %v5330_v28 }
  0x46   :  { %v6890_v36 = vld [vmem:[#allocation8 + $0xd4] sm:$0xf]  ;;  %v5404_v37 = vld [vmem:[#allocation8 + $0xd8] sm:$0xf0]  ;;  %v5322_v39 = vld [vmem:[#allocation8 + $0x30] sm:$0xf]  ;;  %v5343_v41 = vor.u32 %v6874_v34, %v5340_v35  ;;  %v5395_v42 = vor.u32 %v6889_v33, %v5394_v30 }
  0x47   :  { %v6871_v40 = vld [vmem:[#allocation8 + $0x34] sm:$0xf0]  ;;  %v5386_v43 = vld [vmem:[#allocation8 + $0xb0] sm:$0xf]  ;;  %v5407_v44 = vor.u32 %v6890_v36, %v5404_v37  ;;  %v6872_v45 = vld [vmem:[#allocation8 + $0x44] sm:$0xf] }
  0x48   :  { %474 = vmatpush.bf16.msra.mxu0 %v5339_v23  ;;  %511 = vmatpush.bf16.msra.mxu2 %v5351_v31  ;;  %v5332_v46 = vld [vmem:[#allocation8 + $0x48] sm:$0xf0]  ;;  %v6887_v47 = vld [vmem:[#allocation8 + $0xb4] sm:$0xf0]  ;;  %v6888_v48 = vld [vmem:[#allocation8 + $0xc4] sm:$0xf]  ;;  %v5323_v50 = vor.u32 %v6871_v40, %v5322_v39 }
  0x49   :  { %493 = vmatpush.bf16.msra.mxu1 %v5403_v27  ;;  %530 = vmatpush.bf16.msra.mxu3 %v5415_v32  ;;  %v5396_v49 = vld [vmem:[#allocation8 + $0xc8] sm:$0xf0]  ;;  %v5314_v51 = vld [vmem:[#allocation8 + $0x20] sm:$0xf]  ;;  %v6869_v52 = vld [vmem:[#allocation8 + $0x24] sm:$0xf0]  ;;  %v5335_v53 = vor.u32 %v6872_v45, %v5332_v46  ;;  %v5387_v54 = vor.u32 %v6887_v47, %v5386_v43 }
  0x4a   :  { %v5378_v55 = vld [vmem:[#allocation8 + $0xa0] sm:$0xf]  ;;  %v5399_v56 = vor.u32 %v6888_v48, %v5396_v49  ;;  %v6870_v57 = vld [vmem:[#allocation8 + $0x34] sm:$0xf]  ;;  %v5324_v58 = vld [vmem:[#allocation8 + $0x38] sm:$0xf0]  ;;  %v5315_v62 = vor.u32 %v6869_v52, %v5314_v51 }
  0x4b   :  { %v6885_v59 = vld [vmem:[#allocation8 + $0xa4] sm:$0xf0]  ;;  %v6886_v60 = vld [vmem:[#allocation8 + $0xb4] sm:$0xf]  ;;  %v5388_v61 = vld [vmem:[#allocation8 + $0xb8] sm:$0xf0]  ;;  %v5327_v1 = vor.u32 %v6870_v57, %v5324_v58 }
  0x4c   :  { %475 = vmatpush.bf16.msra.mxu0 %v5331_v38  ;;  %512 = vmatpush.bf16.msra.mxu2 %v5343_v41  ;;  %v5306_v63 = vld [vmem:[#allocation8 + $0x10] sm:$0xf]  ;;  %v6867_v0 = vld [vmem:[#allocation8 + $0x14] sm:$0xf0]  ;;  %v5379_v2 = vor.u32 %v6885_v59, %v5378_v55  ;;  %v5391_v4 = vor.u32 %v6886_v60, %v5388_v61  ;;  %v6868_v5 = vld [vmem:[#allocation8 + $0x24] sm:$0xf] }
  0x4d   :  { %494 = vmatpush.bf16.msra.mxu1 %v5395_v42  ;;  %531 = vmatpush.bf16.msra.mxu3 %v5407_v44  ;;  %v5370_v3 = vld [vmem:[#allocation8 + $0x90] sm:$0xf]  ;;  %v5316_v6 = vld [vmem:[#allocation8 + $0x28] sm:$0xf0]  ;;  %v6883_v7 = vld [vmem:[#allocation8 + $0x94] sm:$0xf0]  ;;  %v5307_v10 = vor.u32 %v6867_v0, %v5306_v63 }
  0x4e   :  { %v6884_v8 = vld [vmem:[#allocation8 + $0xa4] sm:$0xf]  ;;  %v5380_v9 = vld [vmem:[#allocation8 + $0xa8] sm:$0xf0]  ;;  %v5298_v11 = vld [vmem:[#allocation8] sm:$0xf]  ;;  %v5319_v14 = vor.u32 %v6868_v5, %v5316_v6  ;;  %v5371_v15 = vor.u32 %v6883_v7, %v5370_v3 }
  0x4f   :  { %v6865_v12 = vld [vmem:[#allocation8 + $0x4] sm:$0xf0]  ;;  %v5362_v13 = vld [vmem:[#allocation8 + $0x80] sm:$0xf]  ;;  %v5383_v17 = vor.u32 %v6884_v8, %v5380_v9  ;;  %v6866_v18 = vld [vmem:[#allocation8 + $0x14] sm:$0xf] }
  0x50   :  { %476 = vmatpush.bf16.msra.mxu0 %v5323_v50  ;;  %513 = vmatpush.bf16.msra.mxu2 %v5335_v53  ;;  %v6881_v16 = vld [vmem:[#allocation8 + $0x84] sm:$0xf0]  ;;  %v5308_v19 = vld [vmem:[#allocation8 + $0x18] sm:$0xf0]  ;;  %v252_v20 = vld [vmem:[#allocation2] sm:$0xff]  ;;  %v5299_v28 = vor.u32 %v6865_v12, %v5298_v11  ;;  %s7857_s11 = smov 96  }
  0x51   :  { %495 = vmatpush.bf16.msra.mxu1 %v5387_v54  ;;  %532 = vmatpush.bf16.msra.mxu3 %v5399_v56  ;;  %v254_v21 = vld [vmem:[#allocation2 + $0x10] sm:$0xff]  ;;  %v6911_v23 = vld [vmem:[#allocation10 + $0x74] sm:$0xf0]  ;;  %v5372_v27 = vld [vmem:[#allocation8 + $0x98] sm:$0xf0]  ;;  %v5311_v31 = vor.u32 %v6866_v18, %v5308_v19  ;;  %v5363_v33 = vor.u32 %v6881_v16, %v5362_v13  ;;  %s7858_s16 = smov 64  }
  0x52   :  { %v5482_v22 = vld [vmem:[#allocation10 + $0x70] sm:$0xf]  ;;  %v6927_v25 = vld [vmem:[#allocation10 + $0xf4] sm:$0xf0]  ;;  %v6882_v26 = vld [vmem:[#allocation8 + $0x94] sm:$0xf]  ;;  %v276_v43 = vpack.c.bf16 %v254_v21, %v252_v20 }
  0x53   :  { %v5546_v24 = vld [vmem:[#allocation10 + $0xf0] sm:$0xf]  ;;  %v253_v29 = vld [vmem:[#allocation2 + $0x8] sm:$0xff]  ;;  %v255_v30 = vld [vmem:[#allocation2 + $0x18] sm:$0xff]  ;;  %v5483_v34 = vor.u32 %v6911_v23, %v5482_v22  ;;  %v5375_v39 = vor.u32 %v6882_v26, %v5372_v27  ;;  %vm1118_vm0 = vcmask 261120   ;;  %vm1179_vm3 = vcmask 130048  }
  0x54   :  { %477 = vmatpush.bf16.msra.mxu0 %v5315_v62  ;;  %514 = vmatpush.bf16.msra.mxu2 %v5327_v1  ;;  %v5474_v32 = vld [vmem:[#allocation10 + $0x60] sm:$0xf]  ;;  %v6909_v35 = vld [vmem:[#allocation10 + $0x64] sm:$0xf0]  ;;  %v6864_v36 = vld [vmem:[#allocation8 + $0x4] sm:$0xf]  ;;  %v5547_v38 = vor.u32 %v6927_v25, %v5546_v24  ;;  %v277_v47 = vpack.c.bf16 %v255_v30, %v253_v29 }
  0x55   :  { %496 = vmatpush.bf16.msra.mxu1 %v5379_v2  ;;  %533 = vmatpush.bf16.msra.mxu3 %v5391_v4  ;;  %v5300_v37 = vld [vmem:[#allocation8 + $0x8] sm:$0xf0]  ;;  %v5538_v40 = vld [vmem:[#allocation10 + $0xe0] sm:$0xf]  ;;  %v6910_v41 = vld [vmem:[#allocation10 + $0x74] sm:$0xf]  ;;  %v5475_v51 = vor.u32 %v6909_v35, %v5474_v32 }
  0x56   :  { %v5484_v42 = vld [vmem:[#allocation10 + $0x78] sm:$0xf0]  ;;  %v6925_v44 = vld [vmem:[#allocation10 + $0xe4] sm:$0xf0]  ;;  %v6880_v45 = vld [vmem:[#allocation8 + $0x84] sm:$0xf]  ;;  %v5303_v48 = vor.u32 %v6864_v36, %v5300_v37 }
  0x57   :  { %v5364_v46 = vld [vmem:[#allocation8 + $0x88] sm:$0xf0]  ;;  %v6926_v49 = vld [vmem:[#allocation10 + $0xf4] sm:$0xf]  ;;  %v5548_v50 = vld [vmem:[#allocation10 + $0xf8] sm:$0xf0]  ;;  %v5487_v52 = vor.u32 %v6910_v41, %v5484_v42  ;;  %v5539_v53 = vor.u32 %v6925_v44, %v5538_v40 }
  0x58   :  { %478 = vmatpush.bf16.msra.mxu0 %v5307_v10  ;;  %515 = vmatpush.bf16.msra.mxu2 %v5319_v14  ;;  %v5367_v54 = vor.u32 %v6880_v45, %v5364_v46  ;;  %v5466_v55 = vld [vmem:[#allocation10 + $0x50] sm:$0xf]  ;;  %v6907_v56 = vld [vmem:[#allocation10 + $0x54] sm:$0xf0]  ;;  %v5551_v59 = vor.u32 %v6926_v49, %v5548_v50  ;;  %v6908_v60 = vld [vmem:[#allocation10 + $0x64] sm:$0xf] }
  0x59   :  { %497 = vmatpush.bf16.msra.mxu1 %v5371_v15  ;;  %534 = vmatpush.bf16.msra.mxu3 %v5383_v17  ;;  %v5530_v57 = vld [vmem:[#allocation10 + $0xd0] sm:$0xf]  ;;  %v6923_v58 = vld [vmem:[#allocation10 + $0xd4] sm:$0xf0]  ;;  %v5476_v61 = vld [vmem:[#allocation10 + $0x68] sm:$0xf0]  ;;  %v5467_v0 = vor.u32 %v6907_v56, %v5466_v55 }
  0x5a   :  { %v6924_v62 = vld [vmem:[#allocation10 + $0xe4] sm:$0xf]  ;;  %v5540_v63 = vld [vmem:[#allocation10 + $0xe8] sm:$0xf0]  ;;  %v5531_v1 = vor.u32 %v6923_v58, %v5530_v57  ;;  %v5458_v2 = vld [vmem:[#allocation10 + $0x40] sm:$0xf]  ;;  %v5479_v5 = vor.u32 %v6908_v60, %v5476_v61 }
  0x5b   :  { %v6905_v3 = vld [vmem:[#allocation10 + $0x44] sm:$0xf0]  ;;  %v5522_v4 = vld [vmem:[#allocation10 + $0xc0] sm:$0xf]  ;;  %v5543_v7 = vor.u32 %v6924_v62, %v5540_v63  ;;  %v6906_v8 = vld [vmem:[#allocation10 + $0x54] sm:$0xf] }
  0x5c   :  { %479 = vmatpush.bf16.msra.mxu0 %v5299_v28  ;;  %516 = vmatpush.bf16.msra.mxu2 %v5311_v31  ;;  %v6921_v6 = vld [vmem:[#allocation10 + $0xc4] sm:$0xf0]  ;;  %v5468_v9 = vld [vmem:[#allocation10 + $0x58] sm:$0xf0]  ;;  %v6922_v10 = vld [vmem:[#allocation10 + $0xd4] sm:$0xf]  ;;  %v5459_v12 = vor.u32 %v6905_v3, %v5458_v2 }
  0x5d   :  { %498 = vmatpush.bf16.msra.mxu1 %v5363_v33  ;;  %535 = vmatpush.bf16.msra.mxu3 %v5375_v39  ;;  %v5532_v11 = vld [vmem:[#allocation10 + $0xd8] sm:$0xf0]  ;;  %v5523_v13 = vor.u32 %v6921_v6, %v5522_v4  ;;  %v256_v14 = vld [vmem:[#allocation2 + $0x20] sm:$0xff]  ;;  %v5450_v15 = vld [vmem:[#allocation10 + $0x30] sm:$0xf]  ;;  %v5471_v18 = vor.u32 %v6906_v8, %v5468_v9  ;;  %vm2464_vm6 = vcmask 523264  }
  0x5e   :  { %v6903_v16 = vld [vmem:[#allocation10 + $0x34] sm:$0xf0]  ;;  %v5514_v17 = vld [vmem:[#allocation10 + $0xb0] sm:$0xf]  ;;  %v5535_v20 = vor.u32 %v6922_v10, %v5532_v11  ;;  %v6904_v21 = vld [vmem:[#allocation10 + $0x44] sm:$0xf] }
  0x5f   :  { %480 = vmatmul.bf16.vlgmr.msra.gmra.mxu0 %v276_v43  ;;  %v6919_v19 = vld [vmem:[#allocation10 + $0xb4] sm:$0xf0]  ;;  %v5460_v22 = vld [vmem:[#allocation10 + $0x48] sm:$0xf0]  ;;  %v258_v23 = vld [vmem:[#allocation2 + $0x30] sm:$0xff]  ;;  %v5451_v28 = vor.u32 %v6903_v16, %v5450_v15  ;;  %vm2469_vm7 = vcmask 785408  }
  0x60   :  { %744 = vmatpush.bf16.msrb.mxu0 %v5483_v34  ;;  %499 = vmatmul.bf16.vlgmr.msra.gmra.mxu1 %v277_v47  ;;  %v6920_v24 = vld [vmem:[#allocation10 + $0xc4] sm:$0xf]  ;;  %v5524_v25 = vld [vmem:[#allocation10 + $0xc8] sm:$0xf0]  ;;  %v259_v27 = vld [vmem:[#allocation2 + $0x38] sm:$0xff]  ;;  %v5515_v29 = vor.u32 %v6919_v19, %v5514_v17  ;;  %v5463_v33 = vor.u32 %v6904_v21, %v5460_v22  ;;  %v278_v34 = vpack.c.bf16 %v258_v23, %v256_v14  ;;  %s5277_s20 = sshll.u32 %s9082_s17, 4  ;;  %s5278_s20 = int_to_ptr.hbm [resolvable:$true] %s5277_s20 }
  0x61   :  { %763 = vmatpush.bf16.msrb.mxu1 %v5547_v38  ;;  %517 = vmatpush.bf16.msra.mxu2 %v5303_v48  ;;  %v257_v26 = vld [vmem:[#allocation2 + $0x28] sm:$0xff]  ;;  %v5442_v30 = vld [vmem:[#allocation10 + $0x20] sm:$0xf]  ;;  %v5527_v36 = vor.u32 %v6920_v24, %v5524_v25  ;;  %v6902_v37 = vld [vmem:[#allocation10 + $0x34] sm:$0xf] }
  0x62   :  { %536 = vmatpush.bf16.msra.mxu3 %v5367_v54  ;;  %v6901_v31 = vld [vmem:[#allocation10 + $0x24] sm:$0xf0]  ;;  %v5506_v32 = vld [vmem:[#allocation10 + $0xa0] sm:$0xf]  ;;  %v5452_v38 = vld [vmem:[#allocation10 + $0x38] sm:$0xf0]  ;;  %v279_v39 = vpack.c.bf16 %v259_v27, %v257_v26 }
  0x63   :  { %v6917_v35 = vld [vmem:[#allocation10 + $0xa4] sm:$0xf0]  ;;  %v6918_v40 = vld [vmem:[#allocation10 + $0xb4] sm:$0xf]  ;;  %v5516_v41 = vld [vmem:[#allocation10 + $0xb8] sm:$0xf0]  ;;  %v5443_v42 = vor.u32 %v6901_v31, %v5442_v30 }
  0x64   :  { %745 = vmatpush.bf16.msrb.mxu0 %v5475_v51  ;;  %518 = vmatmul.bf16.vlgmr.msra.gmra.mxu2 %v276_v43  ;;  %v5507_v43 = vor.u32 %v6917_v35, %v5506_v32  ;;  %v5434_v44 = vld [vmem:[#allocation10 + $0x10] sm:$0xf]  ;;  %v6899_v45 = vld [vmem:[#allocation10 + $0x14] sm:$0xf0]  ;;  %v5519_v49 = vor.u32 %v6918_v40, %v5516_v41  ;;  %v6900_v50 = vld [vmem:[#allocation10 + $0x24] sm:$0xf] }
  0x65   :  { %782 = vmatpush.bf16.msrb.mxu2 %v5487_v52  ;;  %764 = vmatpush.bf16.msrb.mxu1 %v5539_v53  ;;  %v5498_v46 = vld [vmem:[#allocation10 + $0x90] sm:$0xf]  ;;  %v6915_v48 = vld [vmem:[#allocation10 + $0x94] sm:$0xf0]  ;;  %v5444_v51 = vld [vmem:[#allocation10 + $0x28] sm:$0xf0]  ;;  %v5435_v54 = vor.u32 %v6899_v45, %v5434_v44 }
  0x66   :  { %801 = vmatpush.bf16.msrb.mxu3 %v5551_v59  ;;  %v6916_v52 = vld [vmem:[#allocation10 + $0xa4] sm:$0xf]  ;;  %v5508_v53 = vld [vmem:[#allocation10 + $0xa8] sm:$0xf0]  ;;  %v5426_v55 = vld [vmem:[#allocation10] sm:$0xf]  ;;  %v5499_v56 = vor.u32 %v6915_v48, %v5498_v46  ;;  %v5447_v60 = vor.u32 %v6900_v50, %v5444_v51 }
  0x67   :  { %537 = vmatmul.bf16.vlgmr.msra.gmra.mxu3 %v277_v47  ;;  %v5455_v47 = vor.u32 %v6902_v37, %v5452_v38  ;;  %v6897_v57 = vld [vmem:[#allocation10 + $0x4] sm:$0xf0]  ;;  %v5490_v58 = vld [vmem:[#allocation10 + $0x80] sm:$0xf]  ;;  %v5511_v61 = vor.u32 %v6916_v52, %v5508_v53  ;;  %v6898_v62 = vld [vmem:[#allocation10 + $0x14] sm:$0xf] }
  0x68   :  { %746 = vmatpush.bf16.msrb.mxu0 %v5467_v0  ;;  %v6913_v59 = vld [vmem:[#allocation10 + $0x84] sm:$0xf0]  ;;  %v5436_v63 = vld [vmem:[#allocation10 + $0x18] sm:$0xf0]  ;;  %v6914_v0 = vld [vmem:[#allocation10 + $0x94] sm:$0xf]  ;;  %v5427_v4 = vor.u32 %v6897_v57, %v5426_v55 }
  0x69   :  { %765 = vmatpush.bf16.msrb.mxu1 %v5531_v1  ;;  %783 = vmatpush.bf16.msrb.mxu2 %v5479_v5  ;;  %v5500_v1 = vld [vmem:[#allocation10 + $0x98] sm:$0xf0]  ;;  %v5610_v2 = vld [vmem:[#allocation11 + $0x70] sm:$0xf]  ;;  %v6943_v3 = vld [vmem:[#allocation11 + $0x74] sm:$0xf0]  ;;  %v5439_v10 = vor.u32 %v6898_v62, %v5436_v63 }
  0x6a   :  { %802 = vmatpush.bf16.msrb.mxu3 %v5543_v7  ;;  %v5674_v5 = vld [vmem:[#allocation11 + $0xf0] sm:$0xf]  ;;  %v6959_v6 = vld [vmem:[#allocation11 + $0xf4] sm:$0xf0]  ;;  %v5491_v7 = vor.u32 %v6913_v59, %v5490_v58  ;;  %v260_v8 = vld [vmem:[#allocation5] sm:$0xff]  ;;  %v5611_v15 = vor.u32 %v6943_v3, %v5610_v2 }
  0x6b   :  { %v262_v9 = vld [vmem:[#allocation5 + $0x10] sm:$0xff]  ;;  %v261_v11 = vld [vmem:[#allocation5 + $0x8] sm:$0xff]  ;;  %v263_v16 = vld [vmem:[#allocation5 + $0x18] sm:$0xff]  ;;  %v5675_v19 = vor.u32 %v6959_v6, %v5674_v5 }
  0x6c   :  { %747 = vmatpush.bf16.msrb.mxu0 %v5459_v12  ;;  %v5503_v12 = vor.u32 %v6914_v0, %v5500_v1  ;;  %v5428_v14 = vld [vmem:[#allocation10 + $0x8] sm:$0xf0]  ;;  %v6912_v17 = vld [vmem:[#allocation10 + $0x84] sm:$0xf]  ;;  %v6941_v21 = vld [vmem:[#allocation11 + $0x64] sm:$0xf0]  ;;  %v548_v27 = vpack.c.bf16 %v262_v9, %v260_v8  ;;  %v549_v31 = vpack.c.bf16 %v263_v16, %v261_v11 }
  0x6d   :  { %766 = vmatpush.bf16.msrb.mxu1 %v5523_v13  ;;  %784 = vmatpush.bf16.msrb.mxu2 %v5471_v18  ;;  %v6896_v13 = vld [vmem:[#allocation10 + $0x4] sm:$0xf]  ;;  %v5492_v18 = vld [vmem:[#allocation10 + $0x88] sm:$0xf0]  ;;  %v5666_v22 = vld [vmem:[#allocation11 + $0xe0] sm:$0xf] }
  0x6e   :  { %803 = vmatpush.bf16.msrb.mxu3 %v5535_v20  ;;  %v5602_v20 = vld [vmem:[#allocation11 + $0x60] sm:$0xf]  ;;  %v5431_v23 = vor.u32 %v6896_v13, %v5428_v14  ;;  %v6957_v24 = vld [vmem:[#allocation11 + $0xe4] sm:$0xf0]  ;;  %v6942_v25 = vld [vmem:[#allocation11 + $0x74] sm:$0xf] }
  0x6f   :  { %485 = vmatmul.bf16.gmra.mxu0 %v278_v34  ;;  %v5612_v26 = vld [vmem:[#allocation11 + $0x78] sm:$0xf0]  ;;  %v5603_v32 = vor.u32 %v6941_v21, %v5602_v20  ;;  %v5594_v35 = vld [vmem:[#allocation11 + $0x50] sm:$0xf]  ;;  %v6940_v40 = vld [vmem:[#allocation11 + $0x64] sm:$0xf] }
  0x70   :  { %748 = vmatpush.bf16.msrb.mxu0 %v5451_v28  ;;  %504 = vmatmul.bf16.gmra.mxu1 %v279_v39  ;;  %v5495_v28 = vor.u32 %v6912_v17, %v5492_v18  ;;  %v5676_v30 = vld [vmem:[#allocation11 + $0xf8] sm:$0xf0]  ;;  %v5658_v38 = vld [vmem:[#allocation11 + $0xd0] sm:$0xf]  ;;  %v5604_v41 = vld [vmem:[#allocation11 + $0x68] sm:$0xf0] }
  0x71   :  { %767 = vmatpush.bf16.msrb.mxu1 %v5515_v29  ;;  %785 = vmatpush.bf16.msrb.mxu2 %v5463_v33  ;;  %v6958_v29 = vld [vmem:[#allocation11 + $0xf4] sm:$0xf]  ;;  %v5667_v33 = vor.u32 %v6957_v24, %v5666_v22  ;;  %v5586_v46 = vld [vmem:[#allocation11 + $0x40] sm:$0xf]  ;;  %v5607_v48 = vor.u32 %v6940_v40, %v5604_v41  ;;  %v6953_v51 = vld [vmem:[#allocation11 + $0xc4] sm:$0xf0] }
  0x72   :  { %804 = vmatpush.bf16.msrb.mxu3 %v5527_v36  ;;  %v6939_v36 = vld [vmem:[#allocation11 + $0x54] sm:$0xf0]  ;;  %v5679_v37 = vor.u32 %v6958_v29, %v5676_v30  ;;  %v5650_v50 = vld [vmem:[#allocation11 + $0xc0] sm:$0xf]  ;;  %v6938_v52 = vld [vmem:[#allocation11 + $0x54] sm:$0xf] }
  0x73   :  { %v5595_v44 = vor.u32 %v6939_v36, %v5594_v35  ;;  %v5596_v53 = vld [vmem:[#allocation11 + $0x58] sm:$0xf0]  ;;  %v5651_v57 = vor.u32 %v6953_v51, %v5650_v50  ;;  %v5578_v58 = vld [vmem:[#allocation11 + $0x30] sm:$0xf]  ;;  %v6935_v59 = vld [vmem:[#allocation11 + $0x34] sm:$0xf0] }
  0x74   :  { %749 = vmatpush.bf16.msrb.mxu0 %v5443_v42  ;;  %523 = vmatmul.bf16.gmra.mxu2 %v278_v34  ;;  %v5615_v34 = vor.u32 %v6942_v25, %v5612_v26  ;;  %v6956_v42 = vld [vmem:[#allocation11 + $0xe4] sm:$0xf]  ;;  %v5660_v55 = vld [vmem:[#allocation11 + $0xd8] sm:$0xf0]  ;;  %v5642_v62 = vld [vmem:[#allocation11 + $0xb0] sm:$0xf] }
  0x75   :  { %768 = vmatpush.bf16.msrb.mxu1 %v5507_v43  ;;  %786 = vmatpush.bf16.msrb.mxu2 %v5455_v47  ;;  %v5668_v43 = vld [vmem:[#allocation11 + $0xe8] sm:$0xf0]  ;;  %v6937_v47 = vld [vmem:[#allocation11 + $0x44] sm:$0xf0]  ;;  %v6951_v63 = vld [vmem:[#allocation11 + $0xb4] sm:$0xf0] }
  0x76   :  { %805 = vmatpush.bf16.msrb.mxu3 %v5519_v49  ;;  %v5671_v49 = vor.u32 %v6956_v42, %v5668_v43  ;;  %v6936_v0 = vld [vmem:[#allocation11 + $0x44] sm:$0xf]  ;;  %v5588_v1 = vld [vmem:[#allocation11 + $0x48] sm:$0xf0]  ;;  %v266_v5 = vld [vmem:[#allocation5 + $0x30] sm:$0xff]  ;;  %v5643_v9 = vor.u32 %v6951_v63, %v5642_v62 }
  0x77   :  { %542 = vmatmul.bf16.gmra.mxu3 %v279_v39  ;;  %v6955_v39 = vld [vmem:[#allocation11 + $0xd4] sm:$0xf0]  ;;  %v6952_v2 = vld [vmem:[#allocation11 + $0xc4] sm:$0xf]  ;;  %v5652_v3 = vld [vmem:[#allocation11 + $0xc8] sm:$0xf0] }
  0x78   :  { %750 = vmatpush.bf16.msrb.mxu0 %v5435_v54  ;;  %v5659_v45 = vor.u32 %v6955_v39, %v5658_v38  ;;  %v6954_v54 = vld [vmem:[#allocation11 + $0xd4] sm:$0xf]  ;;  %v265_v6 = vld [vmem:[#allocation5 + $0x28] sm:$0xff]  ;;  %v267_v8 = vld [vmem:[#allocation5 + $0x38] sm:$0xff]  ;;  %v5655_v13 = vor.u32 %v6952_v2, %v5652_v3 }
  0x79   :  { %769 = vmatpush.bf16.msrb.mxu1 %v5499_v56  ;;  %787 = vmatpush.bf16.msrb.mxu2 %v5447_v60  ;;  %v5587_v56 = vor.u32 %v6937_v47, %v5586_v46  ;;  %v5599_v60 = vor.u32 %v6938_v52, %v5596_v53  ;;  %v6933_v11 = vld [vmem:[#allocation11 + $0x24] sm:$0xf0]  ;;  %v5634_v14 = vld [vmem:[#allocation11 + $0xa0] sm:$0xf]  ;;  %v6934_v16 = vld [vmem:[#allocation11 + $0x34] sm:$0xf]  ;;  %v551_v21 = vpack.c.bf16 %v267_v8, %v265_v6 }
  0x7a   :  { %806 = vmatpush.bf16.msrb.mxu3 %v5511_v61  ;;  %v5663_v61 = vor.u32 %v6954_v54, %v5660_v55  ;;  %v5580_v18 = vld [vmem:[#allocation11 + $0x38] sm:$0xf0]  ;;  %v5562_v24 = vld [vmem:[#allocation11 + $0x10] sm:$0xf]  ;;  %v6931_v25 = vld [vmem:[#allocation11 + $0x14] sm:$0xf0] }
  0x7b   :  { %v5644_v20 = vld [vmem:[#allocation11 + $0xb8] sm:$0xf0]  ;;  %v5583_v26 = vor.u32 %v6934_v16, %v5580_v18  ;;  %v6947_v29 = vld [vmem:[#allocation11 + $0x94] sm:$0xf0]  ;;  %v6932_v30 = vld [vmem:[#allocation11 + $0x24] sm:$0xf] }
  0x7c   :  { %751 = vmatpush.bf16.msrb.mxu0 %v5427_v4  ;;  %v264_v4 = vld [vmem:[#allocation5 + $0x20] sm:$0xff]  ;;  %v6945_v41 = vld [vmem:[#allocation11 + $0x84] sm:$0xf0]  ;;  %v6930_v42 = vld [vmem:[#allocation11 + $0x14] sm:$0xf] }
  0x7d   :  { %770 = vmatpush.bf16.msrb.mxu1 %v5491_v7  ;;  %788 = vmatpush.bf16.msrb.mxu2 %v5439_v10  ;;  %v5579_v7 = vor.u32 %v6935_v59, %v5578_v58  ;;  %v5570_v10 = vld [vmem:[#allocation11 + $0x20] sm:$0xf]  ;;  %v550_v17 = vpack.c.bf16 %v266_v5, %v264_v4  ;;  %v5564_v43 = vld [vmem:[#allocation11 + $0x18] sm:$0xf0]  ;;  %v6928_v50 = vld [vmem:[#allocation11 + $0x4] sm:$0xf] }
  0x7e   :  { %807 = vmatpush.bf16.msrb.mxu3 %v5503_v12  ;;  %v5591_v12 = vor.u32 %v6936_v0, %v5588_v1  ;;  %v5571_v22 = vor.u32 %v6933_v11, %v5570_v10  ;;  %v5554_v36 = vld [vmem:[#allocation11] sm:$0xf]  ;;  %v5556_v51 = vld [vmem:[#allocation11 + $0x8] sm:$0xf0]  ;;  %v6944_v52 = vld [vmem:[#allocation11 + $0x84] sm:$0xf] }
  0x7f   :  { %752 = vmatmul.bf16.vlgmr.msrb.gmra.mxu0 %v548_v27  ;;  %v5618_v40 = vld [vmem:[#allocation11 + $0x80] sm:$0xf]  ;;  %v5620_v53 = vld [vmem:[#allocation11 + $0x88] sm:$0xf0]  ;;  %v270_v55 = vld [vmem:[#allocation7 + $0x10] sm:$0xff]  ;;  %v5559_v58 = vor.u32 %v6928_v50, %v5556_v51 }
  0x80   :  { %1016 = vmatpush.bf16.msra.mxu0 %v5611_v15  ;;  %771 = vmatmul.bf16.vlgmr.msrb.gmra.mxu1 %v549_v31  ;;  %v6949_v15 = vld [vmem:[#allocation11 + $0xa4] sm:$0xf0]  ;;  %v5619_v47 = vor.u32 %v6945_v41, %v5618_v40  ;;  %v268_v54 = vld [vmem:[#allocation7] sm:$0xff]  ;;  %v5623_v59 = vor.u32 %v6944_v52, %v5620_v53  ;;  %v274_v63 = vld [vmem:[#allocation7 + $0x30] sm:$0xff] }
  0x81   :  { %1035 = vmatpush.bf16.msra.mxu1 %v5675_v19  ;;  %789 = vmatpush.bf16.msrb.mxu2 %v5431_v23  ;;  %v6950_v19 = vld [vmem:[#allocation11 + $0xb4] sm:$0xf]  ;;  %v5635_v23 = vor.u32 %v6949_v15, %v5634_v14  ;;  %v272_v62 = vld [vmem:[#allocation7 + $0x20] sm:$0xff]  ;;  %v273_v0 = vld [vmem:[#allocation7 + $0x28] sm:$0xff] }
  0x82   :  { %808 = vmatpush.bf16.msrb.mxu3 %v5495_v28  ;;  %v5626_v28 = vld [vmem:[#allocation11 + $0x90] sm:$0xf]  ;;  %v822_v1 = vpack.c.bf16 %v274_v63, %v272_v62  ;;  %v275_v2 = vld [vmem:[#allocation7 + $0x38] sm:$0xff] }
  0x83   :  { %v5627_v35 = vor.u32 %v6947_v29, %v5626_v28  ;;  %v823_v3 = vpack.c.bf16 %v275_v2, %v273_v0 }
  0x84   :  { %1017 = vmatpush.bf16.msra.mxu0 %v5603_v32  ;;  %790 = vmatmul.bf16.vlgmr.msrb.gmra.mxu2 %v548_v27  ;;  %v5647_v27 = vor.u32 %v6950_v19, %v5644_v20  ;;  %v6948_v32 = vld [vmem:[#allocation11 + $0xa4] sm:$0xf] }
  0x85   :  { %1036 = vmatpush.bf16.msra.mxu1 %v5667_v33  ;;  %1054 = vmatpush.bf16.msra.mxu2 %v5615_v34  ;;  %v5636_v33 = vld [vmem:[#allocation11 + $0xa8] sm:$0xf0]  ;;  %v5563_v34 = vor.u32 %v6931_v25, %v5562_v24 }
  0x86   :  { %1073 = vmatpush.bf16.msra.mxu3 %v5679_v37  ;;  %v6929_v37 = vld [vmem:[#allocation11 + $0x4] sm:$0xf0]  ;;  %v5639_v39 = vor.u32 %v6948_v32, %v5636_v33 }
  0x87   :  { %809 = vmatmul.bf16.vlgmr.msrb.gmra.mxu3 %v549_v31  ;;  %v5572_v31 = vld [vmem:[#allocation11 + $0x28] sm:$0xf0]  ;;  %v5555_v46 = vor.u32 %v6929_v37, %v5554_v36 }
  0x88   :  { %1018 = vmatpush.bf16.msra.mxu0 %v5595_v44  ;;  %v5575_v38 = vor.u32 %v6932_v30, %v5572_v31  ;;  %v6946_v44 = vld [vmem:[#allocation11 + $0x94] sm:$0xf] }
  0x89   :  { %1037 = vmatpush.bf16.msra.mxu1 %v5659_v45  ;;  %1055 = vmatpush.bf16.msra.mxu2 %v5607_v48  ;;  %v5628_v45 = vld [vmem:[#allocation11 + $0x98] sm:$0xf0]  ;;  %v5567_v48 = vor.u32 %v6930_v42, %v5564_v43 }
  0x8a   :  { %1074 = vmatpush.bf16.msra.mxu3 %v5671_v49  ;;  %v5631_v49 = vor.u32 %v6946_v44, %v5628_v45 }
  0x8c   :  { %1019 = vmatpush.bf16.msra.mxu0 %v5587_v56  ;;  %v269_v56 = vld [vmem:[#allocation7 + $0x8] sm:$0xff] }
  0x8d   :  { %1038 = vmatpush.bf16.msra.mxu1 %v5651_v57  ;;  %1056 = vmatpush.bf16.msra.mxu2 %v5599_v60  ;;  %v271_v57 = vld [vmem:[#allocation7 + $0x18] sm:$0xff]  ;;  %v820_v60 = vpack.c.bf16 %v270_v55, %v268_v54 }
  0x8e   :  { %1075 = vmatpush.bf16.msra.mxu3 %v5663_v61  ;;  %v821_v61 = vpack.c.bf16 %v271_v57, %v269_v56 }
  0x8f   :  { %757 = vmatmul.bf16.gmra.mxu0 %v550_v17 }
  0x90   :  { %1020 = vmatpush.bf16.msra.mxu0 %v5579_v7  ;;  %776 = vmatmul.bf16.gmra.mxu1 %v551_v21 }
  0x91   :  { %1039 = vmatpush.bf16.msra.mxu1 %v5643_v9  ;;  %1057 = vmatpush.bf16.msra.mxu2 %v5591_v12 }
  0x92   :  { %1076 = vmatpush.bf16.msra.mxu3 %v5655_v13 }
  0x94   :  { %1021 = vmatpush.bf16.msra.mxu0 %v5571_v22  ;;  %795 = vmatmul.bf16.gmra.mxu2 %v550_v17 }
  0x95   :  { %1040 = vmatpush.bf16.msra.mxu1 %v5635_v23  ;;  %1058 = vmatpush.bf16.msra.mxu2 %v5583_v26 }
  0x96   :  { %1077 = vmatpush.bf16.msra.mxu3 %v5647_v27 }
  0x97   :  { %814 = vmatmul.bf16.gmra.mxu3 %v551_v21 }
  0x98   :  { %1022 = vmatpush.bf16.msra.mxu0 %v5563_v34 }
  0x99   :  { %1041 = vmatpush.bf16.msra.mxu1 %v5627_v35  ;;  %1059 = vmatpush.bf16.msra.mxu2 %v5575_v38 }
  0x9a   :  { %1078 = vmatpush.bf16.msra.mxu3 %v5639_v39 }
  0x9c   :  { %1023 = vmatpush.bf16.msra.mxu0 %v5555_v46 }
  0x9d   :  { %1042 = vmatpush.bf16.msra.mxu1 %v5619_v47  ;;  %1060 = vmatpush.bf16.msra.mxu2 %v5567_v48 }
  0x9e   :  { %1079 = vmatpush.bf16.msra.mxu3 %v5631_v49 }
  0x9f   :  { %1024 = vmatmul.bf16.vlgmr.msra.gmra.mxu0 %v820_v60 }
  0xa0   :  { %1043 = vmatmul.bf16.vlgmr.msra.gmra.mxu1 %v821_v61 }
  0xa1   :  { %1061 = vmatpush.bf16.msra.mxu2 %v5559_v58 }
  0xa2   :  { %1080 = vmatpush.bf16.msra.mxu3 %v5623_v59 }
  0xa4   :  { %1062 = vmatmul.bf16.vlgmr.msra.gmra.mxu2 %v820_v60 }
  0xa7   :  { %1081 = vmatmul.bf16.vlgmr.msra.gmra.mxu3 %v821_v61 }
  0xaf   :  { %1029 = vmatmul.bf16.gmra.mxu0 %v822_v1 }
  0xb0   :  { %1048 = vmatmul.bf16.gmra.mxu1 %v823_v3 }
  0xb4   :  { %1067 = vmatmul.bf16.gmra.mxu2 %v822_v1 }
  0xb7   :  { %1086 = vmatmul.bf16.gmra.mxu3 %v823_v3 }
  0xdc   :  { %v481_v4 = vpop.f32.mrf.mxu0 }
  0xdd   :  { %v500_v5 = vpop.f32.mrf.mxu1 }
  0xde   :  { %v501_v6 = vadd.f32 %v500_v5, %v481_v4 }
  0xe0   :  { %v1096_v9 = vpack.c.bf16 %v501_v6, %v501_v6 }
  0xe2   :  { %v1110_v14 = vunpack.c.l.b16 %v1096_v9 }
  0xe4   :  { %v483_v7 = vpop.f32.mrf.mxu0 }
  0xe5   :  { %v502_v8 = vpop.f32.mrf.mxu1 }
  0xe6   :  { %v503_v10 = vadd.f32 %v502_v8, %v483_v7 }
  0xe7   :  { %v519_v11 = vpop.f32.mrf.mxu2 }
  0xe8   :  { %v1097_v12 = vpack.c.bf16 %v503_v10, %v503_v10 }
  0xea   :  { %v538_v13 = vpop.f32.mrf.mxu3  ;;  %v1111_v15 = vunpack.c.l.b16 %v1097_v12 }
  0xeb   :  { %v539_v53 = vadd.f32 %v538_v13, %v519_v11 }
  0xec   :  { %v1112_v16 = vpack.c.b16 %v1111_v15, %v1110_v14  ;;  %v486_v17 = vpop.f32.mrf.mxu0 }
  0xed   :  { %v505_v18 = vpop.f32.mrf.mxu1  ;;  %v1734_v60 = vpack.c.bf16 %v539_v53, %v539_v53 }
  0xee   :  { %1284 = vrot.lane.b32.xlu0 %v1112_v16, %s7857_s11  ;;  %v506_v21 = vadd.f32 %v505_v18, %v486_v17 }
  0xef   :  { %v521_v19 = vpop.f32.mrf.mxu2  ;;  %v1748_v4 = vunpack.c.l.b16 %v1734_v60 }
  0xf0   :  { %v1098_v24 = vpack.c.bf16 %v506_v21, %v506_v21 }
  0xf2   :  { %v540_v20 = vpop.f32.mrf.mxu3  ;;  %v1141_v29 = vunpack.c.l.b16 %v1098_v24 }
  0xf3   :  { %v541_v54 = vadd.f32 %v540_v20, %v521_v19 }
  0xf4   :  { %v488_v22 = vpop.f32.mrf.mxu0 }
  0xf5   :  { %v507_v23 = vpop.f32.mrf.mxu1  ;;  %v1735_v61 = vpack.c.bf16 %v541_v54, %v541_v54 }
  0xf6   :  { %v508_v25 = vadd.f32 %v507_v23, %v488_v22 }
  0xf7   :  { %v524_v26 = vpop.f32.mrf.mxu2  ;;  %v1749_v5 = vunpack.c.l.b16 %v1735_v61 }
  0xf8   :  { %v1099_v27 = vpack.c.bf16 %v508_v25, %v508_v25 }
  0xf9   :  { %v8032_v12 = vpack.c.b16 %v1749_v5, %v1748_v4 }
  0xfa   :  { %v543_v28 = vpop.f32.mrf.mxu3  ;;  %v1142_v30 = vunpack.c.l.b16 %v1099_v27 }
  0xfb   :  { %v544_v6 = vadd.f32 %v543_v28, %v524_v26 }
  0xfc   :  { %v8017_v31 = vpack.c.b16 %v1142_v30, %v1141_v29  ;;  %v753_v32 = vpop.f32.mrf.mxu0 }
  0xfd   :  { %v772_v33 = vpop.f32.mrf.mxu1  ;;  %v1736_v13 = vpack.c.bf16 %v544_v6, %v544_v6  ;;  %v1092_v6 = vld [vmem:[%s9068_s3] sm:$0x1] }
  0xfe   :  { %1308 = vrot.lane.b32.xlu2 %v8017_v31, %s7857_s11  ;;  %v773_v36 = vadd.f32 %v772_v33, %v753_v32  ;;  %vm1094_vm1 = vcmp.eq.f32.partialorder %v1092_v6, 0.0 }
  0xff   :  { %v526_v34 = vpop.f32.mrf.mxu2 }
 0x100   :  { %v1100_v39 = vpack.c.bf16 %v773_v36, %v773_v36 }
 0x102   :  { %v545_v35 = vpop.f32.mrf.mxu3  ;;  %v1115_v44 = vunpack.c.l.b16 %v1100_v39 }
 0x103   :  { %v546_v7 = vadd.f32 %v545_v35, %v526_v34 }
 0x104   :  { %v755_v37 = vpop.f32.mrf.mxu0 }
 0x105   :  { %v774_v38 = vpop.f32.mrf.mxu1  ;;  %v1737_v14 = vpack.c.bf16 %v546_v7, %v546_v7 }
 0x106   :  { %v775_v40 = vadd.f32 %v774_v38, %v755_v37  ;;  %1434 = vrot.lane.b32.xlu2 %v1112_v16, %s7858_s16 }
 0x107   :  { %v791_v41 = vpop.f32.mrf.mxu2  ;;  %v1779_v17 = vunpack.c.l.b16 %v1737_v14 }
 0x108   :  { %v1101_v42 = vpack.c.bf16 %v775_v40, %v775_v40 }
 0x10a   :  { %v810_v43 = vpop.f32.mrf.mxu3  ;;  %v1116_v45 = vunpack.c.l.b16 %v1101_v42 }
 0x10b   :  { %v811_v49 = vadd.f32 %v810_v43, %v791_v41 }
 0x10c   :  { %v1117_v46 = vpack.c.b16 %v1116_v45, %v1115_v44  ;;  %v758_v47 = vpop.f32.mrf.mxu0 }
 0x10d   :  { %v777_v48 = vpop.f32.mrf.mxu1  ;;  %v1738_v57 = vpack.c.bf16 %v811_v49, %v811_v49 }
 0x10e   :  { %1286 = vrot.lane.b32.xlu0 %v1117_v46, %s7857_s11  ;;  %1458 = vrot.lane.b32.xlu2 %v8017_v31, %s7858_s16  ;;  %v1123_v50 = vsel %vm1118_vm0, %v1117_v46, 0  ;;  %v778_v56 = vadd.f32 %v777_v48, %v758_v47 }
 0x10f   :  { %v793_v51 = vpop.f32.mrf.mxu2  ;;  %1132 = vmatpush.bf16.xpose.msrb.mxu0 %v1123_v50  ;;  %v1753_v0 = vunpack.c.l.b16 %v1738_v57 }
 0x110   :  { %v1102_v63 = vpack.c.bf16 %v778_v56, %v778_v56 }
 0x112   :  { %v812_v52 = vpop.f32.mrf.mxu3  ;;  %v1146_v8 = vunpack.c.l.b16 %v1102_v63 }
 0x113   :  { %v813_v55 = vadd.f32 %v812_v52, %v793_v51 }
 0x114   :  { %v760_v59 = vpop.f32.mrf.mxu0 }
 0x115   :  { %v1739_v58 = vpack.c.bf16 %v813_v55, %v813_v55  ;;  %v779_v62 = vpop.f32.mrf.mxu1 }
 0x116   :  { %v780_v1 = vadd.f32 %v779_v62, %v760_v59  ;;  %1584 = vrot.lane.b32.xlu0 %v1112_v16, %s7855_s9  ;;  %5680 = vmatmul.msk.bf16.vlgmr.msrb.gmra.mxu0 %vm1118_vm0, %v1112_v16  ;;  %v1778_v16 = vunpack.c.l.b16 %v1736_v13 }
 0x117   :  { %v1754_v2 = vunpack.c.l.b16 %v1739_v58  ;;  %1608 = vrot.lane.b32.xlu2 %v8017_v31, %s7855_s9  ;;  %v796_v19 = vpop.f32.mrf.mxu2 }
 0x118   :  { %v1103_v3 = vpack.c.bf16 %v780_v1, %v780_v1  ;;  %v8040_v18 = vpack.c.b16 %v1779_v17, %v1778_v16 }
 0x119   :  { %v8030_v10 = vpack.c.b16 %v1754_v2, %v1753_v0 }
 0x11a   :  { %v1147_v9 = vunpack.c.l.b16 %v1103_v3  ;;  %v815_v20 = vpop.f32.mrf.mxu3 }
 0x11b   :  { %v816_v21 = vadd.f32 %v815_v20, %v796_v19 }
 0x11c   :  { %v1148_v11 = vpack.c.b16 %v1147_v9, %v1146_v8  ;;  %v1025_v26 = vpop.f32.mrf.mxu0  ;;  %v7859_v9 = vmov 0  }
 0x11d   :  { %v1740_v22 = vpack.c.bf16 %v816_v21, %v816_v21  ;;  %v1044_v27 = vpop.f32.mrf.mxu1 }
 0x11e   :  { %1916 = vrot.lane.b32.xlu0 %v8030_v10, %s7857_s11  ;;  %1310 = vrot.lane.b32.xlu1 %v1148_v11, %s7857_s11  ;;  %v1153_v15 = vsel %vm1118_vm0, %v1148_v11, 0  ;;  %v1045_v30 = vadd.f32 %v1044_v27, %v1025_v26 }
 0x11f   :  { %2064 = vrot.lane.b32.xlu2 %v8032_v12, %s7858_s16  ;;  %1162 = vmatpush.bf16.xpose.msrb.mxu1 %v1153_v15  ;;  %v798_v23 = vpop.f32.mrf.mxu2  ;;  %v1783_v28 = vunpack.c.l.b16 %v1740_v22 }
 0x122   :  { %v817_v24 = vpop.f32.mrf.mxu3 }
 0x123   :  { %v818_v25 = vadd.f32 %v817_v24, %v798_v23  ;;  %v1093_v23 = vld [vmem:[%s9068_s3 + $0x1] sm:$0x1] }
 0x124   :  { %v1027_v34 = vpop.f32.mrf.mxu0  ;;  %vm1095_vm4 = vcmp.eq.f32.partialorder %v1093_v23, 0.0 }
 0x125   :  { %v1741_v29 = vpack.c.bf16 %v818_v25, %v818_v25  ;;  %v1046_v35 = vpop.f32.mrf.mxu1 }
 0x126   :  { %2066 = vrot.lane.b32.xlu0 %v8030_v10, %s7858_s16  ;;  %1436 = vrot.lane.b32.xlu1 %v1117_v46, %s7858_s16  ;;  %v1047_v36 = vadd.f32 %v1046_v35, %v1027_v34 }
 0x127   :  { %2088 = vrot.lane.b32.xlu2 %v8040_v18, %s7858_s16  ;;  %5681 = vmatmul.msk.bf16.vlgmr.msrb.gmra.mxu1 %vm1118_vm0, %v8017_v31  ;;  %v1784_v32 = vunpack.c.l.b16 %v1741_v29  ;;  %v1104_v31 = vpack.c.bf16 %v1045_v30, %v1045_v30  ;;  %v1063_v48 = vpop.f32.mrf.mxu2  ;;  %v1170_v29 = vsel %vm1095_vm4, 1, %v7859_v9 }
 0x128   :  { %v1105_v38 = vpack.c.bf16 %v1047_v36, %v1047_v36 }
 0x129   :  { %v8053_v33 = vpack.c.b16 %v1784_v32, %v1783_v28  ;;  %v1235_v37 = vunpack.c.l.b16 %v1104_v31  ;;  %v1172_v31 = vperm.slane %v1170_v29, 0 }
 0x12a   :  { %v1236_v39 = vunpack.c.l.b16 %v1105_v38  ;;  %v1082_v49 = vpop.f32.mrf.mxu3 }
 0x12b   :  { %v1083_v56 = vadd.f32 %v1082_v49, %v1063_v48  ;;  %vm8118_vm5 = vcmp.eq.s32.totalorder %v1172_v31, 1 }
 0x12c   :  { %v1237_v40 = vpack.c.b16 %v1236_v39, %v1235_v37  ;;  %v1030_v42 = vpop.f32.mrf.mxu0  ;;  %v1760_v39 = vsel %vm1118_vm0, %v8030_v10, 0 }
 0x12d   :  { %v1049_v41 = vpop.f32.mrf.mxu1  ;;  %v1742_v58 = vpack.c.bf16 %v1083_v56, %v1083_v56 }
 0x12e   :  { %1460 = vrot.lane.b32.xlu0 %v1148_v11, %s7858_s16  ;;  %1586 = vrot.lane.b32.xlu1 %v1117_v46, %s7855_s9  ;;  %v1050_v43 = vadd.f32 %v1049_v41, %v1030_v42 }
 0x12f   :  { %2238 = vrot.lane.b32.xlu2 %v8040_v18, %s7855_s9  ;;  %1249 = vmatpush.bf16.msrb.mxu2 %v1237_v40  ;;  %v1065_v54 = vpop.f32.mrf.mxu2  ;;  %v1865_v61 = vunpack.c.l.b16 %v1742_v58 }
 0x130   :  { %v1106_v44 = vpack.c.bf16 %v1050_v43, %v1050_v43 }
 0x132   :  { %v1263_v50 = vunpack.c.l.b16 %v1106_v44  ;;  %v1084_v55 = vpop.f32.mrf.mxu3 }
 0x133   :  { %v1085_v57 = vadd.f32 %v1084_v55, %v1065_v54 }
 0x134   :  { %v1032_v45 = vpop.f32.mrf.mxu0 }
 0x135   :  { %v1051_v46 = vpop.f32.mrf.mxu1  ;;  %v1743_v59 = vpack.c.bf16 %v1085_v57, %v1085_v57 }
 0x136   :  { %2214 = vrot.lane.b32.xlu0 %v8032_v12, %s7855_s9  ;;  %1914 = vrot.lane.b32.xlu1 %v8032_v12, %s7857_s11  ;;  %v1052_v47 = vadd.f32 %v1051_v46, %v1032_v45 }
 0x137   :  { %1940 = vrot.lane.b32.xlu2 %v8053_v33, %s7857_s11  ;;  %v1866_v62 = vunpack.c.l.b16 %v1743_v59 }
 0x138   :  { %v1107_v51 = vpack.c.bf16 %v1052_v47, %v1052_v47 }
 0x139   :  { %v8075_v63 = vpack.c.b16 %v1866_v62, %v1865_v61 }
 0x13a   :  { %v1264_v52 = vunpack.c.l.b16 %v1107_v51 }
 0x13c   :  { %v1265_v53 = vpack.c.b16 %v1264_v52, %v1263_v50 }
 0x13e   :  { %1610 = vrot.lane.b32.xlu1 %v1148_v11, %s7855_s9  ;;  %2090 = vrot.lane.b32.xlu0 %v8053_v33, %s7858_s16  ;;  %v1169_v11 = vsel %vm1094_vm1, 1, %v7859_v9 }
 0x13f   :  { %1414 = vrot.lane.b32.xlu2 %v1265_v53, %s7857_s11  ;;  %1277 = vmatpush.bf16.msrb.mxu3 %v1265_v53  ;;  %v1171_v13 = vperm.slane %v1169_v11, 0 }
 0x141   :  { %vm8092_vm2 = vcmp.eq.s32.totalorder %v1171_v13, 1 }
 0x146   :  { %1938 = vrot.lane.b32.xlu1 %v8040_v18, %s7857_s11  ;;  %1389 = vrot.lane.b32.xlu0 %v1237_v40, %s7857_s11 }
 0x147   :  { %1714 = vrot.lane.b32.xlu2 %v1265_v53, %s7855_s9 }
 0x14e   :  { %2216 = vrot.lane.b32.xlu1 %v8030_v10, %s7855_s9  ;;  %1689 = vrot.lane.b32.xlu0 %v1237_v40, %s7855_s9 }
 0x156   :  { %2240 = vrot.lane.b32.xlu1 %v8053_v33, %s7855_s9 }
 0x158   :  { %v1309_v60 = vpop.permute.xlu2 %1308 }
 0x15e   :  { %1539 = vrot.lane.b32.xlu1 %v1237_v40, %s7858_s16 }
 0x160   :  { %v1435_v0 = vpop.permute.xlu2 %1434  ;;  %v1285_v2 = vpop.permute.xlu0 %1284 }
 0x166   :  { %2019 = vrot.lane.b32.xlu1 %v8075_v63, %s7857_s11 }
 0x168   :  { %v1459_v1 = vpop.permute.xlu2 %1458 }
 0x16e   :  { %1564 = vrot.lane.b32.xlu1 %v1265_v53, %s7858_s16  ;;  %v1790_v53 = vsel %vm1118_vm0, %v8053_v33, 0 }
 0x171   :  { %v8080_v3 = vpop.permute.xlu2 %1608 }
 0x179   :  { %v8086_v7 = vpop.permute.xlu2 %2064 }
 0x180   :  { %v1287_v4 = vpop.permute.xlu0 %1286 }
 0x181   :  { %v1292_v5 = vsel %vm1118_vm0, %v1287_v4, 0  ;;  %v8089_v14 = vpop.permute.xlu2 %2088 }
 0x182   :  { %1301 = vmatpush.bf16.xpose.msra.mxu0 %v1292_v5 }
 0x188   :  { %v1585_v8 = vpop.permute.xlu0 %1584 }
 0x189   :  { %5684 = vmatmul.msk.bf16.vlgmr.msra.gmra.mxu0 %vm1118_vm0, %v1285_v2  ;;  %v8107_v27 = vpop.permute.xlu2 %2238 }
 0x190   :  { %v1917_v15 = vpop.permute.xlu0 %1916  ;;  %v1311_v16 = vpop.permute.xlu1 %1310 }
 0x191   :  { %v1316_v17 = vsel %vm1118_vm0, %v1311_v16, 0  ;;  %v1941_v40 = vpop.permute.xlu2 %1940  ;;  %v1922_v51 = vsel %vm1118_vm0, %v1917_v15, 0 }
 0x192   :  { %1325 = vmatpush.bf16.xpose.msra.mxu1 %v1316_v17  ;;  %v1946_v54 = vsel %vm1118_vm0, %v1941_v40, 0 }
 0x193   :  { %v1134_v20 = vpop.f32.mrf.mxu0 }
 0x194   :  { %v8098_v21 = vsel %vm8092_vm2, -1e+20, %v1134_v20 }
 0x195   :  { %v1180_v22 = vsel %vm1179_vm3, %v8098_v21, -inf }
 0x196   :  { %1181 = vmax.xlane.f32.xlu0 %v1180_v22 }
 0x198   :  { %v2067_v24 = vpop.permute.xlu0 %2066  ;;  %v1437_v25 = vpop.permute.xlu1 %1436 }
 0x199   :  { %v1442_v26 = vsel %vm1118_vm0, %v1437_v25, 0  ;;  %5685 = vmatmul.msk.bf16.vlgmr.msra.gmra.mxu1 %vm1118_vm0, %v1309_v60  ;;  %v1415_v46 = vpop.permute.xlu2 %1414  ;;  %v2072_v56 = vsel %vm1118_vm0, %v2067_v24, 0 }
 0x19a   :  { %1451 = vmatpush.bf16.xpose.msrb.mxu0 %v1442_v26  ;;  %1427 = vmatpush.bf16.msra.mxu3 %v1415_v46 }
 0x19b   :  { %v1136_v28 = vpop.f32.mrf.mxu0 }
 0x19c   :  { %v8111_v30 = vsel %vm8092_vm2, -1e+20, %v1136_v28 }
 0x19d   :  { %v1183_v32 = vsel %vm1179_vm3, %v8111_v30, -inf }
 0x19e   :  { %1184 = vmax.xlane.f32.xlu1 %v1183_v32 }
 0x1a0   :  { %v1461_v34 = vpop.permute.xlu0 %1460  ;;  %v1587_v35 = vpop.permute.xlu1 %1586 }
 0x1a1   :  { %v1466_v36 = vsel %vm1118_vm0, %v1461_v34, 0  ;;  %v1592_v37 = vsel %vm1118_vm0, %v1587_v35, 0  ;;  %5688 = vmatmul.msk.bf16.vlgmr.msrb.gmra.mxu0 %vm1118_vm0, %v1435_v0  ;;  %v8183_v13 = vpop.permute.xlu2 %1714 }
 0x1a2   :  { %1475 = vmatpush.bf16.xpose.msrb.mxu1 %v1466_v36  ;;  %1601 = vmatpush.bf16.xpose.msra.mxu0 %v1592_v37 }
 0x1a4   :  { %v1164_v41 = vpop.f32.mrf.mxu1 }
 0x1a5   :  { %v8126_v42 = vsel %vm8118_vm5, -1e+20, %v1164_v41 }
 0x1a6   :  { %v1186_v43 = vsel %vm1179_vm3, %v8126_v42, -inf }
 0x1a7   :  { %1187 = vmax.xlane.f32.xlu2 %v1186_v43 }
 0x1a8   :  { %v2215_v44 = vpop.permute.xlu0 %2214  ;;  %v1915_v45 = vpop.permute.xlu1 %1914 }
 0x1a9   :  { %5689 = vmatmul.msk.bf16.vlgmr.msrb.gmra.mxu1 %vm1118_vm0, %v1459_v1 }
 0x1aa   :  { %1769 = vmatpush.bf16.xpose.msrb.mxu0 %v1760_v39 }
 0x1ac   :  { %v1166_v47 = vpop.f32.mrf.mxu1 }
 0x1ad   :  { %v8133_v10 = vsel %vm8118_vm5, -1e+20, %v1166_v47 }
 0x1ae   :  { %v1189_v48 = vsel %vm1179_vm3, %v8133_v10, -inf }
 0x1af   :  { %1190 = vmax.xlane.f32.xlu2 %v1189_v48 }
 0x1b0   :  { %v1611_v49 = vpop.permute.xlu1 %1610  ;;  %v2091_v50 = vpop.permute.xlu0 %2090 }
 0x1b1   :  { %v1616_v52 = vsel %vm1118_vm0, %v1611_v49, 0  ;;  %5692 = vmatmul.msk.bf16.vlgmr.msra.gmra.mxu0 %vm1118_vm0, %v1585_v8  ;;  %v2096_v58 = vsel %vm1118_vm0, %v2091_v50, 0 }
 0x1b2   :  { %1931 = vmatpush.bf16.xpose.msra.mxu0 %v1922_v51  ;;  %1625 = vmatpush.bf16.xpose.msra.mxu1 %v1616_v52 }
 0x1b8   :  { %v1390_v55 = vpop.permute.xlu0 %1389  ;;  %v1939_v57 = vpop.permute.xlu1 %1938 }
 0x1b9   :  { %5693 = vmatmul.msk.bf16.vlgmr.msra.gmra.mxu1 %vm1118_vm0, %v8080_v3  ;;  %1402 = vmatpush.bf16.msra.mxu2 %v1390_v55 }
 0x1ba   :  { %1799 = vmatpush.bf16.xpose.msrb.mxu1 %v1790_v53 }
 0x1c0   :  { %v2217_v33 = vpop.permute.xlu1 %2216  ;;  %v8166_v62 = vpop.permute.xlu0 %1689 }
 0x1c1   :  { %5696 = vmatmul.msk.bf16.vlgmr.msrb.gmra.mxu0 %vm1118_vm0, %v8032_v12  ;;  %v2222_v59 = vsel %vm1118_vm0, %v2217_v33, 0 }
 0x1c2   :  { %1955 = vmatpush.bf16.xpose.msra.mxu1 %v1946_v54  ;;  %2081 = vmatpush.bf16.xpose.msrb.mxu0 %v2072_v56 }
 0x1c8   :  { %v2241_v60 = vpop.permute.xlu1 %2240 }
 0x1c9   :  { %5697 = vmatmul.msk.bf16.vlgmr.msrb.gmra.mxu1 %vm1118_vm0, %v8040_v18  ;;  %v2246_v61 = vsel %vm1118_vm0, %v2241_v60, 0 }
 0x1ca   :  { %2105 = vmatpush.bf16.xpose.msrb.mxu1 %v2096_v58 }
 0x1d0   :  { %v8160_v12 = vpop.permute.xlu1 %1539 }
 0x1d1   :  { %5700 = vmatmul.msk.bf16.vlgmr.msra.gmra.mxu0 %vm1118_vm0, %v1915_v45 }
 0x1d2   :  { %2231 = vmatpush.bf16.xpose.msra.mxu0 %v2222_v59 }
 0x1d8   :  { %v8164_v18 = vpop.permute.xlu1 %2019 }
 0x1d9   :  { %5701 = vmatmul.msk.bf16.vlgmr.msra.gmra.mxu1 %vm1118_vm0, %v1939_v57 }
 0x1da   :  { %2255 = vmatpush.bf16.xpose.msra.mxu1 %v2246_v61 }
 0x1e0   :  { %v8174_v3 = vpop.permute.xlu1 %1564 }
 0x1e1   :  { %5704 = vmatmul.msk.bf16.vlgmr.msrb.gmra.mxu0 %vm1118_vm0, %v8086_v7 }
 0x1e9   :  { %5705 = vmatmul.msk.bf16.vlgmr.msrb.gmra.mxu1 %vm1118_vm0, %v8089_v14 }
 0x1f1   :  { %5708 = vmatmul.msk.bf16.vlgmr.msra.gmra.mxu0 %vm1118_vm0, %v2215_v44 }
 0x1f9   :  { %5709 = vmatmul.msk.bf16.vlgmr.msra.gmra.mxu1 %vm1118_vm0, %v8107_v27 }
 0x206   :  { %v1303_v0 = vpop.f32.mrf.mxu0 }
 0x207   :  { %v8170_v1 = vsel %vm8092_vm2, -1e+20, %v1303_v0 }
 0x208   :  { %v1336_v2 = vsel %vm1179_vm3, %v8170_v1, -inf }
 0x209   :  { %1337 = vmax.xlane.f32.xlu0 %v1336_v2  ;;  %v1182_v4 = vpop.xlane.xlu0 %1181 }
 0x20a   :  { %v1192_v5 = vsub.f32 %v8098_v21, %v1182_v4 }
 0x20c   :  { %v1196_v6 = vmul.f32 1.442695, %v1192_v5 }
 0x20e   :  { %v1305_v7 = vpop.f32.mrf.mxu0  ;;  %7332 = vpow2.f32 %v1196_v6 }
 0x20f   :  { %v8179_v8 = vsel %vm8092_vm2, -1e+20, %v1305_v7 }
 0x210   :  { %v1339_v9 = vsel %vm1179_vm3, %v8179_v8, -inf }
 0x211   :  { %1340 = vmax.xlane.f32.xlu1 %v1339_v9  ;;  %v1185_v11 = vpop.xlane.xlu1 %1184 }
 0x212   :  { %v1193_v14 = vsub.f32 %v8111_v30, %v1185_v11 }
 0x214   :  { %v1198_v15 = vmul.f32 1.442695, %v1193_v14  ;;  %v8186_v16 = vpop.eup %7332 }
 0x215   :  { %v1204_v21 = vsel %vm1179_vm3, %v8186_v16, 0.0 }
 0x216   :  { %v1327_v17 = vpop.f32.mrf.mxu1  ;;  %7334 = vpow2.f32 %v1198_v15 }
 0x217   :  { %v8190_v20 = vsel %vm8118_vm5, -1e+20, %v1327_v17 }
 0x218   :  { %v1342_v22 = vsel %vm1179_vm3, %v8190_v20, -inf }
 0x219   :  { %1205 = vadd.xlane.f32.xlu1 %v1204_v21  ;;  %1343 = vmax.xlane.f32.xlu2 %v1342_v22 }
 0x21a   :  { %v1188_v23 = vpop.xlane.xlu2 %1187 }
 0x21b   :  { %v1194_v24 = vsub.f32 %v8126_v42, %v1188_v23 }
 0x21c   :  { %v8197_v26 = vpop.eup %7334 }
 0x21d   :  { %v1200_v25 = vmul.f32 1.442695, %v1194_v24  ;;  %v1207_v34 = vsel %vm1179_vm3, %v8197_v26, 0.0 }
 0x21e   :  { %v1329_v27 = vpop.f32.mrf.mxu1  ;;  %v1453_v28 = vpop.f32.mrf.mxu0 }
 0x21f   :  { %7336 = vpow2.f32 %v1200_v25  ;;  %v8201_v29 = vsel %vm8092_vm2, -1e+20, %v1453_v28  ;;  %v8205_v30 = vsel %vm8118_vm5, -1e+20, %v1329_v27 }
 0x220   :  { %v1486_v32 = vsel %vm1179_vm3, %v8201_v29, -inf  ;;  %v1345_v31 = vsel %vm1179_vm3, %v8205_v30, -inf }
 0x221   :  { %1487 = vmax.xlane.f32.xlu1 %v1486_v32  ;;  %1346 = vmax.xlane.f32.xlu0 %v1345_v31 }
 0x222   :  { %1208 = vadd.xlane.f32.xlu2 %v1207_v34  ;;  %v1191_v36 = vpop.xlane.xlu2 %1190 }
 0x223   :  { %v1195_v42 = vsub.f32 %v8133_v10, %v1191_v36 }
 0x225   :  { %v8213_v35 = vpop.eup %7336  ;;  %v1202_v46 = vmul.f32 1.442695, %v1195_v42 }
 0x226   :  { %v1455_v37 = vpop.f32.mrf.mxu0  ;;  %v1477_v39 = vpop.f32.mrf.mxu1  ;;  %v1210_v43 = vsel %vm1179_vm3, %v8213_v35, 0.0 }
 0x227   :  { %v8217_v40 = vsel %vm8118_vm5, -1e+20, %v1477_v39  ;;  %v8221_v41 = vsel %vm8092_vm2, -1e+20, %v1455_v37  ;;  %7338 = vpow2.f32 %v1202_v46 }
 0x228   :  { %v1492_v44 = vsel %vm1179_vm3, %v8217_v40, -inf  ;;  %v1489_v45 = vsel %vm1179_vm3, %v8221_v41, -inf }
 0x229   :  { %1211 = vadd.xlane.f32.xlu1 %v1210_v43  ;;  %1493 = vmax.xlane.f32.xlu0 %v1492_v44 }
 0x22a   :  { %1490 = vmax.xlane.f32.xlu2 %v1489_v45 }
 0x22d   :  { %v8242_v52 = vpop.eup %7338 }
 0x22e   :  { %v1479_v47 = vpop.f32.mrf.mxu1  ;;  %v1603_v48 = vpop.f32.mrf.mxu0  ;;  %v1213_v57 = vsel %vm1179_vm3, %v8242_v52, 0.0 }
 0x22f   :  { %v8232_v49 = vsel %vm8092_vm2, -1e+20, %v1603_v48  ;;  %v8236_v10 = vsel %vm8118_vm5, -1e+20, %v1479_v47 }
 0x230   :  { %v1495_v50 = vsel %vm1179_vm3, %v8236_v10, -inf  ;;  %v1636_v51 = vsel %vm1179_vm3, %v8232_v49, -inf }
 0x231   :  { %1496 = vmax.xlane.f32.xlu1 %v1495_v50 }
 0x232   :  { %1637 = vmax.xlane.f32.xlu2 %v1636_v51 }
 0x236   :  { %v1605_v53 = vpop.f32.mrf.mxu0  ;;  %v1627_v54 = vpop.f32.mrf.mxu1 }
 0x237   :  { %v8246_v55 = vsel %vm8092_vm2, -1e+20, %v1605_v53  ;;  %v8254_v58 = vsel %vm8118_vm5, -1e+20, %v1627_v54 }
 0x238   :  { %v1639_v56 = vsel %vm1179_vm3, %v8246_v55, -inf  ;;  %v1642_v2 = vsel %vm1179_vm3, %v8254_v58, -inf }
 0x239   :  { %1640 = vmax.xlane.f32.xlu0 %v1639_v56 }
 0x23a   :  { %1214 = vadd.xlane.f32.xlu2 %v1213_v57 }
 0x23e   :  { %v1629_v33 = vpop.f32.mrf.mxu1  ;;  %v1771_v59 = vpop.f32.mrf.mxu0 }
 0x23f   :  { %v8258_v60 = vsel %vm8092_vm2, -1e+20, %v1771_v59  ;;  %v8262_v61 = vsel %vm8118_vm5, -1e+20, %v1629_v33 }
 0x240   :  { %v1645_v0 = vsel %vm1179_vm3, %v8262_v61, -inf  ;;  %v1810_v4 = vsel %vm1179_vm3, %v8258_v60, -inf }
 0x241   :  { %1646 = vmax.xlane.f32.xlu1 %v1645_v0  ;;  %1643 = vmax.xlane.f32.xlu0 %v1642_v2 }
 0x242   :  { %1811 = vmax.xlane.f32.xlu2 %v1810_v4 }
 0x246   :  { %v1773_v5 = vpop.f32.mrf.mxu0  ;;  %v1801_v6 = vpop.f32.mrf.mxu1 }
 0x247   :  { %v8272_v7 = vsel %vm8118_vm5, -1e+20, %v1801_v6  ;;  %v8276_v9 = vsel %vm8092_vm2, -1e+20, %v1773_v5 }
 0x248   :  { %v1813_v11 = vsel %vm1179_vm3, %v8276_v9, -inf  ;;  %v1816_v14 = vsel %vm1179_vm3, %v8272_v7, -inf }
 0x249   :  { %1814 = vmax.xlane.f32.xlu0 %v1813_v11 }
 0x24a   :  { %1817 = vmax.xlane.f32.xlu2 %v1816_v14 }
 0x24e   :  { %v1803_v15 = vpop.f32.mrf.mxu1  ;;  %v1933_v17 = vpop.f32.mrf.mxu0 }
 0x24f   :  { %v8284_v21 = vsel %vm8092_vm2, -1e+20, %v1933_v17  ;;  %v8288_v22 = vsel %vm8118_vm5, -1e+20, %v1803_v15 }
 0x250   :  { %v1966_v23 = vsel %vm1179_vm3, %v8284_v21, -inf  ;;  %v1819_v24 = vsel %vm1179_vm3, %v8288_v22, -inf }
 0x251   :  { %1967 = vmax.xlane.f32.xlu1 %v1966_v23  ;;  %1820 = vmax.xlane.f32.xlu0 %v1819_v24 }
 0x256   :  { %v1935_v25 = vpop.f32.mrf.mxu0  ;;  %v1957_v27 = vpop.f32.mrf.mxu1 }
 0x257   :  { %v8296_v28 = vsel %vm8118_vm5, -1e+20, %v1957_v27  ;;  %v8300_v32 = vsel %vm8092_vm2, -1e+20, %v1935_v25 }
 0x258   :  { %v1972_v31 = vsel %vm1179_vm3, %v8296_v28, -inf  ;;  %v1969_v34 = vsel %vm1179_vm3, %v8300_v32, -inf }
 0x259   :  { %1973 = vmax.xlane.f32.xlu1 %v1972_v31  ;;  %1970 = vmax.xlane.f32.xlu2 %v1969_v34 }
 0x25e   :  { %v1959_v36 = vpop.f32.mrf.mxu1  ;;  %v2083_v37 = vpop.f32.mrf.mxu0 }
 0x25f   :  { %v8308_v39 = vsel %vm8092_vm2, -1e+20, %v2083_v37  ;;  %v8312_v42 = vsel %vm8118_vm5, -1e+20, %v1959_v36 }
 0x260   :  { %v1975_v43 = vsel %vm1179_vm3, %v8312_v42, -inf  ;;  %v2116_v44 = vsel %vm1179_vm3, %v8308_v39, -inf }
 0x261   :  { %1976 = vmax.xlane.f32.xlu0 %v1975_v43  ;;  %2117 = vmax.xlane.f32.xlu2 %v2116_v44 }
 0x266   :  { %v2085_v45 = vpop.f32.mrf.mxu0  ;;  %v2107_v46 = vpop.f32.mrf.mxu1 }
 0x267   :  { %v8320_v47 = vsel %vm8118_vm5, -1e+20, %v2107_v46  ;;  %v8324_v48 = vsel %vm8092_vm2, -1e+20, %v2085_v45 }
 0x268   :  { %v2119_v50 = vsel %vm1179_vm3, %v8324_v48, -inf  ;;  %v2122_v51 = vsel %vm1179_vm3, %v8320_v47, -inf }
 0x269   :  { %2120 = vmax.xlane.f32.xlu1 %v2119_v50  ;;  %2123 = vmax.xlane.f32.xlu0 %v2122_v51 }
 0x26e   :  { %v2109_v53 = vpop.f32.mrf.mxu1  ;;  %v2233_v54 = vpop.f32.mrf.mxu0 }
 0x26f   :  { %v8332_v56 = vsel %vm8092_vm2, -1e+20, %v2233_v54  ;;  %v8338_v33 = vsel %vm8118_vm5, -1e+20, %v2109_v53 }
 0x270   :  { %v2266_v57 = vsel %vm1179_vm3, %v8332_v56, -inf  ;;  %v2125_v6 = vsel %vm1179_vm3, %v8338_v33, -inf }
 0x271   :  { %2267 = vmax.xlane.f32.xlu0 %v2266_v57 }
 0x276   :  { %v2235_v59 = vpop.f32.mrf.mxu0  ;;  %v2257_v0 = vpop.f32.mrf.mxu1 }
 0x277   :  { %v8342_v2 = vsel %vm8118_vm5, -1e+20, %v2257_v0  ;;  %v8346_v4 = vsel %vm8092_vm2, -1e+20, %v2235_v59 }
 0x278   :  { %v2272_v5 = vsel %vm1179_vm3, %v8342_v2, -inf  ;;  %v2269_v11 = vsel %vm1179_vm3, %v8346_v4, -inf }
 0x279   :  { %2273 = vmax.xlane.f32.xlu1 %v2272_v5  ;;  %2126 = vmax.xlane.f32.xlu0 %v2125_v6 }
 0x27a   :  { %2270 = vmax.xlane.f32.xlu2 %v2269_v11 }
 0x27c   :  { %v1338_v14 = vpop.xlane.xlu0 %1337 }
 0x27d   :  { %v1348_v15 = vsub.f32 %v8170_v1, %v1338_v14 }
 0x27e   :  { %v2259_v17 = vpop.f32.mrf.mxu1 }
 0x27f   :  { %v1352_v23 = vmul.f32 1.442695, %v1348_v15  ;;  %v8357_v19 = vsel %vm8118_vm5, -1e+20, %v2259_v17 }
 0x280   :  { %v2275_v24 = vsel %vm1179_vm3, %v8357_v19, -inf }
 0x281   :  { %7340 = vpow2.f32 %v1352_v23 }
 0x282   :  { %2276 = vmax.xlane.f32.xlu2 %v2275_v24 }
 0x284   :  { %v1341_v25 = vpop.xlane.xlu1 %1340 }
 0x285   :  { %v1349_v27 = vsub.f32 %v8179_v8, %v1341_v25 }
 0x287   :  { %v8362_v31 = vpop.eup %7340  ;;  %v1354_v34 = vmul.f32 1.442695, %v1349_v27 }
 0x288   :  { %v1360_v1 = vsel %vm1179_vm3, %v8362_v31, 0.0 }
 0x289   :  { %7342 = vpow2.f32 %v1354_v34  ;;  %1361 = vadd.xlane.f32.xlu0 %v1360_v1 }
 0x28c   :  { %v1206_v36 = vpop.xlane.xlu1 %1205  ;;  %v1344_v38 = vpop.xlane.xlu2 %1343 }
 0x28d   :  { %v1350_v37 = vsub.f32 %v8190_v20, %v1344_v38  ;;  %7344 = vrcp.f32 %v1206_v36 }
 0x28f   :  { %v8367_v43 = vpop.eup %7342  ;;  %v1356_v44 = vmul.f32 1.442695, %v1350_v37 }
 0x290   :  { %v1363_v45 = vsel %vm1179_vm3, %v8367_v43, 0.0 }
 0x291   :  { %7346 = vpow2.f32 %v1356_v44  ;;  %1364 = vadd.xlane.f32.xlu1 %v1363_v45 }
 0x293   :  { %v7345_v54 = vpop.eup %7344 }
 0x294   :  { %v1488_v8 = vpop.xlane.xlu1 %1487  ;;  %v1347_v46 = vpop.xlane.xlu0 %1346  ;;  %v1220_v5 = vmul.f32 %v7345_v54, %v8186_v16 }
 0x295   :  { %v1498_v50 = vsub.f32 %v8201_v29, %v1488_v8  ;;  %v1351_v51 = vsub.f32 %v8205_v30, %v1347_v46  ;;  %v1209_v53 = vpop.xlane.xlu2 %1208 }
 0x296   :  { %7348 = vrcp.f32 %v1209_v53  ;;  %v1224_v29 = vpack.c.bf16 %v1220_v5, %v1220_v5  ;;  %v1068_v53 = vpop.f32.mrf.mxu2 }
 0x297   :  { %v8373_v57 = vpop.eup %7346  ;;  %v1502_v20 = vmul.f32 1.442695, %v1498_v50  ;;  %v1358_v59 = vmul.f32 1.442695, %v1351_v51 }
 0x298   :  { %v1366_v0 = vsel %vm1179_vm3, %v8373_v57, 0.0  ;;  %v1230_v1 = vunpack.c.l.b16 %v1224_v29 }
 0x299   :  { %7350 = vpow2.f32 %v1502_v20  ;;  %1367 = vadd.xlane.f32.xlu1 %v1366_v0 }
 0x29a   :  { %7352 = vpow2.f32 %v1358_v59  ;;  %v1087_v59 = vpop.f32.mrf.mxu3 }
 0x29c   :  { %v7349_v6 = vpop.eup %7348  ;;  %v1212_v11 = vpop.xlane.xlu1 %1211 }
 0x29d   :  { %v1221_v30 = vmul.f32 %v7349_v6, %v8197_v26  ;;  %v1494_v14 = vpop.xlane.xlu0 %1493  ;;  %v1491_v15 = vpop.xlane.xlu2 %1490 }
 0x29e   :  { %v1499_v17 = vsub.f32 %v8221_v41, %v1491_v15  ;;  %v1500_v27 = vsub.f32 %v8217_v40, %v1494_v14 }
 0x29f   :  { %v8380_v23 = vpop.eup %7350  ;;  %v1225_v24 = vpack.c.bf16 %v1221_v30, %v1221_v30 }
 0x2a0   :  { %v8382_v25 = vpop.eup %7352  ;;  %v1504_v16 = vmul.f32 1.442695, %v1499_v17  ;;  %v1510_v34 = vsel %vm1179_vm3, %v8380_v23, 0.0  ;;  %v1506_v38 = vmul.f32 1.442695, %v1500_v27 }
 0x2a1   :  { %v1231_v36 = vunpack.c.l.b16 %v1225_v24  ;;  %v1369_v26 = vsel %vm1179_vm3, %v8382_v25, 0.0  ;;  %1511 = vadd.xlane.f32.xlu1 %v1510_v34 }
 0x2a2   :  { %7354 = vpow2.f32 %v1504_v16  ;;  %1370 = vadd.xlane.f32.xlu2 %v1369_v26  ;;  %v1089_v26 = vpop.f32.mrf.mxu3 }
 0x2a3   :  { %v1232_v41 = vpack.c.b16 %v1231_v36, %v1230_v1  ;;  %7356 = vrcp.f32 %v1212_v11  ;;  %v1070_v36 = vpop.f32.mrf.mxu2 }
 0x2a4   :  { %v1497_v37 = vpop.xlane.xlu1 %1496  ;;  %7358 = vpow2.f32 %v1506_v38 }
 0x2a5   :  { %v1501_v44 = vsub.f32 %v8236_v10, %v1497_v37  ;;  %5682 = vmatmul.msk.bf16.vlgmr.msrb.gmra.mxu2 %vm1179_vm3, %v1232_v41  ;;  %v1638_v40 = vpop.xlane.xlu2 %1637 }
 0x2a6   :  { %1552 = vmatpush.bf16.msrb.mxu2 %v8160_v12  ;;  %v1648_v45 = vsub.f32 %v8232_v49, %v1638_v40  ;;  %v1088_v40 = vadd.f32 %v1087_v59, %v1068_v53 }
 0x2a7   :  { %v1508_v8 = vmul.f32 1.442695, %v1501_v44 }
 0x2a8   :  { %v8393_v46 = vpop.eup %7354  ;;  %v1652_v50 = vmul.f32 1.442695, %v1648_v45 }
 0x2a9   :  { %7360 = vpow2.f32 %v1508_v8  ;;  %v1513_v51 = vsel %vm1179_vm3, %v8393_v46, 0.0  ;;  %v7357_v54 = vpop.eup %7356 }
 0x2aa   :  { %7362 = vpow2.f32 %v1652_v50  ;;  %1514 = vadd.xlane.f32.xlu2 %v1513_v51  ;;  %v8398_v49 = vpop.eup %7358  ;;  %v1222_v29 = vmul.f32 %v7357_v54, %v8213_v35 }
 0x2ac   :  { %v1641_v10 = vpop.xlane.xlu0 %1640  ;;  %v1226_v17 = vpack.c.bf16 %v1222_v29, %v1222_v29 }
 0x2ad   :  { %v1649_v20 = vsub.f32 %v8246_v55, %v1641_v10  ;;  %v1215_v12 = vpop.xlane.xlu2 %1214  ;;  %v1516_v55 = vsel %vm1179_vm3, %v8398_v49, 0.0  ;;  %v1744_v10 = vpack.c.bf16 %v1088_v40, %v1088_v40 }
 0x2ae   :  { %7364 = vrcp.f32 %v1215_v12  ;;  %v1258_v37 = vunpack.c.l.b16 %v1226_v17 }
 0x2af   :  { %v8400_v0 = vpop.eup %7360  ;;  %v1654_v5 = vmul.f32 1.442695, %v1649_v20  ;;  %v1893_v59 = vunpack.c.l.b16 %v1744_v10 }
 0x2b0   :  { %v8402_v6 = vpop.eup %7362  ;;  %v1519_v11 = vsel %vm1179_vm3, %v8400_v0, 0.0 }
 0x2b1   :  { %7366 = vpow2.f32 %v1654_v5  ;;  %1520 = vadd.xlane.f32.xlu1 %v1519_v11  ;;  %v1660_v30 = vsel %vm1179_vm3, %v8402_v6, 0.0 }
 0x2b2   :  { %1517 = vadd.xlane.f32.xlu2 %v1516_v55  ;;  %1661 = vadd.xlane.f32.xlu0 %v1660_v30 }
 0x2b4   :  { %v7365_v14 = vpop.eup %7364  ;;  %v1644_v15 = vpop.xlane.xlu0 %1643 }
 0x2b5   :  { %v1223_v24 = vmul.f32 %v7365_v14, %v8242_v52  ;;  %v1650_v27 = vsub.f32 %v8254_v58, %v1644_v15  ;;  %v1812_v16 = vpop.xlane.xlu2 %1811  ;;  %v1090_v52 = vadd.f32 %v1089_v26, %v1070_v36  ;;  %v1647_v50 = vpop.xlane.xlu1 %1646 }
 0x2b6   :  { %v1822_v41 = vsub.f32 %v8258_v60, %v1812_v16  ;;  %v1651_v12 = vsub.f32 %v8262_v61, %v1647_v50 }
 0x2b7   :  { %v8413_v34 = vpop.eup %7366  ;;  %v1227_v35 = vpack.c.bf16 %v1223_v24, %v1223_v24  ;;  %v1656_v1 = vmul.f32 1.442695, %v1650_v27  ;;  %v1745_v60 = vpack.c.bf16 %v1090_v52, %v1090_v52 }
 0x2b8   :  { %v1663_v38 = vsel %vm1179_vm3, %v8413_v34, 0.0  ;;  %v1826_v58 = vmul.f32 1.442695, %v1822_v41 }
 0x2b9   :  { %v1259_v44 = vunpack.c.l.b16 %v1227_v35  ;;  %7368 = vpow2.f32 %v1656_v1  ;;  %v1894_v5 = vunpack.c.l.b16 %v1745_v60 }
 0x2ba   :  { %1664 = vadd.xlane.f32.xlu0 %v1663_v38  ;;  %7370 = vpow2.f32 %v1826_v58 }
 0x2bb   :  { %v1260_v45 = vpack.c.b16 %v1259_v44, %v1258_v37  ;;  %v8428_v55 = vpack.c.b16 %v1894_v5, %v1893_v59 }
 0x2bc   :  { %v1815_v8 = vpop.xlane.xlu0 %1814 }
 0x2bd   :  { %v1823_v51 = vsub.f32 %v8276_v9, %v1815_v8  ;;  %5683 = vmatmul.msk.bf16.vlgmr.msrb.gmra.mxu3 %vm1179_vm3, %v1260_v45  ;;  %v1658_v9 = vmul.f32 1.442695, %v1651_v12  ;;  %v1818_v11 = vpop.xlane.xlu2 %1817 }
 0x2be   :  { %1577 = vmatpush.bf16.msrb.mxu3 %v8174_v3  ;;  %v1824_v30 = vsub.f32 %v8272_v7, %v1818_v11 }
 0x2bf   :  { %v1828_v54 = vmul.f32 1.442695, %v1823_v51  ;;  %v8421_v20 = vpop.eup %7368 }
 0x2c0   :  { %v1666_v53 = vsel %vm1179_vm3, %v8421_v20, 0.0  ;;  %v8426_v29 = vpop.eup %7370  ;;  %v1830_v15 = vmul.f32 1.442695, %v1824_v30 }
 0x2c1   :  { %7372 = vpow2.f32 %v1828_v54  ;;  %1667 = vadd.xlane.f32.xlu2 %v1666_v53  ;;  %v1834_v14 = vsel %vm1179_vm3, %v8426_v29, 0.0 }
 0x2c2   :  { %7374 = vpow2.f32 %v1658_v9 }
 0x2c3   :  { %7376 = vpow2.f32 %v1830_v15 }
 0x2c4   :  { %v1821_v24 = vpop.xlane.xlu0 %1820  ;;  %v1968_v7 = vpop.xlane.xlu1 %1967 }
 0x2c5   :  { %v1978_v41 = vsub.f32 %v8284_v21, %v1968_v7  ;;  %v1825_v10 = vsub.f32 %v8288_v22, %v1821_v24 }
 0x2c7   :  { %v8430_v3 = vpop.eup %7372  ;;  %v1982_v37 = vmul.f32 1.442695, %v1978_v41  ;;  %v1832_v12 = vmul.f32 1.442695, %v1825_v10 }
 0x2c8   :  { %v1837_v61 = vsel %vm1179_vm3, %v8430_v3, 0.0  ;;  %v8439_v17 = vpop.eup %7374 }
 0x2c9   :  { %1838 = vadd.xlane.f32.xlu0 %v1837_v61  ;;  %1835 = vadd.xlane.f32.xlu2 %v1834_v14  ;;  %v1669_v27 = vsel %vm1179_vm3, %v8439_v17, 0.0  ;;  %v8443_v16 = vpop.eup %7376  ;;  %7378 = vpow2.f32 %v1982_v37 }
 0x2ca   :  { %2194 = vrot.lane.b32.xlu1 %v8428_v55, %s7858_s16  ;;  %v1840_v1 = vsel %vm1179_vm3, %v8443_v16, 0.0 }
 0x2cc   :  { %v1974_v36 = vpop.xlane.xlu1 %1973  ;;  %v1971_v38 = vpop.xlane.xlu2 %1970 }
 0x2cd   :  { %v1979_v59 = vsub.f32 %v8300_v32, %v1971_v38  ;;  %v1980_v32 = vsub.f32 %v8296_v28, %v1974_v36 }
 0x2cf   :  { %v8455_v8 = vpop.eup %7378  ;;  %v1984_v30 = vmul.f32 1.442695, %v1979_v59 }
 0x2d0   :  { %v1990_v21 = vsel %vm1179_vm3, %v8455_v8, 0.0 }
 0x2d1   :  { %1670 = vadd.xlane.f32.xlu2 %v1669_v27 }
 0x2d4   :  { %v8445_v35 = vpop.xlane.xlu0 %1976  ;;  %v2118_v58 = vpop.xlane.xlu2 %2117 }
 0x2d9   :  { %1841 = vadd.xlane.f32.xlu2 %v1840_v1  ;;  %v1986_v1 = vmul.f32 1.442695, %v1980_v32 }
 0x2dc   :  { %v8451_v26 = vpop.xlane.xlu0 %2123  ;;  %v2121_v44 = vpop.xlane.xlu1 %2120 }
 0x2dd   :  { %2169 = vrot.lane.b32.xlu0 %v8075_v63, %s7858_s16  ;;  %v2129_v40 = vsub.f32 %v8324_v48, %v2121_v44 }
 0x2df   :  { %v2134_v45 = vmul.f32 1.442695, %v2129_v40 }
 0x2e1   :  { %7380 = vpow2.f32 %v2134_v45 }
 0x2e4   :  { %v2268_v52 = vpop.xlane.xlu0 %2267 }
 0x2e5   :  { %v2278_v50 = vsub.f32 %v8332_v56, %v2268_v52  ;;  %v2128_v52 = vsub.f32 %v8308_v39, %v2118_v58  ;;  %v1981_v39 = vsub.f32 %v8312_v42, %v8445_v35 }
 0x2e7   :  { %v2282_v60 = vmul.f32 1.442695, %v2278_v50  ;;  %v8463_v54 = vpop.eup %7380  ;;  %v2132_v10 = vmul.f32 1.442695, %v2128_v52 }
 0x2e8   :  { %v2143_v56 = vsel %vm1179_vm3, %v8463_v54, 0.0 }
 0x2e9   :  { %7382 = vpow2.f32 %v2282_v60 }
 0x2ea   :  { %7384 = vpow2.f32 %v1832_v12 }
 0x2ec   :  { %v2127_v51 = vpop.xlane.xlu0 %2126  ;;  %v2274_v5 = vpop.xlane.xlu1 %2273 }
 0x2ed   :  { %v2271_v48 = vpop.xlane.xlu2 %2270  ;;  %v2131_v41 = vsub.f32 %v8338_v33, %v2127_v51  ;;  %v2280_v60 = vsub.f32 %v8342_v2, %v2274_v5  ;;  %v1988_v5 = vmul.f32 1.442695, %v1981_v39 }
 0x2ee   :  { %v2279_v53 = vsub.f32 %v8346_v4, %v2271_v48 }
 0x2ef   :  { %v8469_v22 = vpop.eup %7382  ;;  %v2138_v45 = vmul.f32 1.442695, %v2131_v41  ;;  %v2286_v58 = vmul.f32 1.442695, %v2280_v60 }
 0x2f0   :  { %v2284_v11 = vmul.f32 1.442695, %v2279_v53  ;;  %v8471_v61 = vpop.eup %7384  ;;  %v2290_v4 = vsel %vm1179_vm3, %v8469_v22, 0.0 }
 0x2f1   :  { %2044 = vrot.lane.b32.xlu2 %v8428_v55, %s7857_s11  ;;  %v1843_v24 = vsel %vm1179_vm3, %v8471_v61, 0.0 }
 0x2f4   :  { %1991 = vadd.xlane.f32.xlu1 %v1990_v21 }
 0x2f5   :  { %v2277_v50 = vpop.xlane.xlu2 %2276 }
 0x2fc   :  { %v1362_v9 = vpop.xlane.xlu0 %1361  ;;  %2144 = vadd.xlane.f32.xlu1 %v2143_v56 }
 0x2fd   :  { %7386 = vrcp.f32 %v1362_v9  ;;  %v2281_v9 = vsub.f32 %v8357_v19, %v2277_v50 }
 0x2fe   :  { %7388 = vpow2.f32 %v2284_v11 }
 0x2ff   :  { %7390 = vpow2.f32 %v1984_v30  ;;  %v2130_v30 = vsub.f32 %v8320_v47, %v8451_v26 }
 0x303   :  { %v7387_v15 = vpop.eup %7386 }
 0x304   :  { %v1365_v14 = vpop.xlane.xlu1 %1364  ;;  %2291 = vadd.xlane.f32.xlu1 %v2290_v4  ;;  %v8478_v27 = vpop.eup %7388  ;;  %v1376_v7 = vmul.f32 %v7387_v15, %v8362_v31  ;;  %v2288_v4 = vmul.f32 1.442695, %v2281_v9 }
 0x305   :  { %7392 = vrcp.f32 %v1365_v14  ;;  %v8482_v38 = vpop.eup %7390  ;;  %v2293_v44 = vsel %vm1179_vm3, %v8478_v27, 0.0 }
 0x306   :  { %v1380_v40 = vpack.c.bf16 %v1376_v7, %v1376_v7  ;;  %7394 = vpow2.f32 %v1986_v1  ;;  %v1993_v33 = vsel %vm1179_vm3, %v8482_v38, 0.0  ;;  %v2136_v1 = vmul.f32 1.442695, %v2130_v30 }
 0x307   :  { %1844 = vadd.xlane.f32.xlu0 %v1843_v24 }
 0x308   :  { %v1386_v21 = vunpack.c.l.b16 %v1380_v40 }
 0x30b   :  { %v7393_v37 = vpop.eup %7392 }
 0x30c   :  { %v1377_v28 = vmul.f32 %v7393_v37, %v8367_v43  ;;  %v1368_v36 = vpop.xlane.xlu1 %1367  ;;  %2294 = vadd.xlane.f32.xlu1 %v2293_v44  ;;  %v8491_v48 = vpop.eup %7394 }
 0x30d   :  { %7396 = vrcp.f32 %v1368_v36  ;;  %v1996_v2 = vsel %vm1179_vm3, %v8491_v48, 0.0 }
 0x30e   :  { %v1381_v31 = vpack.c.bf16 %v1377_v28, %v1377_v28  ;;  %7398 = vpow2.f32 %v2138_v45 }
 0x30f   :  { %1994 = vadd.xlane.f32.xlu0 %v1993_v33  ;;  %7400 = vpow2.f32 %v2132_v10 }
 0x310   :  { %v1387_v51 = vunpack.c.l.b16 %v1381_v31 }
 0x312   :  { %v1388_v43 = vpack.c.b16 %v1387_v51, %v1386_v21 }
 0x313   :  { %v7397_v56 = vpop.eup %7396 }
 0x314   :  { %5686 = vmatmul.msk.bf16.vlgmr.msra.gmra.mxu2 %vm1179_vm3, %v1388_v43  ;;  %v1512_v12 = vpop.xlane.xlu1 %1511  ;;  %v8499_v59 = vpop.eup %7398  ;;  %v1378_v42 = vmul.f32 %v7397_v56, %v8373_v57 }
 0x315   :  { %1702 = vmatpush.bf16.msra.mxu2 %v8166_v62  ;;  %v1371_v53 = vpop.xlane.xlu2 %1370  ;;  %v2149_v35 = vsel %vm1179_vm3, %v8499_v59, 0.0  ;;  %v8505_v62 = vpop.eup %7400 }
 0x316   :  { %7402 = vrcp.f32 %v1371_v53  ;;  %v1382_v14 = vpack.c.bf16 %v1378_v42, %v1378_v42  ;;  %v2140_v19 = vsel %vm1179_vm3, %v8505_v62, 0.0 }
 0x317   :  { %1997 = vadd.xlane.f32.xlu0 %v1996_v2  ;;  %7404 = vrcp.f32 %v1512_v12 }
 0x318   :  { %7406 = vpow2.f32 %v2286_v58  ;;  %v1411_v41 = vunpack.c.l.b16 %v1382_v14 }
 0x319   :  { %7408 = vpow2.f32 %v1988_v5 }
 0x31a   :  { %2150 = vadd.xlane.f32.xlu2 %v2149_v35 }
 0x31c   :  { %v7403_v11 = vpop.eup %7402 }
 0x31d   :  { %v1379_v15 = vmul.f32 %v7403_v11, %v8382_v25  ;;  %v1515_v32 = vpop.xlane.xlu2 %1514  ;;  %v7405_v24 = vpop.eup %7404 }
 0x31e   :  { %7410 = vrcp.f32 %v1515_v32  ;;  %v8512_v57 = vpop.eup %7406  ;;  %v1526_v47 = vmul.f32 %v7405_v24, %v8380_v23 }
 0x31f   :  { %v1383_v7 = vpack.c.bf16 %v1379_v15, %v1379_v15  ;;  %2141 = vadd.xlane.f32.xlu0 %v2140_v19  ;;  %7412 = vpow2.f32 %v2288_v4  ;;  %v2296_v37 = vsel %vm1179_vm3, %v8512_v57, 0.0  ;;  %v8517_v25 = vpop.eup %7408 }
 0x320   :  { %7414 = vpow2.f32 %v2136_v1  ;;  %v1530_v36 = vpack.c.bf16 %v1526_v47, %v1526_v47  ;;  %v1999_v23 = vsel %vm1179_vm3, %v8517_v25, 0.0 }
 0x321   :  { %v1412_v26 = vunpack.c.l.b16 %v1383_v7 }
 0x322   :  { %2297 = vadd.xlane.f32.xlu2 %v2296_v37 }
 0x323   :  { %v1413_v44 = vpack.c.b16 %v1412_v26, %v1411_v41 }
 0x324   :  { %v7411_v40 = vpop.eup %7410  ;;  %v1521_v28 = vpop.xlane.xlu1 %1520 }
 0x325   :  { %v1527_v52 = vmul.f32 %v7411_v40, %v8393_v46  ;;  %7416 = vrcp.f32 %v1521_v28  ;;  %v1662_v45 = vpop.xlane.xlu0 %1661  ;;  %5687 = vmatmul.msk.bf16.vlgmr.msra.gmra.mxu3 %vm1179_vm3, %v1413_v44  ;;  %v1518_v50 = vpop.xlane.xlu2 %1517  ;;  %2344 = vrot.lane.b32.xlu1 %v8428_v55, %s7855_s9  ;;  %v1536_v46 = vunpack.c.l.b16 %v1530_v36 }
 0x326   :  { %1727 = vmatpush.bf16.msra.mxu3 %v8183_v13  ;;  %v8526_v31 = vpop.eup %7412  ;;  %7418 = vrcp.f32 %v1518_v50 }
 0x327   :  { %v1531_v33 = vpack.c.bf16 %v1527_v52, %v1527_v52  ;;  %2000 = vadd.xlane.f32.xlu0 %v1999_v23  ;;  %7420 = vrcp.f32 %v1662_v45  ;;  %v8528_v51 = vpop.eup %7414  ;;  %v2299_v10 = vsel %vm1179_vm3, %v8526_v31, 0.0 }
 0x328   :  { %v2146_v2 = vsel %vm1179_vm3, %v8528_v51, 0.0 }
 0x329   :  { %v1537_v21 = vunpack.c.l.b16 %v1531_v33 }
 0x32a   :  { %2300 = vadd.xlane.f32.xlu2 %v2299_v10 }
 0x32b   :  { %v7417_v60 = vpop.eup %7416  ;;  %v1538_v43 = vpack.c.b16 %v1537_v21, %v1536_v46 }
 0x32c   :  { %v1529_v13 = vmul.f32 %v7417_v60, %v8400_v0  ;;  %v7419_v39 = vpop.eup %7418 }
 0x32d   :  { %v1665_v58 = vpop.xlane.xlu0 %1664  ;;  %5690 = vmatmul.msk.bf16.vlgmr.msrb.gmra.mxu2 %vm1179_vm3, %v1538_v43  ;;  %v7421_v12 = vpop.eup %7420  ;;  %v1528_v56 = vmul.f32 %v7419_v39, %v8398_v49 }
 0x32e   :  { %v1533_v53 = vpack.c.bf16 %v1529_v13, %v1529_v13  ;;  %7422 = vrcp.f32 %v1665_v58  ;;  %1879 = vmatpush.bf16.msrb.mxu2 %v8075_v63  ;;  %v1676_v42 = vmul.f32 %v7421_v12, %v8402_v6 }
 0x32f   :  { %2147 = vadd.xlane.f32.xlu0 %v2146_v2  ;;  %v1532_v9 = vpack.c.bf16 %v1528_v56, %v1528_v56  ;;  %v8554_v56 = vpop.f32.mrf.mxu2 }
 0x330   :  { %v1562_v5 = vunpack.c.l.b16 %v1533_v53  ;;  %v1680_v30 = vpack.c.bf16 %v1676_v42, %v1676_v42 }
 0x331   :  { %v1561_v0 = vunpack.c.l.b16 %v1532_v9 }
 0x332   :  { %v1686_v15 = vunpack.c.l.b16 %v1680_v30 }
 0x333   :  { %v1563_v11 = vpack.c.b16 %v1562_v5, %v1561_v0 }
 0x334   :  { %v7423_v35 = vpop.eup %7422  ;;  %v1668_v14 = vpop.xlane.xlu2 %1667 }
 0x335   :  { %v1677_v4 = vmul.f32 %v7423_v35, %v8413_v34  ;;  %5691 = vmatmul.msk.bf16.vlgmr.msrb.gmra.mxu3 %vm1179_vm3, %v1563_v11 }
 0x336   :  { %1907 = vmatpush.bf16.msrb.mxu3 %v8428_v55 }
 0x337   :  { %v1681_v49 = vpack.c.bf16 %v1677_v4, %v1677_v4 }
 0x339   :  { %v1687_v32 = vunpack.c.l.b16 %v1681_v49  ;;  %v8559_v49 = vpop.f32.mrf.mxu2 }
 0x33b   :  { %v1688_v24 = vpack.c.b16 %v1687_v32, %v1686_v15 }
 0x33c   :  { %v1839_v19 = vpop.xlane.xlu0 %1838  ;;  %v1836_v6 = vpop.xlane.xlu2 %1835 }
 0x33d   :  { %7424 = vrcp.f32 %v1839_v19  ;;  %5694 = vmatmul.msk.bf16.vlgmr.msra.gmra.mxu2 %vm1179_vm3, %v1688_v24 }
 0x33e   :  { %2032 = vmatpush.bf16.msra.mxu2 %v8164_v18  ;;  %7426 = vrcp.f32 %v1836_v6 }
 0x33f   :  { %7428 = vrcp.f32 %v1668_v14 }
 0x340   :  { %v8562_v19 = vpop.f32.mrf.mxu3 }
 0x343   :  { %v7425_v7 = vpop.eup %7424  ;;  %2319 = vrot.lane.b32.xlu0 %v8075_v63, %s7855_s9 }
 0x344   :  { %v7427_v34 = vpop.eup %7426  ;;  %v1851_v1 = vmul.f32 %v7425_v7, %v8430_v3  ;;  %v1671_v41 = vpop.xlane.xlu2 %1670 }
 0x345   :  { %v1850_v55 = vmul.f32 %v7427_v34, %v8426_v29  ;;  %v7429_v47 = vpop.eup %7428  ;;  %7430 = vrcp.f32 %v1671_v41 }
 0x346   :  { %v1855_v26 = vpack.c.bf16 %v1851_v1, %v1851_v1  ;;  %v1678_v40 = vmul.f32 %v7429_v47, %v8421_v20  ;;  %v2195_v20 = vpop.permute.xlu1 %2194 }
 0x347   :  { %v1854_v37 = vpack.c.bf16 %v1850_v55, %v1850_v55 }
 0x348   :  { %v1861_v44 = vunpack.c.l.b16 %v1855_v26  ;;  %v1682_v52 = vpack.c.bf16 %v1678_v40, %v1678_v40 }
 0x349   :  { %v1860_v18 = vunpack.c.l.b16 %v1854_v37 }
 0x34a   :  { %v1711_v29 = vunpack.c.l.b16 %v1682_v52 }
 0x34b   :  { %v1862_v28 = vpack.c.b16 %v1861_v44, %v1860_v18  ;;  %v7431_v36 = vpop.eup %7430 }
 0x34c   :  { %v1679_v45 = vmul.f32 %v7431_v36, %v8439_v17  ;;  %v1842_v63 = vpop.xlane.xlu2 %1841  ;;  %v8567_v36 = vpop.f32.mrf.mxu3 }
 0x34d   :  { %5698 = vmatmul.msk.bf16.vlgmr.msrb.gmra.mxu2 %vm1179_vm3, %v1862_v28  ;;  %7432 = vrcp.f32 %v1842_v63 }
 0x34e   :  { %v1683_v3 = vpack.c.bf16 %v1679_v45, %v1679_v45 }
 0x34f   :  { %v2170_v50 = vpop.permute.xlu0 %2169 }
 0x350   :  { %2182 = vmatpush.bf16.msrb.mxu2 %v2170_v50  ;;  %v1712_v23 = vunpack.c.l.b16 %v1683_v3 }
 0x352   :  { %v1713_v33 = vpack.c.b16 %v1712_v23, %v1711_v29 }
 0x353   :  { %v7433_v60 = vpop.eup %7432 }
 0x354   :  { %5695 = vmatmul.msk.bf16.vlgmr.msra.gmra.mxu3 %vm1179_vm3, %v1713_v33  ;;  %v2045_v46 = vpop.permute.xlu2 %2044  ;;  %v1852_v17 = vmul.f32 %v7433_v60, %v8443_v16 }
 0x355   :  { %2057 = vmatpush.bf16.msra.mxu3 %v2045_v46 }
 0x356   :  { %v1856_v13 = vpack.c.bf16 %v1852_v17, %v1852_v17 }
 0x358   :  { %v1888_v2 = vunpack.c.l.b16 %v1856_v13 }
 0x367   :  { %v1992_v21 = vpop.xlane.xlu1 %1991 }
 0x36f   :  { %v2145_v11 = vpop.xlane.xlu1 %2144 }
 0x377   :  { %v2292_v24 = vpop.xlane.xlu1 %2291 }
 0x37a   :  { %v1845_v10 = vpop.xlane.xlu0 %1844 }
 0x37b   :  { %7434 = vrcp.f32 %v1845_v10 }
 0x37c   :  { %7436 = vrcp.f32 %v1992_v21 }
 0x37f   :  { %v2295_v18 = vpop.xlane.xlu1 %2294 }
 0x381   :  { %v7435_v43 = vpop.eup %7434 }
 0x382   :  { %v1853_v39 = vmul.f32 %v7435_v43, %v8471_v61  ;;  %v1995_v58 = vpop.xlane.xlu0 %1994  ;;  %v7437_v12 = vpop.eup %7436 }
 0x383   :  { %7438 = vrcp.f32 %v1995_v58  ;;  %v2006_v5 = vmul.f32 %v7437_v12, %v8455_v8 }
 0x384   :  { %v1857_v53 = vpack.c.bf16 %v1853_v39, %v1853_v39  ;;  %7440 = vrcp.f32 %v2145_v11 }
 0x385   :  { %v2010_v35 = vpack.c.bf16 %v2006_v5, %v2006_v5 }
 0x386   :  { %v1889_v9 = vunpack.c.l.b16 %v1857_v53 }
 0x387   :  { %v2016_v4 = vunpack.c.l.b16 %v2010_v35 }
 0x388   :  { %v1890_v42 = vpack.c.b16 %v1889_v9, %v1888_v2 }
 0x389   :  { %v7439_v0 = vpop.eup %7438 }
 0x38a   :  { %v2007_v16 = vmul.f32 %v7439_v0, %v8482_v38  ;;  %v1998_v30 = vpop.xlane.xlu0 %1997  ;;  %5699 = vmatmul.msk.bf16.vlgmr.msrb.gmra.mxu3 %vm1179_vm3, %v1890_v42  ;;  %v7441_v8 = vpop.eup %7440 }
 0x38b   :  { %2207 = vmatpush.bf16.msrb.mxu3 %v2195_v20  ;;  %v2157_v38 = vmul.f32 %v7441_v8, %v8463_v54 }
 0x38c   :  { %v2011_v61 = vpack.c.bf16 %v2007_v16, %v2007_v16 }
 0x38d   :  { %v2161_v34 = vpack.c.bf16 %v2157_v38, %v2157_v38  ;;  %v2151_v47 = vpop.xlane.xlu2 %2150 }
 0x38e   :  { %v2017_v14 = vunpack.c.l.b16 %v2011_v61 }
 0x38f   :  { %v2167_v37 = vunpack.c.l.b16 %v2161_v34 }
 0x390   :  { %v2018_v15 = vpack.c.b16 %v2017_v14, %v2016_v4 }
 0x392   :  { %v2142_v32 = vpop.xlane.xlu0 %2141  ;;  %5702 = vmatmul.msk.bf16.vlgmr.msra.gmra.mxu2 %vm1179_vm3, %v2018_v15 }
 0x393   :  { %7442 = vrcp.f32 %v2142_v32 }
 0x394   :  { %7444 = vrcp.f32 %v1998_v30 }
 0x395   :  { %v2298_v50 = vpop.xlane.xlu2 %2297 }
 0x397   :  { %v1404_v6 = vpop.f32.mrf.mxu2  ;;  %v2345_v60 = vpop.permute.xlu1 %2344 }
 0x399   :  { %v7443_v7 = vpop.eup %7442 }
 0x39a   :  { %v2156_v1 = vmul.f32 %v7443_v7, %v8505_v62  ;;  %v2001_v55 = vpop.xlane.xlu0 %2000  ;;  %v7445_v41 = vpop.eup %7444 }
 0x39b   :  { %7446 = vrcp.f32 %v2001_v55  ;;  %v2008_v44 = vmul.f32 %v7445_v41, %v8491_v48 }
 0x39c   :  { %v2160_v26 = vpack.c.bf16 %v2156_v1, %v2156_v1  ;;  %7448 = vrcp.f32 %v2295_v18 }
 0x39d   :  { %v2012_v63 = vpack.c.bf16 %v2008_v44, %v2008_v44  ;;  %v2301_v12 = vpop.xlane.xlu2 %2300  ;;  %v5772_v44 = vld [vmem:[#allocation13 + $0x78] sm:$0xf0] }
 0x39e   :  { %v2166_v40 = vunpack.c.l.b16 %v2160_v26  ;;  %v5770_v26 = vld [vmem:[#allocation13 + $0x70] sm:$0xf] }
 0x39f   :  { %v1406_v28 = vpop.f32.mrf.mxu2  ;;  %v2041_v29 = vunpack.c.l.b16 %v2012_v63  ;;  %v5764_v63 = vld [vmem:[#allocation13 + $0x68] sm:$0xf0] }
 0x3a0   :  { %v2168_v52 = vpack.c.b16 %v2167_v37, %v2166_v40  ;;  %v7272_v54 = vpack.i.bf16 %v1406_v28, %v1404_v6  ;;  %v6974_v37 = vld [vmem:[#allocation13 + $0x74] sm:$0xf]  ;;  %v5762_v28 = vld [vmem:[#allocation13 + $0x60] sm:$0xf] }
 0x3a1   :  { %v7447_v45 = vpop.eup %7446  ;;  %v5775_v40 = vor.u32 %v6974_v37, %v5772_v44 }
 0x3a2   :  { %v2009_v62 = vmul.f32 %v7447_v45, %v8517_v25  ;;  %v2148_v3 = vpop.xlane.xlu0 %2147  ;;  %7273 = vrot.lane.b32.xlu2 %v7272_v54, %s7855_s9  ;;  %5706 = vmatmul.msk.bf16.vlgmr.msrb.gmra.mxu2 %vm1179_vm3, %v2168_v52  ;;  %v7449_v33 = vpop.eup %7448  ;;  %v6973_v52 = vld [vmem:[#allocation13 + $0x64] sm:$0xf0]  ;;  %v6972_v54 = vld [vmem:[#allocation13 + $0x64] sm:$0xf] }
 0x3a3   :  { %7450 = vrcp.f32 %v2148_v3  ;;  %v2307_v17 = vmul.f32 %v7449_v33, %v8478_v27  ;;  %v5763_v45 = vor.u32 %v6973_v52, %v5762_v28  ;;  %v6971_v3 = vld [vmem:[#allocation13 + $0x54] sm:$0xf0] }
 0x3a4   :  { %7452 = vrcp.f32 %v2292_v24  ;;  %v2013_v48 = vpack.c.bf16 %v2009_v62, %v2009_v62  ;;  %v5754_v62 = vld [vmem:[#allocation13 + $0x50] sm:$0xf] }
 0x3a5   :  { %7454 = vrcp.f32 %v2151_v47  ;;  %v2311_v58 = vpack.c.bf16 %v2307_v17, %v2307_v17 }
 0x3a6   :  { %v2042_v23 = vunpack.c.l.b16 %v2013_v48  ;;  %7456 = vrcp.f32 %v2301_v12  ;;  %v5767_v48 = vor.u32 %v6972_v54, %v5764_v63  ;;  %v6966_v12 = vld [vmem:[#allocation13 + $0x34] sm:$0xf] }
 0x3a7   :  { %v2317_v0 = vunpack.c.l.b16 %v2311_v58  ;;  %7458 = vrcp.f32 %v2298_v50  ;;  %v6970_v50 = vld [vmem:[#allocation13 + $0x54] sm:$0xf]  ;;  %v6967_v58 = vld [vmem:[#allocation13 + $0x34] sm:$0xf0] }
 0x3a8   :  { %v2043_v46 = vpack.c.b16 %v2042_v23, %v2041_v29  ;;  %v8572_v20 = vpop.f32.mrf.mxu3  ;;  %v5756_v29 = vld [vmem:[#allocation13 + $0x58] sm:$0xf0]  ;;  %v5755_v23 = vor.u32 %v6971_v3, %v5754_v62 }
 0x3a9   :  { %v7451_v21 = vpop.eup %7450 }
 0x3aa   :  { %v7453_v10 = vpop.eup %7452  ;;  %5703 = vmatmul.msk.bf16.vlgmr.msra.gmra.mxu3 %vm1179_vm3, %v2043_v46  ;;  %v2158_v43 = vmul.f32 %v7451_v21, %v8528_v51  ;;  %v5759_v46 = vor.u32 %v6970_v50, %v5756_v29 }
 0x3ab   :  { %v7455_v25 = vpop.eup %7454  ;;  %2357 = vmatpush.bf16.msra.mxu3 %v2345_v60  ;;  %v2306_v13 = vmul.f32 %v7453_v10, %v8469_v22  ;;  %v5746_v10 = vld [vmem:[#allocation13 + $0x40] sm:$0xf]  ;;  %v6969_v60 = vld [vmem:[#allocation13 + $0x44] sm:$0xf0] }
 0x3ac   :  { %v2159_v39 = vmul.f32 %v7455_v25, %v8499_v59  ;;  %v2162_v53 = vpack.c.bf16 %v2158_v43, %v2158_v43  ;;  %v7457_v59 = vpop.eup %7456  ;;  %v6968_v25 = vld [vmem:[#allocation13 + $0x44] sm:$0xf]  ;;  %v5747_v17 = vor.u32 %v6969_v60, %v5746_v10  ;;  %v5748_v43 = vld [vmem:[#allocation13 + $0x48] sm:$0xf0] }
 0x3ad   :  { %v2310_v9 = vpack.c.bf16 %v2306_v13, %v2306_v13  ;;  %v7459_v14 = vpop.eup %7458  ;;  %v2309_v15 = vmul.f32 %v7457_v59, %v8526_v31  ;;  %v6975_v31 = vld [vmem:[#allocation13 + $0x74] sm:$0xf0]  ;;  %v5751_v13 = vor.u32 %v6968_v25, %v5748_v43 }
 0x3ae   :  { %v2163_v42 = vpack.c.bf16 %v2159_v39, %v2159_v39  ;;  %v2191_v35 = vunpack.c.l.b16 %v2162_v53  ;;  %v2308_v32 = vmul.f32 %v7459_v14, %v8512_v57  ;;  %v5771_v57 = vor.u32 %v6975_v31, %v5770_v26  ;;  %v5738_v39 = vld [vmem:[#allocation13 + $0x30] sm:$0xf]  ;;  %v6963_v59 = vld [vmem:[#allocation13 + $0x14] sm:$0xf0]  ;;  %v5724_v14 = vld [vmem:[#allocation13 + $0x18] sm:$0xf0] }
 0x3af   :  { %v2316_v11 = vunpack.c.l.b16 %v2310_v9  ;;  %v2313_v8 = vpack.c.bf16 %v2309_v15, %v2309_v15  ;;  %v5739_v53 = vor.u32 %v6967_v58, %v5738_v39 }
 0x3b0   :  { %v8579_v2 = vpop.f32.mrf.mxu3  ;;  %v1554_v5 = vpop.f32.mrf.mxu2  ;;  %v2192_v16 = vunpack.c.l.b16 %v2163_v42  ;;  %v2312_v6 = vpack.c.bf16 %v2308_v32, %v2308_v32  ;;  %2688 = vmatpush.bf16.msrb.mxu0 %v5771_v57 }
 0x3b1   :  { %v2318_v51 = vpack.c.b16 %v2317_v0, %v2316_v11  ;;  %v2342_v34 = vunpack.c.l.b16 %v2313_v8  ;;  %v6965_v11 = vld [vmem:[#allocation13 + $0x24] sm:$0xf0] }
 0x3b2   :  { %v2193_v22 = vpack.c.b16 %v2192_v16, %v2191_v35  ;;  %v2341_v1 = vunpack.c.l.b16 %v2312_v6  ;;  %v5730_v35 = vld [vmem:[#allocation13 + $0x20] sm:$0xf]  ;;  %v6961_v6 = vld [vmem:[#allocation13 + $0x4] sm:$0xf0] }
 0x3b3   :  { %v5731_v16 = vor.u32 %v6965_v11, %v5730_v35  ;;  %v5836_v11 = vld [vmem:[#allocation13 + $0xf8] sm:$0xf0] }
 0x3b4   :  { %v2343_v55 = vpack.c.b16 %v2342_v34, %v2341_v1  ;;  %2689 = vmatpush.bf16.msrb.mxu0 %v5763_v45  ;;  %v5716_v1 = vld [vmem:[#allocation13 + $0x8] sm:$0xf0] }
 0x3b5   :  { %v2320_v27 = vpop.permute.xlu0 %2319 }
 0x3b6   :  { %2332 = vmatpush.bf16.msra.mxu2 %v2320_v27  ;;  %v6964_v27 = vld [vmem:[#allocation13 + $0x24] sm:$0xf] }
 0x3b8   :  { %v1556_v30 = vpop.f32.mrf.mxu2  ;;  %v1579_v4 = vpop.f32.mrf.mxu3  ;;  %2690 = vmatpush.bf16.msrb.mxu0 %v5755_v23 }
 0x3b9   :  { %v7277_v61 = vpack.i.bf16 %v1556_v30, %v1554_v5  ;;  %5710 = vmatmul.msk.bf16.vlgmr.msra.gmra.mxu2 %vm1179_vm3, %v2318_v51  ;;  %v5740_v5 = vld [vmem:[#allocation13 + $0x38] sm:$0xf0]  ;;  %v5732_v51 = vld [vmem:[#allocation13 + $0x28] sm:$0xf0]  ;;  %v5722_v30 = vld [vmem:[#allocation13 + $0x10] sm:$0xf] }
 0x3ba   :  { %5707 = vmatmul.msk.bf16.vlgmr.msrb.gmra.mxu3 %vm1179_vm3, %v2193_v22  ;;  %2726 = vmatpush.bf16.msrb.mxu2 %v5775_v40  ;;  %v5743_v42 = vor.u32 %v6966_v12, %v5740_v5  ;;  %v5735_v22 = vor.u32 %v6964_v27, %v5732_v51  ;;  %v7297_v40 = vpack.i.bf16 %v8579_v2, %v8572_v20  ;;  %v5834_v5 = vld [vmem:[#allocation13 + $0xf0] sm:$0xf]  ;;  %v6989_v51 = vld [vmem:[#allocation13 + $0xe4] sm:$0xf0] }
 0x3bb   :  { %7278 = vrot.lane.b32.xlu0 %v7277_v61, %s7858_s16  ;;  %v6962_v61 = vld [vmem:[#allocation13 + $0x14] sm:$0xf] }
 0x3bc   :  { %2691 = vmatpush.bf16.msrb.mxu0 %v5747_v17  ;;  %v5727_v32 = vor.u32 %v6962_v61, %v5724_v14  ;;  %v6987_v61 = vld [vmem:[#allocation13 + $0xd4] sm:$0xf0] }
 0x3be   :  { %2727 = vmatpush.bf16.msrb.mxu2 %v5767_v48 }
 0x3c0   :  { %v1704_v24 = vpop.f32.mrf.mxu2  ;;  %v1581_v38 = vpop.f32.mrf.mxu3  ;;  %2692 = vmatpush.bf16.msrb.mxu0 %v5739_v53 }
 0x3c1   :  { %v7302_v7 = vpack.i.bf16 %v1581_v38, %v1579_v4  ;;  %v5723_v4 = vor.u32 %v6963_v59, %v5722_v30  ;;  %v5714_v38 = vld [vmem:[#allocation13] sm:$0xf]  ;;  %v5818_v59 = vld [vmem:[#allocation13 + $0xd0] sm:$0xf] }
 0x3c2   :  { %2728 = vmatpush.bf16.msrb.mxu2 %v5759_v46  ;;  %v5715_v34 = vor.u32 %v6961_v6, %v5714_v38  ;;  %v5819_v14 = vor.u32 %v6987_v61, %v5818_v59  ;;  %v6985_v38 = vld [vmem:[#allocation13 + $0xc4] sm:$0xf0]  ;;  %v6984_v6 = vld [vmem:[#allocation13 + $0xc4] sm:$0xf] }
 0x3c3   :  { %7303 = vrot.lane.b32.xlu2 %v7302_v7, %s7858_s16  ;;  %v6960_v7 = vld [vmem:[#allocation13 + $0x4] sm:$0xf] }
 0x3c4   :  { %2693 = vmatpush.bf16.msrb.mxu0 %v5731_v16  ;;  %v5826_v16 = vld [vmem:[#allocation13 + $0xe0] sm:$0xf] }
 0x3c5   :  { %v5827_v30 = vor.u32 %v6989_v51, %v5826_v16 }
 0x3c6   :  { %2729 = vmatpush.bf16.msrb.mxu2 %v5751_v13 }
 0x3c8   :  { %v1706_v41 = vpop.f32.mrf.mxu2  ;;  %2694 = vmatpush.bf16.msrb.mxu0 %v5723_v4  ;;  %v6986_v4 = vld [vmem:[#allocation13 + $0xd4] sm:$0xf] }
 0x3c9   :  { %v7282_v47 = vpack.i.bf16 %v1706_v41, %v1704_v24 }
 0x3ca   :  { %5711 = vmatmul.msk.bf16.vlgmr.msra.gmra.mxu3 %vm1179_vm3, %v2343_v55  ;;  %2730 = vmatpush.bf16.msrb.mxu2 %v5743_v42  ;;  %v5719_v55 = vor.u32 %v6960_v7, %v5716_v1  ;;  %v6991_v42 = vld [vmem:[#allocation13 + $0xf4] sm:$0xf0] }
 0x3cb   :  { %7283 = vrot.lane.b32.xlu1 %v7282_v47, %s7857_s11  ;;  %v5835_v35 = vor.u32 %v6991_v42, %v5834_v5 }
 0x3cc   :  { %2695 = vmatpush.bf16.msrb.mxu0 %v5715_v34  ;;  %v5812_v34 = vld [vmem:[#allocation13 + $0xc8] sm:$0xf0] }
 0x3cd   :  { %2707 = vmatpush.bf16.msrb.mxu1 %v5835_v35  ;;  %v5815_v1 = vor.u32 %v6984_v6, %v5812_v34 }
 0x3ce   :  { %2731 = vmatpush.bf16.msrb.mxu2 %v5735_v22  ;;  %v6988_v22 = vld [vmem:[#allocation13 + $0xe4] sm:$0xf] }
 0x3d0   :  { %v8589_v18 = vpop.f32.mrf.mxu2 }
 0x3d1   :  { %2708 = vmatpush.bf16.msrb.mxu1 %v5827_v30 }
 0x3d2   :  { %2732 = vmatpush.bf16.msrb.mxu2 %v5727_v32  ;;  %v5820_v32 = vld [vmem:[#allocation13 + $0xd8] sm:$0xf0] }
 0x3d5   :  { %2709 = vmatpush.bf16.msrb.mxu1 %v5819_v14 }
 0x3d6   :  { %2733 = vmatpush.bf16.msrb.mxu2 %v5719_v55  ;;  %v5802_v55 = vld [vmem:[#allocation13 + $0xb0] sm:$0xf] }
 0x3d7   :  { %v8591_v33 = vpop.f32.mrf.mxu3 }
 0x3d8   :  { %v8593_v21 = vpop.f32.mrf.mxu2 }
 0x3df   :  { %v8595_v9 = vpop.f32.mrf.mxu3 }
 0x3e0   :  { %v7312_v39 = vpack.i.bf16 %v8595_v9, %v8591_v33  ;;  %v5828_v33 = vld [vmem:[#allocation13 + $0xe8] sm:$0xf0] }
 0x3e1   :  { %v5831_v9 = vor.u32 %v6988_v22, %v5828_v33 }
 0x3fc   :  { %v7274_v44 = vpop.permute.xlu2 %7273 }
 0x3fd   :  { %v7276_v52 = vunpack.i.h.bf16 %v7274_v44  ;;  %v7275_v54 = vunpack.i.l.bf16 %v7274_v44  ;;  %v5794_v44 = vld [vmem:[#allocation13 + $0xa0] sm:$0xf] }
 0x3ff   :  { %v2461_v50 = vsel %vm1118_vm0, %v8559_v49, %v7276_v52  ;;  %v2460_v29 = vsel %vm1118_vm0, %v8554_v56, %v7275_v54  ;;  %v5796_v54 = vld [vmem:[#allocation13 + $0xa8] sm:$0xf0] }
 0x40d   :  { %v8597_v15 = vpop.f32.mrf.mxu3 }
 0x415   :  { %v2034_v0 = vpop.f32.mrf.mxu2  ;;  %v8600_v41 = vpop.f32.mrf.mxu3 }
 0x41d   :  { %v2036_v8 = vpop.f32.mrf.mxu2  ;;  %v7304_v30 = vpop.permute.xlu2 %7303 }
 0x41e   :  { %v7287_v24 = vpack.i.bf16 %v2036_v8, %v2034_v0  ;;  %v6990_v0 = vld [vmem:[#allocation13 + $0xf4] sm:$0xf]  ;;  %v5823_v8 = vor.u32 %v6986_v4, %v5820_v32  ;;  %v7306_v33 = vunpack.i.h.bf16 %v7304_v30 }
 0x41f   :  { %v5839_v27 = vor.u32 %v6990_v0, %v5836_v11 }
 0x420   :  { %7288 = vrot.lane.b32.xlu0 %v7287_v24, %s7855_s9  ;;  %v5810_v24 = vld [vmem:[#allocation13 + $0xc0] sm:$0xf] }
 0x421   :  { %2745 = vmatpush.bf16.msrb.mxu3 %v5839_v27  ;;  %v5811_v7 = vor.u32 %v6985_v38, %v5810_v24 }
 0x423   :  { %2710 = vmatpush.bf16.msrb.mxu1 %v5811_v7 }
 0x425   :  { %v2184_v47 = vpop.f32.mrf.mxu2  ;;  %2746 = vmatpush.bf16.msrb.mxu3 %v5831_v9  ;;  %v7305_v9 = vunpack.i.l.bf16 %v7304_v30 }
 0x429   :  { %2747 = vmatpush.bf16.msrb.mxu3 %v5823_v8 }
 0x42d   :  { %v2059_v26 = vpop.f32.mrf.mxu3  ;;  %v2186_v31 = vpop.f32.mrf.mxu2  ;;  %2748 = vmatpush.bf16.msrb.mxu3 %v5815_v1 }
 0x42e   :  { %v7292_v37 = vpack.i.bf16 %v2186_v31, %v2184_v47  ;;  %v7279_v28 = vpop.permute.xlu0 %7278  ;;  %v6983_v47 = vld [vmem:[#allocation13 + $0xb4] sm:$0xf0] }
 0x42f   :  { %v7281_v45 = vunpack.i.h.bf16 %v7279_v28  ;;  %v7280_v63 = vunpack.i.l.bf16 %v7279_v28  ;;  %v5803_v31 = vor.u32 %v6983_v47, %v5802_v55  ;;  %v6980_v28 = vld [vmem:[#allocation13 + $0xa4] sm:$0xf] }
 0x430   :  { %7293 = vrot.lane.b32.xlu1 %v7292_v37, %s7858_s16  ;;  %v5804_v37 = vld [vmem:[#allocation13 + $0xb8] sm:$0xf0] }
 0x431   :  { %v2465_v2 = vsel %vm2464_vm6, %v2460_v29, %v7280_v63  ;;  %v2466_v46 = vsel %vm2464_vm6, %v2461_v50, %v7281_v45  ;;  %2711 = vmatpush.bf16.msrb.mxu1 %v5803_v31  ;;  %v5799_v45 = vor.u32 %v6980_v28, %v5796_v54  ;;  %v5786_v63 = vld [vmem:[#allocation13 + $0x90] sm:$0xf]  ;;  %v5788_v50 = vld [vmem:[#allocation13 + $0x98] sm:$0xf0] }
 0x435   :  { %v2061_v57 = vpop.f32.mrf.mxu3 }
 0x436   :  { %v7317_v10 = vpack.i.bf16 %v2061_v57, %v2059_v26  ;;  %v6982_v26 = vld [vmem:[#allocation13 + $0xb4] sm:$0xf] }
 0x437   :  { %v5807_v57 = vor.u32 %v6982_v26, %v5804_v37 }
 0x438   :  { %7298 = vrot.lane.b32.xlu1 %v7297_v40, %s7855_s9  ;;  %v6981_v40 = vld [vmem:[#allocation13 + $0xa4] sm:$0xf0] }
 0x439   :  { %2749 = vmatpush.bf16.msrb.mxu3 %v5807_v57  ;;  %v5795_v52 = vor.u32 %v6981_v40, %v5794_v44 }
 0x43b   :  { %2712 = vmatpush.bf16.msrb.mxu1 %v5795_v52 }
 0x43c   :  { %v2334_v62 = vpop.f32.mrf.mxu2 }
 0x43d   :  { %v7284_v3 = vpop.permute.xlu1 %7283  ;;  %v2209_v48 = vpop.f32.mrf.mxu3  ;;  %2750 = vmatpush.bf16.msrb.mxu3 %v5799_v45 }
 0x43e   :  { %v7286_v23 = vunpack.i.h.bf16 %v7284_v3  ;;  %v7285_v20 = vunpack.i.l.bf16 %v7284_v3  ;;  %v6978_v3 = vld [vmem:[#allocation13 + $0x94] sm:$0xf] }
 0x43f   :  { %v5791_v29 = vor.u32 %v6978_v3, %v5788_v50 }
 0x440   :  { %v2470_v60 = vsel %vm2469_vm7, %v2465_v2, %v7285_v20  ;;  %v2471_v25 = vsel %vm2469_vm7, %v2466_v46, %v7286_v23  ;;  %7318 = vrot.lane.b32.xlu1 %v7317_v10, %s7855_s9  ;;  %v5778_v23 = vld [vmem:[#allocation13 + $0x80] sm:$0xf]  ;;  %v6977_v20 = vld [vmem:[#allocation13 + $0x84] sm:$0xf0]  ;;  %v6976_v2 = vld [vmem:[#allocation13 + $0x84] sm:$0xf] }
 0x441   :  { %v2486_v17 = vpack.c.bf16 %v2471_v25, %v2470_v60  ;;  %2751 = vmatpush.bf16.msrb.mxu3 %v5791_v29  ;;  %v5779_v46 = vor.u32 %v6977_v20, %v5778_v23  ;;  %v5780_v10 = vld [vmem:[#allocation13 + $0x88] sm:$0xf0] }
 0x442   :  { %v5783_v60 = vor.u32 %v6976_v2, %v5780_v10  ;;  %v7478_v10 = vld [vmem:[#allocation2] sm:$0xff] }
 0x443   :  { %2696 = vmatmul.bf16.vlgmr.msrb.gmra.mxu0 %v2486_v17  ;;  %2734 = vmatmul.bf16.vlgmr.msrb.gmra.mxu2 %v2486_v17 }
 0x444   :  { %v2336_v49 = vpop.f32.mrf.mxu2 }
 0x445   :  { %v7307_v43 = vpack.i.bf16 %v2336_v49, %v2334_v62  ;;  %v2211_v13 = vpop.f32.mrf.mxu3  ;;  %v6979_v62 = vld [vmem:[#allocation13 + $0x94] sm:$0xf0]  ;;  %2752 = vmatpush.bf16.msrb.mxu3 %v5783_v60 }
 0x446   :  { %v7322_v56 = vpack.i.bf16 %v2211_v13, %v2209_v48  ;;  %v5787_v48 = vor.u32 %v6979_v62, %v5786_v63 }
 0x447   :  { %7308 = vrot.lane.b32.xlu0 %v7307_v43, %s7857_s11 }
 0x448   :  { %7323 = vrot.lane.b32.xlu2 %v7322_v56, %s7858_s16  ;;  %2713 = vmatpush.bf16.msrb.mxu1 %v5787_v48 }
 0x44c   :  { %2714 = vmatpush.bf16.msrb.mxu1 %v5779_v46 }
 0x44d   :  { %v2359_v58 = vpop.f32.mrf.mxu3 }
 0x44f   :  { %7313 = vrot.lane.b32.xlu0 %v7312_v39, %s7857_s11 }
 0x455   :  { %v2361_v12 = vpop.f32.mrf.mxu3 }
 0x456   :  { %v7327_v53 = vpack.i.bf16 %v2361_v12, %v2359_v58 }
 0x458   :  { %7328 = vrot.lane.b32.xlu0 %v7327_v53, %s7857_s11 }
 0x492   :  { %v7289_v17 = vpop.permute.xlu0 %7288 }
 0x493   :  { %v7291_v49 = vunpack.i.h.bf16 %v7289_v17  ;;  %v7290_v43 = vunpack.i.l.bf16 %v7289_v17 }
 0x495   :  { %v2475_v12 = vsel %vm1118_vm0, %v8593_v21, %v7291_v49  ;;  %v2474_v53 = vsel %vm1118_vm0, %v8589_v18, %v7290_v43 }
 0x4a2   :  { %v7294_v25 = vpop.permute.xlu1 %7293  ;;  %v7324_v34 = vpop.permute.xlu2 %7323 }
 0x4a3   :  { %v7296_v13 = vunpack.i.h.bf16 %v7294_v25  ;;  %v7295_v56 = vunpack.i.l.bf16 %v7294_v25  ;;  %v7326_v55 = vunpack.i.h.bf16 %v7324_v34  ;;  %v7325_v47 = vunpack.i.l.bf16 %v7324_v34  ;;  %v7479_v25 = vld [vmem:[#allocation2 + $0x8] sm:$0xff] }
 0x4a5   :  { %v2479_v0 = vsel %vm2464_vm6, %v2475_v12, %v7296_v13  ;;  %v2478_v35 = vsel %vm2464_vm6, %v2474_v53, %v7295_v56 }
 0x4aa   :  { %v7299_v39 = vpop.permute.xlu1 %7298 }
 0x4ab   :  { %v7301_v11 = vunpack.i.h.bf16 %v7299_v39  ;;  %v7300_v27 = vunpack.i.l.bf16 %v7299_v39 }
 0x4ad   :  { %v2463_v21 = vsel %vm1118_vm0, %v8567_v36, %v7301_v11  ;;  %v2462_v18 = vsel %vm1118_vm0, %v8562_v19, %v7300_v27 }
 0x4ae   :  { %v2467_v32 = vsel %vm2464_vm6, %v2462_v18, %v7305_v9  ;;  %v2468_v8 = vsel %vm2464_vm6, %v2463_v21, %v7306_v33  ;;  %v7482_v33 = vld [vmem:[#allocation2 + $0x20] sm:$0xff] }
 0x4b2   :  { %v7319_v61 = vpop.permute.xlu1 %7318 }
 0x4b3   :  { %v7321_v6 = vunpack.i.h.bf16 %v7319_v61  ;;  %v7320_v7 = vunpack.i.l.bf16 %v7319_v61 }
 0x4b5   :  { %v2477_v19 = vsel %vm1118_vm0, %v8600_v41, %v7321_v6  ;;  %v2476_v1 = vsel %vm1118_vm0, %v8597_v15, %v7320_v7  ;;  %v2522_v41 = vld [vmem:[#allocation14] sm:$0x3] }
 0x4b6   :  { %v2480_v57 = vsel %vm2464_vm6, %v2476_v1, %v7325_v47  ;;  %v2481_v44 = vsel %vm2464_vm6, %v2477_v19, %v7326_v55  ;;  %v2524_v45 = vperm.slane %v2522_v41, 0  ;;  %v2525_v62 = vperm.slane %v2522_v41, 1  ;;  %v7485_v19 = vld [vmem:[#allocation2 + $0x38] sm:$0xff] }
 0x4b7   :  { %v7860_v47 = vmov 256.0  }
 0x4b8   :  { %7460 = vrcp.f32 %v7860_v47  ;;  %v7032_v47 = vld [vmem:[#allocation19 + $0x144] sm:$0xf] }
 0x4b9   :  { %v7309_v58 = vpop.permute.xlu0 %7308 }
 0x4ba   :  { %v7311_v5 = vunpack.i.h.bf16 %v7309_v58  ;;  %v7310_v42 = vunpack.i.l.bf16 %v7309_v58 }
 0x4bc   :  { %v2483_v16 = vsel %vm2469_vm7, %v2479_v0, %v7311_v5  ;;  %v2482_v51 = vsel %vm2469_vm7, %v2478_v35, %v7310_v42  ;;  %v7480_v42 = vld [vmem:[#allocation2 + $0x10] sm:$0xff]  ;;  %v7481_v35 = vld [vmem:[#allocation2 + $0x18] sm:$0xff] }
 0x4bd   :  { %v2487_v22 = vpack.c.bf16 %v2483_v16, %v2482_v51 }
 0x4bf   :  { %2715 = vmatmul.bf16.vlgmr.msrb.gmra.mxu1 %v2487_v22  ;;  %2753 = vmatmul.bf16.vlgmr.msrb.gmra.mxu3 %v2487_v22 }
 0x4c0   :  { %v2697_v54 = vpop.f32.mrf.mxu0 }
 0x4c1   :  { %v7314_v59 = vpop.permute.xlu0 %7313  ;;  %v2698_v3 = vadd.f32 %v2697_v54, %v2524_v45 }
 0x4c2   :  { %v7316_v4 = vunpack.i.h.bf16 %v7314_v59  ;;  %v7315_v14 = vunpack.i.l.bf16 %v7314_v59  ;;  %v7483_v59 = vld [vmem:[#allocation2 + $0x28] sm:$0xff] }
 0x4c4   :  { %v2472_v24 = vsel %vm2469_vm7, %v2467_v32, %v7315_v14  ;;  %v2473_v38 = vsel %vm2469_vm7, %v2468_v8, %v7316_v4 }
 0x4c5   :  { %v2488_v36 = vpack.c.bf16 %v2473_v38, %v2472_v24 }
 0x4c6   :  { %v2735_v15 = vpop.f32.mrf.mxu2 }
 0x4c7   :  { %2701 = vmatmul.bf16.gmra.mxu0 %v2488_v36  ;;  %2739 = vmatmul.bf16.gmra.mxu2 %v2488_v36  ;;  %v2736_v48 = vadd.f32 %v2735_v15, %v2525_v62  ;;  %v7484_v36 = vld [vmem:[#allocation2 + $0x30] sm:$0xff] }
 0x4c8   :  { %v2699_v23 = vpop.f32.mrf.mxu0 }
 0x4c9   :  { %v2700_v49 = vadd.f32 %v2699_v23, %v2524_v45 }
 0x4ca   :  { %v7329_v26 = vpop.permute.xlu0 %7328 }
 0x4cb   :  { %v7331_v31 = vunpack.i.h.bf16 %v7329_v26  ;;  %v7330_v37 = vunpack.i.l.bf16 %v7329_v26  ;;  %v7461_v26 = vpop.eup %7460 }
 0x4cc   :  { %vm2791_vm8 = vweird.f32 %v7461_v26 }
 0x4cd   :  { %v2484_v40 = vsel %vm2469_vm7, %v2480_v57, %v7330_v37  ;;  %v2485_v28 = vsel %vm2469_vm7, %v2481_v44, %v7331_v31  ;;  %v2787_v31 = vmul.f32 256.0, %v7461_v26 }
 0x4ce   :  { %v2489_v52 = vpack.c.bf16 %v2485_v28, %v2484_v40  ;;  %v2737_v46 = vpop.f32.mrf.mxu2 }
 0x4cf   :  { %v2738_v13 = vadd.f32 %v2737_v46, %v2525_v62  ;;  %v2788_v37 = vsub.f32 1.0, %v2787_v31 }
 0x4d0   :  { %2720 = vmatmul.bf16.gmra.mxu1 %v2489_v52  ;;  %2758 = vmatmul.bf16.gmra.mxu3 %v2489_v52 }
 0x4d1   :  { %v2789_v57 = vmul.f32 %v7461_v26, %v2788_v37 }
 0x4d3   :  { %v2790_v44 = vadd.f32 %v7461_v26, %v2789_v57  ;;  %v7096_v57 = vld [vmem:[#allocation19 + $0x344] sm:$0xf] }
 0x4d5   :  { %v8645_v40 = vsel %vm2791_vm8, %v7461_v26, %v2790_v44  ;;  %v6004_v26 = vld [vmem:[#allocation19 + $0x160] sm:$0xf0] }
 0x4d6   :  { %v6007_v37 = vor.u32 %v7032_v47, %v6004_v26  ;;  %v6260_v44 = vld [vmem:[#allocation19 + $0x360] sm:$0xf0] }
 0x4d7   :  { %v6132_v47 = vld [vmem:[#allocation19 + $0x260] sm:$0xf0] }
 0x53c   :  { %v2716_v63 = vpop.f32.mrf.mxu1 }
 0x53d   :  { %v2717_v50 = vadd.f32 %v2716_v63, %v2698_v3 }
 0x53f   :  { %v2764_v60 = vadd.f32 %v7478_v10, %v2717_v50 }
 0x542   :  { %v2754_v29 = vpop.f32.mrf.mxu3 }
 0x543   :  { %v2755_v20 = vadd.f32 %v2754_v29, %v2736_v48 }
 0x544   :  { %v2718_v2 = vpop.f32.mrf.mxu1  ;;  %v2702_v58 = vpop.f32.mrf.mxu0 }
 0x545   :  { %v2765_v17 = vadd.f32 %v7479_v25, %v2755_v20  ;;  %v2719_v56 = vadd.f32 %v2718_v2, %v2700_v49  ;;  %v2703_v16 = vadd.f32 %v2702_v58, %v2524_v45 }
 0x547   :  { %v2774_v43 = vadd.f32 %v2765_v17, %v2764_v60  ;;  %v2766_v0 = vadd.f32 %v7480_v42, %v2719_v56  ;;  %v7052_v42 = vld [vmem:[#allocation19 + $0x1dc] sm:$0xf0] }
 0x549   :  { %2775 = vadd.xlane.f32.xlu1 %v2774_v43 }
 0x54a   :  { %v2756_v39 = vpop.f32.mrf.mxu3  ;;  %v2740_v53 = vpop.f32.mrf.mxu2 }
 0x54b   :  { %v2757_v12 = vadd.f32 %v2756_v39, %v2738_v13  ;;  %v2741_v51 = vadd.f32 %v2740_v53, %v2525_v62 }
 0x54c   :  { %v2704_v18 = vpop.f32.mrf.mxu0 }
 0x54d   :  { %v2721_v5 = vpop.f32.mrf.mxu1  ;;  %v2767_v11 = vadd.f32 %v7481_v35, %v2757_v12  ;;  %v2705_v32 = vadd.f32 %v2704_v18, %v2524_v45 }
 0x54e   :  { %v2722_v22 = vadd.f32 %v2721_v5, %v2703_v16  ;;  %v6066_v5 = vld [vmem:[#allocation19 + $0x1c0] sm:$0xf]  ;;  %v6068_v16 = vld [vmem:[#allocation19 + $0x1e0] sm:$0xf0] }
 0x54f   :  { %v2777_v27 = vadd.f32 %v2767_v11, %v2766_v0  ;;  %v6067_v35 = vor.u32 %v7052_v42, %v6066_v5 }
 0x550   :  { %v2768_v9 = vadd.f32 %v7482_v33, %v2722_v22  ;;  %v6034_v33 = vld [vmem:[#allocation19 + $0x180] sm:$0xf] }
 0x551   :  { %2778 = vadd.xlane.f32.xlu2 %v2777_v27  ;;  %v7048_v27 = vld [vmem:[#allocation19 + $0x1c4] sm:$0xf]  ;;  %3697 = vmatpush.bf16.msra.mxu0 %v6067_v35 }
 0x552   :  { %v2742_v4 = vpop.f32.mrf.mxu2  ;;  %v6071_v22 = vor.u32 %v7048_v27, %v6068_v16  ;;  %v6196_v35 = vld [vmem:[#allocation19 + $0x2e0] sm:$0xf0]  ;;  %v5906_v27 = vld [vmem:[#allocation19 + $0x80] sm:$0xf] }
 0x553   :  { %v2759_v30 = vpop.f32.mrf.mxu3  ;;  %v2743_v24 = vadd.f32 %v2742_v4, %v2525_v62  ;;  %v7108_v4 = vld [vmem:[#allocation19 + $0x39c] sm:$0xf0] }
 0x554   :  { %v2760_v21 = vadd.f32 %v2759_v30, %v2741_v51  ;;  %v7112_v30 = vld [vmem:[#allocation19 + $0x3c4] sm:$0xf]  ;;  %3735 = vmatpush.bf16.msra.mxu2 %v6071_v22  ;;  %v7012_v16 = vld [vmem:[#allocation19 + $0x9c] sm:$0xf0] }
 0x555   :  { %v2723_v14 = vpop.f32.mrf.mxu1  ;;  %v5907_v22 = vor.u32 %v7012_v16, %v5906_v27 }
 0x556   :  { %v2769_v61 = vadd.f32 %v7483_v59, %v2760_v21  ;;  %v2724_v38 = vadd.f32 %v2723_v14, %v2705_v32  ;;  %v6324_v21 = vld [vmem:[#allocation19 + $0x3e0] sm:$0xf0]  ;;  %v6290_v59 = vld [vmem:[#allocation19 + $0x380] sm:$0xf] }
 0x557   :  { %v6327_v18 = vor.u32 %v7112_v30, %v6324_v21  ;;  %v7040_v14 = vld [vmem:[#allocation19 + $0x184] sm:$0xf]  ;;  %v7076_v30 = vld [vmem:[#allocation19 + $0x29c] sm:$0xf0] }
 0x558   :  { %v2780_v8 = vadd.f32 %v2769_v61, %v2768_v9  ;;  %v2770_v34 = vadd.f32 %v7484_v36, %v2724_v38  ;;  %v6036_v32 = vld [vmem:[#allocation19 + $0x1a0] sm:$0xf0]  ;;  %v6002_v36 = vld [vmem:[#allocation19 + $0x140] sm:$0xf] }
 0x559   :  { %3754 = vmatpush.bf16.msra.mxu3 %v6327_v18  ;;  %v7104_v38 = vld [vmem:[#allocation19 + $0x384] sm:$0xf] }
 0x55a   :  { %2781 = vadd.xlane.f32.xlu0 %v2780_v8  ;;  %v6291_v8 = vor.u32 %v7108_v4, %v6290_v59  ;;  %v7008_v21 = vld [vmem:[#allocation19 + $0x84] sm:$0xf] }
 0x55b   :  { %v2761_v6 = vpop.f32.mrf.mxu3  ;;  %v5908_v18 = vld [vmem:[#allocation19 + $0xa0] sm:$0xf0] }
 0x55c   :  { %v2762_v7 = vadd.f32 %v2761_v6, %v2743_v24  ;;  %v6039_v24 = vor.u32 %v7040_v14, %v6036_v32  ;;  %v6292_v6 = vld [vmem:[#allocation19 + $0x3a0] sm:$0xf0]  ;;  %v5874_v32 = vld [vmem:[#allocation19 + $0x40] sm:$0xf] }
 0x55d   :  { %v7072_v59 = vld [vmem:[#allocation19 + $0x284] sm:$0xf] }
 0x55e   :  { %v2771_v1 = vadd.f32 %v7485_v19, %v2762_v7  ;;  %v6295_v7 = vor.u32 %v7104_v38, %v6292_v6  ;;  %3736 = vmatpush.bf16.msra.mxu2 %v6039_v24  ;;  %v6258_v19 = vld [vmem:[#allocation19 + $0x340] sm:$0xf] }
 0x55f   :  { %v6130_v24 = vld [vmem:[#allocation19 + $0x240] sm:$0xf] }
 0x560   :  { %v2783_v55 = vadd.f32 %v2771_v1, %v2770_v34  ;;  %3755 = vmatpush.bf16.msra.mxu3 %v6295_v7  ;;  %v7068_v7 = vld [vmem:[#allocation19 + $0x25c] sm:$0xf0] }
 0x562   :  { %2784 = vadd.xlane.f32.xlu2 %v2783_v55  ;;  %v7100_v55 = vld [vmem:[#allocation19 + $0x35c] sm:$0xf0]  ;;  %3737 = vmatpush.bf16.msra.mxu2 %v6007_v37 }
 0x563   :  { %v6259_v31 = vor.u32 %v7100_v55, %v6258_v19  ;;  %v6131_v19 = vor.u32 %v7068_v7, %v6130_v24  ;;  %v7064_v55 = vld [vmem:[#allocation19 + $0x244] sm:$0xf]  ;;  %v5842_v37 = vld [vmem:[#allocation19] sm:$0xf] }
 0x5bc   :  { %v2776_v28 = vpop.xlane.xlu1 %2775 }
 0x5bd   :  { %v2793_v52 = vmul.f32 %v8645_v40, %v2776_v28  ;;  %v6263_v28 = vor.u32 %v7096_v57, %v6260_v44  ;;  %v6996_v57 = vld [vmem:[#allocation19 + $0x1c] sm:$0xf0] }
 0x5be   :  { %v6098_v44 = vld [vmem:[#allocation19 + $0x200] sm:$0xf] }
 0x5bf   :  { %v8648_v41 = vsub.f32 %v2764_v60, %v2793_v52  ;;  %v8650_v54 = vsub.f32 %v2765_v17, %v2793_v52  ;;  %v5970_v52 = vld [vmem:[#allocation19 + $0x100] sm:$0xf]  ;;  %3756 = vmatpush.bf16.msra.mxu3 %v6263_v28  ;;  %v5843_v28 = vor.u32 %v6996_v57, %v5842_v37  ;;  %v7101_v37 = vld [vmem:[#allocation19 + $0x364] sm:$0xf0]  ;;  %v7033_v57 = vld [vmem:[#allocation19 + $0x14c] sm:$0xf] }
 0x5c1   :  { %v2805_v45 = vmul.f32 %v8648_v41, %v8648_v41  ;;  %v2806_v15 = vmul.f32 %v8650_v54, %v8650_v54 }
 0x5c3   :  { %v2813_v63 = vadd.f32 %v2806_v15, %v2805_v45  ;;  %v7028_v45 = vld [vmem:[#allocation19 + $0x11c] sm:$0xf0] }
 0x5c4   :  { %v2779_v62 = vpop.xlane.xlu2 %2778  ;;  %v6226_v15 = vld [vmem:[#allocation19 + $0x300] sm:$0xf] }
 0x5c5   :  { %v2794_v3 = vmul.f32 %v8645_v40, %v2779_v62  ;;  %2814 = vadd.xlane.f32.xlu1 %v2813_v63  ;;  %v5971_v63 = vor.u32 %v7028_v45, %v5970_v52  ;;  %v7092_v62 = vld [vmem:[#allocation19 + $0x31c] sm:$0xf0]  ;;  %v6992_v45 = vld [vmem:[#allocation19 + $0x4] sm:$0xf] }
 0x5c6   :  { %v7060_v52 = vld [vmem:[#allocation19 + $0x21c] sm:$0xf0] }
 0x5c7   :  { %v8657_v48 = vsub.f32 %v2766_v0, %v2794_v3  ;;  %v8659_v50 = vsub.f32 %v2767_v11, %v2794_v3  ;;  %v6322_v0 = vld [vmem:[#allocation19 + $0x3c0] sm:$0xf]  ;;  %v7024_v3 = vld [vmem:[#allocation19 + $0x104] sm:$0xf] }
 0x5c8   :  { %v7116_v11 = vld [vmem:[#allocation19 + $0x3dc] sm:$0xf0] }
 0x5c9   :  { %v2807_v29 = vmul.f32 %v8657_v48, %v8657_v48  ;;  %v2808_v23 = vmul.f32 %v8659_v50, %v8659_v50  ;;  %v6323_v51 = vor.u32 %v7116_v11, %v6322_v0  ;;  %v7080_v0 = vld [vmem:[#allocation19 + $0x2c4] sm:$0xf] }
 0x5ca   :  { %v6199_v11 = vor.u32 %v7080_v0, %v6196_v35  ;;  %v7113_v35 = vld [vmem:[#allocation19 + $0x3cc] sm:$0xf] }
 0x5cb   :  { %v2816_v20 = vadd.f32 %v2808_v23, %v2807_v29  ;;  %3716 = vmatpush.bf16.msra.mxu1 %v6323_v51  ;;  %v5972_v29 = vld [vmem:[#allocation19 + $0x120] sm:$0xf0]  ;;  %v6227_v23 = vor.u32 %v7092_v62, %v6226_v15  ;;  %v6162_v51 = vld [vmem:[#allocation19 + $0x280] sm:$0xf] }
 0x5cc   :  { %v5844_v15 = vld [vmem:[#allocation19 + $0x20] sm:$0xf0] }
 0x5cd   :  { %v2782_v2 = vpop.xlane.xlu0 %2781  ;;  %2817 = vadd.xlane.f32.xlu0 %v2816_v20  ;;  %v5975_v20 = vor.u32 %v7024_v3, %v5972_v29  ;;  %v5847_v62 = vor.u32 %v6992_v45, %v5844_v15  ;;  %v7056_v3 = vld [vmem:[#allocation19 + $0x204] sm:$0xf]  ;;  %v7097_v45 = vld [vmem:[#allocation19 + $0x34c] sm:$0xf] }
 0x5ce   :  { %v2795_v46 = vmul.f32 %v8645_v40, %v2782_v2  ;;  %v7088_v2 = vld [vmem:[#allocation19 + $0x304] sm:$0xf]  ;;  %v6268_v15 = vld [vmem:[#allocation19 + $0x368] sm:$0xf0] }
 0x5cf   :  { %3717 = vmatpush.bf16.msra.mxu1 %v6291_v8  ;;  %3738 = vmatpush.bf16.msra.mxu2 %v5975_v20  ;;  %v7004_v8 = vld [vmem:[#allocation19 + $0x5c] sm:$0xf0]  ;;  %v6100_v29 = vld [vmem:[#allocation19 + $0x220] sm:$0xf0]  ;;  %v2772_v20 = vld [vmem:[#allocation16] sm:$0x3] }
 0x5d0   :  { %v8666_v10 = vsub.f32 %v2768_v9, %v2795_v46  ;;  %v8668_v60 = vsub.f32 %v2769_v61, %v2795_v46  ;;  %v7044_v9 = vld [vmem:[#allocation19 + $0x19c] sm:$0xf0]  ;;  %v6228_v46 = vld [vmem:[#allocation19 + $0x320] sm:$0xf0]  ;;  %v5875_v6 = vor.u32 %v7004_v8, %v5874_v32  ;;  %v6300_v32 = vld [vmem:[#allocation19 + $0x3a8] sm:$0xf0] }
 0x5d1   :  { %v6035_v61 = vor.u32 %v7044_v9, %v6034_v33  ;;  %v6163_v33 = vor.u32 %v7076_v30, %v6162_v51  ;;  %v5911_v9 = vor.u32 %v7008_v21, %v5908_v18  ;;  %v8694_v51 = vperm.slane %v2772_v20, 0  ;;  %v7045_v30 = vld [vmem:[#allocation19 + $0x1a4] sm:$0xf0]  ;;  %v2773_v8 = vld [vmem:[#allocation17] sm:$0x3] }
 0x5d2   :  { %v2809_v25 = vmul.f32 %v8666_v10, %v8666_v10  ;;  %v2810_v17 = vmul.f32 %v8668_v60, %v8668_v60  ;;  %v8698_v24 = vperm.slane %v2772_v20, 1 }
 0x5d3   :  { %3698 = vmatpush.bf16.msra.mxu0 %v6035_v61  ;;  %3718 = vmatpush.bf16.msra.mxu1 %v6259_v31  ;;  %v6164_v61 = vld [vmem:[#allocation19 + $0x2a0] sm:$0xf0]  ;;  %v6135_v31 = vor.u32 %v7064_v55, %v6132_v47 }
 0x5d4   :  { %v2819_v49 = vadd.f32 %v2810_v17, %v2809_v25  ;;  %v6231_v25 = vor.u32 %v7088_v2, %v6228_v46  ;;  %v5938_v17 = vld [vmem:[#allocation19 + $0xc0] sm:$0xf]  ;;  %v6167_v4 = vor.u32 %v7072_v59, %v6164_v61  ;;  %v7041_v59 = vld [vmem:[#allocation19 + $0x18c] sm:$0xf] }
 0x5d5   :  { %v2785_v43 = vpop.xlane.xlu2 %2784 }
 0x5d6   :  { %v2796_v13 = vmul.f32 %v8645_v40, %v2785_v43  ;;  %2820 = vadd.xlane.f32.xlu2 %v2819_v49  ;;  %v7020_v49 = vld [vmem:[#allocation19 + $0xdc] sm:$0xf0]  ;;  %3757 = vmatpush.bf16.msra.mxu3 %v6231_v25  ;;  %v6074_v25 = vld [vmem:[#allocation19 + $0x1c8] sm:$0xf] }
 0x5d7   :  { %3719 = vmatpush.bf16.msra.mxu1 %v6227_v23  ;;  %v6194_v43 = vld [vmem:[#allocation19 + $0x2c0] sm:$0xf]  ;;  %v6103_v23 = vor.u32 %v7056_v3, %v6100_v29  ;;  %v8710_v29 = vperm.slane %v2773_v8, 0 }
 0x5d8   :  { %v8675_v56 = vsub.f32 %v2770_v34, %v2796_v13  ;;  %v8677_v39 = vsub.f32 %v2771_v1, %v2796_v13  ;;  %v7036_v34 = vld [vmem:[#allocation19 + $0x15c] sm:$0xf0]  ;;  %v5939_v13 = vor.u32 %v7020_v49, %v5938_v17  ;;  %v7053_v17 = vld [vmem:[#allocation19 + $0x1e4] sm:$0xf0] }
 0x5d9   :  { %v6003_v1 = vor.u32 %v7036_v34, %v6002_v36  ;;  %v7000_v36 = vld [vmem:[#allocation19 + $0x44] sm:$0xf]  ;;  %v6330_v49 = vld [vmem:[#allocation19 + $0x3c8] sm:$0xf] }
 0x5da   :  { %v2811_v58 = vmul.f32 %v8675_v56, %v8675_v56  ;;  %v2812_v12 = vmul.f32 %v8677_v39, %v8677_v39  ;;  %3758 = vmatpush.bf16.msra.mxu3 %v6199_v11  ;;  %v5876_v34 = vld [vmem:[#allocation19 + $0x60] sm:$0xf0]  ;;  %v6332_v11 = vld [vmem:[#allocation19 + $0x3e8] sm:$0xf0] }
 0x5db   :  { %3699 = vmatpush.bf16.msra.mxu0 %v6003_v1  ;;  %v5879_v1 = vor.u32 %v7000_v36, %v5876_v34  ;;  %v6335_v16 = vor.u32 %v7113_v35, %v6332_v11  ;;  %v6010_v34 = vld [vmem:[#allocation19 + $0x148] sm:$0xf] }
 0x5dc   :  { %v2822_v53 = vadd.f32 %v2812_v12, %v2811_v58  ;;  %v7084_v58 = vld [vmem:[#allocation19 + $0x2dc] sm:$0xf0]  ;;  %v7016_v12 = vld [vmem:[#allocation19 + $0xc4] sm:$0xf] }
 0x5dd   :  { %v6195_v5 = vor.u32 %v7084_v58, %v6194_v43  ;;  %v6075_v43 = vor.u32 %v7053_v17, %v6074_v25  ;;  %v7049_v58 = vld [vmem:[#allocation19 + $0x1cc] sm:$0xf]  ;;  %v7029_v25 = vld [vmem:[#allocation19 + $0x124] sm:$0xf0] }
 0x5de   :  { %2823 = vadd.xlane.f32.xlu1 %v2822_v53  ;;  %v5940_v53 = vld [vmem:[#allocation19 + $0xe0] sm:$0xf0]  ;;  %3759 = vmatpush.bf16.msra.mxu3 %v6167_v4  ;;  %v6044_v4 = vld [vmem:[#allocation19 + $0x1a8] sm:$0xf0] }
 0x5df   :  { %3700 = vmatpush.bf16.msra.mxu0 %v5971_v63  ;;  %v5943_v42 = vor.u32 %v7016_v12, %v5940_v53  ;;  %3720 = vmatpush.bf16.msra.mxu1 %v6195_v5  ;;  %v6099_v63 = vor.u32 %v7060_v52, %v6098_v44  ;;  %v6076_v12 = vld [vmem:[#allocation19 + $0x1e8] sm:$0xf0] }
 0x5e0   :  { %v6079_v0 = vor.u32 %v7049_v58, %v6076_v12  ;;  %v6012_v52 = vld [vmem:[#allocation19 + $0x168] sm:$0xf0] }
 0x5e1   :  { %3739 = vmatpush.bf16.msra.mxu2 %v5943_v42  ;;  %v6015_v20 = vor.u32 %v7033_v57, %v6012_v52  ;;  %v5980_v12 = vld [vmem:[#allocation19 + $0x128] sm:$0xf0] }
 0x5e2   :  { %3760 = vmatpush.bf16.msra.mxu3 %v6135_v31  ;;  %v7009_v57 = vld [vmem:[#allocation19 + $0x8c] sm:$0xf] }
 0x5e3   :  { %3701 = vmatpush.bf16.msra.mxu0 %v5939_v13  ;;  %3721 = vmatpush.bf16.msra.mxu1 %v6163_v33  ;;  %v7117_v13 = vld [vmem:[#allocation19 + $0x3e4] sm:$0xf0] }
 0x5e4   :  { %v6331_v42 = vor.u32 %v7117_v13, %v6330_v49  ;;  %v6298_v33 = vld [vmem:[#allocation19 + $0x388] sm:$0xf]  ;;  %v7025_v13 = vld [vmem:[#allocation19 + $0x10c] sm:$0xf] }
 0x5e5   :  { %3740 = vmatpush.bf16.msra.mxu2 %v5911_v9  ;;  %v7109_v9 = vld [vmem:[#allocation19 + $0x3a4] sm:$0xf0] }
 0x5e6   :  { %3761 = vmatpush.bf16.msra.mxu3 %v6103_v23  ;;  %v6299_v61 = vor.u32 %v7109_v9, %v6298_v33  ;;  %v8712_v23 = vperm.slane %v2773_v8, 1  ;;  %v6234_v49 = vld [vmem:[#allocation19 + $0x308] sm:$0xf]  ;;  %v7081_v8 = vld [vmem:[#allocation19 + $0x2cc] sm:$0xf] }
 0x5e7   :  { %3702 = vmatpush.bf16.msra.mxu0 %v5907_v22  ;;  %3722 = vmatpush.bf16.msra.mxu1 %v6131_v19  ;;  %v6042_v22 = vld [vmem:[#allocation19 + $0x188] sm:$0xf] }
 0x5e8   :  { %v6043_v18 = vor.u32 %v7045_v30, %v6042_v22  ;;  %v7037_v19 = vld [vmem:[#allocation19 + $0x164] sm:$0xf0] }
 0x5e9   :  { %3741 = vmatpush.bf16.msra.mxu2 %v5879_v1  ;;  %v6266_v1 = vld [vmem:[#allocation19 + $0x348] sm:$0xf]  ;;  %v6011_v31 = vor.u32 %v7037_v19, %v6010_v34 }
 0x5ea   :  { %3830 = vmatpush.bf16.msrb.mxu3 %v6335_v16  ;;  %v5946_v30 = vld [vmem:[#allocation19 + $0xc8] sm:$0xf] }
 0x5eb   :  { %3703 = vmatpush.bf16.msra.mxu0 %v5875_v6  ;;  %3723 = vmatpush.bf16.msra.mxu1 %v6099_v63  ;;  %v6047_v6 = vor.u32 %v7041_v59, %v6044_v4  ;;  %v7085_v4 = vld [vmem:[#allocation19 + $0x2e4] sm:$0xf0] }
 0x5ec   :  { %v5914_v19 = vld [vmem:[#allocation19 + $0x88] sm:$0xf] }
 0x5ed   :  { %3742 = vmatpush.bf16.msra.mxu2 %v5847_v62 }
 0x5ef   :  { %3704 = vmatpush.bf16.msra.mxu0 %v5843_v28  ;;  %3792 = vmatpush.bf16.msrb.mxu1 %v6331_v42  ;;  %v6267_v28 = vor.u32 %v7101_v37, %v6266_v1  ;;  %v7089_v42 = vld [vmem:[#allocation19 + $0x30c] sm:$0xf]  ;;  %v7013_v1 = vld [vmem:[#allocation19 + $0xa4] sm:$0xf0] }
 0x5f0   :  { %v7077_v37 = vld [vmem:[#allocation19 + $0x2a4] sm:$0xf0] }
 0x5f1   :  { %3811 = vmatpush.bf16.msrb.mxu2 %v6079_v0  ;;  %v6236_v0 = vld [vmem:[#allocation19 + $0x328] sm:$0xf0] }
 0x5f2   :  { %v6239_v16 = vor.u32 %v7089_v42, %v6236_v0  ;;  %v7065_v0 = vld [vmem:[#allocation19 + $0x24c] sm:$0xf] }
 0x5f3   :  { %3773 = vmatpush.bf16.msrb.mxu0 %v6075_v43  ;;  %3793 = vmatpush.bf16.msrb.mxu1 %v6299_v61  ;;  %v7093_v43 = vld [vmem:[#allocation19 + $0x324] sm:$0xf0] }
 0x5f4   :  { %v6235_v11 = vor.u32 %v7093_v43, %v6234_v49  ;;  %v7069_v43 = vld [vmem:[#allocation19 + $0x264] sm:$0xf0] }
 0x5f5   :  { %3812 = vmatpush.bf16.msrb.mxu2 %v6047_v6 }
 0x5f7   :  { %3774 = vmatpush.bf16.msrb.mxu0 %v6043_v18  ;;  %3794 = vmatpush.bf16.msrb.mxu1 %v6267_v28  ;;  %v6202_v18 = vld [vmem:[#allocation19 + $0x2c8] sm:$0xf] }
 0x5f9   :  { %3813 = vmatpush.bf16.msrb.mxu2 %v6015_v20 }
 0x5fb   :  { %3775 = vmatpush.bf16.msrb.mxu0 %v6011_v31  ;;  %3795 = vmatpush.bf16.msrb.mxu1 %v6235_v11  ;;  %v6170_v31 = vld [vmem:[#allocation19 + $0x288] sm:$0xf] }
 0x638   :  { %v2815_v14 = vpop.xlane.xlu1 %2814 }
 0x639   :  { %v2825_v38 = vmul.f32 %v2815_v14, %v8645_v40  ;;  %v7105_v14 = vld [vmem:[#allocation19 + $0x38c] sm:$0xf] }
 0x63a   :  { %v6303_v7 = vor.u32 %v7105_v14, %v6300_v32  ;;  %v7017_v14 = vld [vmem:[#allocation19 + $0xcc] sm:$0xf] }
 0x63b   :  { %v8684_v26 = vadd.f32 1e-05, %v2825_v38  ;;  %v5948_v32 = vld [vmem:[#allocation19 + $0xe8] sm:$0xf0] }
 0x63c   :  { %3831 = vmatpush.bf16.msrb.mxu3 %v6303_v7 }
 0x63d   :  { %7462 = vrsqrt.f32 %v8684_v26  ;;  %vm2839_vm10 = vweird.f32 %v8684_v26 }
 0x640   :  { %v2818_v2 = vpop.xlane.xlu0 %2817 }
 0x641   :  { %v2826_v46 = vmul.f32 %v2818_v2, %v8645_v40  ;;  %v6271_v2 = vor.u32 %v7097_v45, %v6268_v15  ;;  %v6171_v45 = vor.u32 %v7077_v37, %v6170_v31  ;;  %v5916_v15 = vld [vmem:[#allocation19 + $0xa8] sm:$0xf0]  ;;  %v6082_v37 = vld [vmem:[#allocation19 + $0x1d0] sm:$0xf] }
 0x643   :  { %v8688_v53 = vpop.eup %7462  ;;  %v8690_v5 = vadd.f32 1e-05, %v2826_v46  ;;  %v5978_v46 = vld [vmem:[#allocation19 + $0x108] sm:$0xf]  ;;  %3832 = vmatpush.bf16.msrb.mxu3 %v6271_v2 }
 0x644   :  { %v2834_v27 = vmul.f32 %v8688_v53, %v8684_v26  ;;  %vm2840_vm9 = vweird.f32 %v8688_v53  ;;  %v5979_v58 = vor.u32 %v7029_v25, %v5978_v46  ;;  %v6172_v46 = vld [vmem:[#allocation19 + $0x2a8] sm:$0xf0]  ;;  %v5882_v25 = vld [vmem:[#allocation19 + $0x48] sm:$0xf] }
 0x645   :  { %7464 = vrsqrt.f32 %v8690_v5  ;;  %vm2841_vm11 = vmor %vm2839_vm10, %vm2840_vm9  ;;  %vm2849_vm13 = vweird.f32 %v8690_v5 }
 0x646   :  { %v2835_v21 = vmul.f32 %v8688_v53, %v2834_v27  ;;  %v5983_v27 = vor.u32 %v7025_v13, %v5980_v12  ;;  %3776 = vmatpush.bf16.msrb.mxu0 %v5979_v58  ;;  %v7001_v13 = vld [vmem:[#allocation19 + $0x4c] sm:$0xf] }
 0x647   :  { %3833 = vmatpush.bf16.msrb.mxu3 %v6239_v16  ;;  %v5850_v16 = vld [vmem:[#allocation19 + $0x8] sm:$0xf] }
 0x648   :  { %v2836_v38 = vmul.f32 0.5, %v2835_v21  ;;  %v7021_v21 = vld [vmem:[#allocation19 + $0xe4] sm:$0xf0]  ;;  %3814 = vmatpush.bf16.msrb.mxu2 %v5983_v27  ;;  %v6140_v27 = vld [vmem:[#allocation19 + $0x268] sm:$0xf0] }
 0x649   :  { %v2821_v36 = vpop.xlane.xlu2 %2820  ;;  %v5947_v61 = vor.u32 %v7021_v21, %v5946_v30 }
 0x64a   :  { %v2837_v55 = vsub.f32 1.5, %v2836_v38  ;;  %v2827_v47 = vmul.f32 %v2821_v36, %v8645_v40  ;;  %v6204_v38 = vld [vmem:[#allocation19 + $0x2e8] sm:$0xf0]  ;;  %v5951_v36 = vor.u32 %v7017_v14, %v5948_v32 }
 0x64b   :  { %v8702_v44 = vpop.eup %7464  ;;  %v6207_v34 = vor.u32 %v7081_v8, %v6204_v38  ;;  %3777 = vmatpush.bf16.msrb.mxu0 %v5947_v61  ;;  %v6993_v38 = vld [vmem:[#allocation19 + $0xc] sm:$0xf] }
 0x64c   :  { %v2838_v63 = vmul.f32 %v8688_v53, %v2837_v55  ;;  %v2844_v62 = vmul.f32 %v8702_v44, %v8690_v5  ;;  %v8708_v3 = vadd.f32 1e-05, %v2827_v47  ;;  %vm2850_vm12 = vweird.f32 %v8702_v44  ;;  %3815 = vmatpush.bf16.msrb.mxu2 %v5951_v36 }
 0x64d   :  { %vm2851_vm14 = vmor %vm2849_vm13, %vm2850_vm12  ;;  %v5915_v47 = vor.u32 %v7013_v1, %v5914_v19  ;;  %3834 = vmatpush.bf16.msrb.mxu3 %v6207_v34  ;;  %v5852_v34 = vld [vmem:[#allocation19 + $0x28] sm:$0xf0] }
 0x64e   :  { %v2842_v26 = vsel %vm2841_vm11, %v8688_v53, %v2838_v63  ;;  %v2845_v17 = vmul.f32 %v8702_v44, %v2844_v62  ;;  %7466 = vrsqrt.f32 %v8708_v3  ;;  %v7073_v63 = vld [vmem:[#allocation19 + $0x28c] sm:$0xf]  ;;  %vm2859_vm0 = vweird.f32 %v8708_v3 }
 0x64f   :  { %v2873_v22 = vmul.f32 %v2842_v26, %v8648_v41  ;;  %v2874_v33 = vmul.f32 %v2842_v26, %v8650_v54  ;;  %v6203_v41 = vor.u32 %v7085_v4, %v6202_v18  ;;  %v7005_v26 = vld [vmem:[#allocation19 + $0x64] sm:$0xf0]  ;;  %v6175_v49 = vor.u32 %v7073_v63, %v6172_v46  ;;  %3778 = vmatpush.bf16.msrb.mxu0 %v5915_v47  ;;  %v7057_v19 = vld [vmem:[#allocation19 + $0x20c] sm:$0xf]  ;;  %v7114_v46 = vld [vmem:[#allocation19 + $0x3d4] sm:$0xf] }
 0x650   :  { %v2846_v35 = vmul.f32 0.5, %v2845_v17  ;;  %v5919_v17 = vor.u32 %v7009_v57, %v5916_v15  ;;  %v6143_v4 = vor.u32 %v7065_v0, %v6140_v27  ;;  %v6108_v1 = vld [vmem:[#allocation19 + $0x228] sm:$0xf0]  ;;  %v5855_v47 = vor.u32 %v6993_v38, %v5852_v34  ;;  %v7054_v57 = vld [vmem:[#allocation19 + $0x1ec] sm:$0xf0] }
 0x651   :  { %v2824_v53 = vpop.xlane.xlu1 %2823  ;;  %v2886_v5 = vmul.f32 %v8694_v51, %v2873_v22  ;;  %v2887_v28 = vmul.f32 %v8698_v24, %v2874_v33  ;;  %3796 = vmatpush.bf16.msrb.mxu1 %v6203_v41  ;;  %v6997_v22 = vld [vmem:[#allocation19 + $0x24] sm:$0xf0]  ;;  %3835 = vmatpush.bf16.msrb.mxu3 %v6175_v49  ;;  %v6111_v31 = vor.u32 %v7057_v19, %v6108_v1  ;;  %v7046_v49 = vld [vmem:[#allocation19 + $0x1ac] sm:$0xf0]  ;;  %v7034_v38 = vld [vmem:[#allocation19 + $0x154] sm:$0xf] }
 0x652   :  { %v2847_v9 = vsub.f32 1.5, %v2846_v35  ;;  %v2828_v59 = vmul.f32 %v2824_v53, %v8645_v40  ;;  %3816 = vmatpush.bf16.msrb.mxu2 %v5919_v17  ;;  %v6106_v33 = vld [vmem:[#allocation19 + $0x208] sm:$0xf]  ;;  %v6050_v17 = vld [vmem:[#allocation19 + $0x190] sm:$0xf] }
 0x653   :  { %v8743_v35 = vadd.f32 %v8710_v29, %v2886_v5  ;;  %v8746_v53 = vadd.f32 %v8712_v23, %v2887_v28  ;;  %v6083_v28 = vor.u32 %v7054_v57, %v6082_v37  ;;  %v7098_v34 = vld [vmem:[#allocation19 + $0x354] sm:$0xf] }
 0x654   :  { %v8724_v6 = vpop.eup %7466  ;;  %v2848_v7 = vmul.f32 %v8702_v44, %v2847_v9  ;;  %v8729_v54 = vadd.f32 1e-05, %v2828_v59  ;;  %v7061_v9 = vld [vmem:[#allocation19 + $0x224] sm:$0xf0] }
 0x655   :  { %v2854_v55 = vmul.f32 %v8724_v6, %v8708_v3  ;;  %3797 = vmatpush.bf16.msrb.mxu1 %v6171_v45  ;;  %vm2860_vm15 = vweird.f32 %v8724_v6  ;;  %v6107_v36 = vor.u32 %v7061_v9, %v6106_v33  ;;  %3836 = vmatpush.bf16.msrb.mxu3 %v6143_v4  ;;  %v7050_v45 = vld [vmem:[#allocation19 + $0x1d4] sm:$0xf]  ;;  %v6274_v33 = vld [vmem:[#allocation19 + $0x350] sm:$0xf] }
 0x656   :  { %v2852_v52 = vsel %vm2851_vm14, %v8702_v44, %v2848_v7  ;;  %7468 = vrsqrt.f32 %v8729_v54  ;;  %v6138_v44 = vld [vmem:[#allocation19 + $0x248] sm:$0xf]  ;;  %v5851_v7 = vor.u32 %v6997_v22, %v5850_v16  ;;  %vm2861_vm1 = vmor %vm2859_vm0, %vm2860_vm15  ;;  %vm2869_vm3 = vweird.f32 %v8729_v54  ;;  %v6018_v22 = vld [vmem:[#allocation19 + $0x150] sm:$0xf] }
 0x657   :  { %v2875_v62 = vmul.f32 %v2852_v52, %v8657_v48  ;;  %v2876_v20 = vmul.f32 %v2852_v52, %v8659_v50  ;;  %v2855_v2 = vmul.f32 %v8724_v6, %v2854_v55  ;;  %v5883_v48 = vor.u32 %v7005_v26, %v5882_v25  ;;  %v5884_v50 = vld [vmem:[#allocation19 + $0x68] sm:$0xf0]  ;;  %v6338_v52 = vld [vmem:[#allocation19 + $0x3d0] sm:$0xf]  ;;  %v6340_v26 = vld [vmem:[#allocation19 + $0x3f0] sm:$0xf0] }
 0x658   :  { %v6139_v11 = vor.u32 %v7069_v43, %v6138_v44  ;;  %v5887_v61 = vor.u32 %v7001_v13, %v5884_v50  ;;  %v6051_v43 = vor.u32 %v7046_v49, %v6050_v17  ;;  %v6306_v13 = vld [vmem:[#allocation19 + $0x390] sm:$0xf]  ;;  %v7106_v50 = vld [vmem:[#allocation19 + $0x394] sm:$0xf] }
 0x659   :  { %v2888_v58 = vmul.f32 %v8694_v51, %v2875_v62  ;;  %v2889_v12 = vmul.f32 %v8698_v24, %v2876_v20  ;;  %v2856_v42 = vmul.f32 0.5, %v2855_v2  ;;  %3779 = vmatpush.bf16.msrb.mxu0 %v5883_v48  ;;  %v6084_v2 = vld [vmem:[#allocation19 + $0x1f0] sm:$0xf0]  ;;  %3837 = vmatpush.bf16.msrb.mxu3 %v6111_v31 }
 0x65a   :  { %3798 = vmatpush.bf16.msrb.mxu1 %v6139_v11  ;;  %3817 = vmatpush.bf16.msrb.mxu2 %v5887_v61  ;;  %v6087_v25 = vor.u32 %v7050_v45, %v6084_v2  ;;  %v6052_v48 = vld [vmem:[#allocation19 + $0x1b0] sm:$0xf0]  ;;  %v7022_v2 = vld [vmem:[#allocation19 + $0xec] sm:$0xf0] }
 0x65b   :  { %v8749_v30 = vadd.f32 %v8710_v29, %v2888_v58  ;;  %v8752_v21 = vadd.f32 %v8712_v23, %v2889_v12  ;;  %v2857_v18 = vsub.f32 1.5, %v2856_v42  ;;  %v7110_v58 = vld [vmem:[#allocation19 + $0x3ac] sm:$0xf0]  ;;  %v7042_v12 = vld [vmem:[#allocation19 + $0x194] sm:$0xf] }
 0x65c   :  { %v8754_v59 = vpop.eup %7468  ;;  %v6307_v42 = vor.u32 %v7110_v58, %v6306_v13  ;;  %v6055_v27 = vor.u32 %v7042_v12, %v6052_v48  ;;  %v7026_v31 = vld [vmem:[#allocation19 + $0x114] sm:$0xf]  ;;  %v5922_v13 = vld [vmem:[#allocation19 + $0x90] sm:$0xf] }
 0x65d   :  { %v8759_v14 = vpack.c.bf16 %v8749_v30, %v8743_v35  ;;  %v8763_v41 = vpack.c.bf16 %v8752_v21, %v8746_v53  ;;  %v2858_v32 = vmul.f32 %v8724_v6, %v2857_v18  ;;  %v2864_v8 = vmul.f32 %v8754_v59, %v8729_v54  ;;  %3780 = vmatpush.bf16.msrb.mxu0 %v5851_v7  ;;  %v7038_v18 = vld [vmem:[#allocation19 + $0x16c] sm:$0xf0]  ;;  %v6020_v7 = vld [vmem:[#allocation19 + $0x170] sm:$0xf0] }
 0x65e   :  { %vm2870_vm2 = vweird.f32 %v8754_v59  ;;  %3799 = vmatpush.bf16.msrb.mxu1 %v6107_v36  ;;  %3818 = vmatpush.bf16.msrb.mxu2 %v5855_v47  ;;  %v7094_v47 = vld [vmem:[#allocation19 + $0x32c] sm:$0xf0]  ;;  %v5956_v17 = vld [vmem:[#allocation19 + $0xf0] sm:$0xf0] }
 0x65f   :  { %v2865_v5 = vmul.f32 %v8754_v59, %v2864_v8  ;;  %3705 = vmatmul.bf16.vlgmr.msra.gmra.mxu0 %v8759_v14  ;;  %3724 = vmatmul.bf16.vlgmr.msra.gmra.mxu1 %v8763_v41  ;;  %v2862_v55 = vsel %vm2861_vm1, %v8724_v6, %v2858_v32  ;;  %v7118_v6 = vld [vmem:[#allocation19 + $0x3ec] sm:$0xf0]  ;;  %vm8782_vm4 = vmor %vm2869_vm3, %vm2870_vm2  ;;  %v6019_v32 = vor.u32 %v7038_v18, %v6018_v22 }
 0x660   :  { %3743 = vmatmul.bf16.vlgmr.msra.gmra.mxu2 %v8759_v14  ;;  %3762 = vmatmul.bf16.vlgmr.msra.gmra.mxu3 %v8763_v41  ;;  %v2877_v15 = vmul.f32 %v2862_v55, %v8666_v10  ;;  %v6339_v20 = vor.u32 %v7118_v6, %v6338_v52  ;;  %v2878_v54 = vmul.f32 %v2862_v55, %v8668_v60  ;;  %v6308_v60 = vld [vmem:[#allocation19 + $0x3b0] sm:$0xf0]  ;;  %v7102_v8 = vld [vmem:[#allocation19 + $0x36c] sm:$0xf0] }
 0x661   :  { %v2866_v3 = vmul.f32 0.5, %v2865_v5  ;;  %3849 = vmatpush.bf16.msra.mxu0 %v6083_v28  ;;  %v6343_v10 = vor.u32 %v7114_v46, %v6340_v26  ;;  %v6311_v16 = vor.u32 %v7106_v50, %v6308_v60  ;;  %v6275_v36 = vor.u32 %v7102_v8, %v6274_v33  ;;  %v5986_v55 = vld [vmem:[#allocation19 + $0x110] sm:$0xf]  ;;  %v5988_v28 = vld [vmem:[#allocation19 + $0x130] sm:$0xf0] }
 0x662   :  { %3868 = vmatpush.bf16.msra.mxu1 %v6339_v20  ;;  %3887 = vmatpush.bf16.msra.mxu2 %v6087_v25  ;;  %v2890_v0 = vmul.f32 %v8694_v51, %v2877_v15  ;;  %v2891_v9 = vmul.f32 %v8698_v24, %v2878_v54  ;;  %v6023_v5 = vor.u32 %v7034_v38, %v6020_v7  ;;  %v7090_v52 = vld [vmem:[#allocation19 + $0x314] sm:$0xf]  ;;  %v5954_v20 = vld [vmem:[#allocation19 + $0xd0] sm:$0xf] }
 0x663   :  { %v2867_v63 = vsub.f32 1.5, %v2866_v3  ;;  %3906 = vmatpush.bf16.msra.mxu3 %v6343_v10  ;;  %v7030_v3 = vld [vmem:[#allocation19 + $0x12c] sm:$0xf0]  ;;  %v6244_v6 = vld [vmem:[#allocation19 + $0x330] sm:$0xf0]  ;;  %v5991_v62 = vor.u32 %v7026_v31, %v5988_v28  ;;  %v5955_v54 = vor.u32 %v7022_v2, %v5954_v20 }
 0x664   :  { %v8798_v37 = vadd.f32 %v8710_v29, %v2890_v0  ;;  %v8801_v57 = vadd.f32 %v8712_v23, %v2891_v9  ;;  %v5987_v45 = vor.u32 %v7030_v3, %v5986_v55  ;;  %v6210_v46 = vld [vmem:[#allocation19 + $0x2d0] sm:$0xf]  ;;  %v7018_v26 = vld [vmem:[#allocation19 + $0xd4] sm:$0xf]  ;;  %v7119_v2 = vld [vmem:[#allocation19 + $0x3f4] sm:$0xf0] }
 0x665   :  { %v2868_v44 = vmul.f32 %v8754_v59, %v2867_v63  ;;  %3850 = vmatpush.bf16.msra.mxu0 %v6051_v43  ;;  %v7086_v25 = vld [vmem:[#allocation19 + $0x2ec] sm:$0xf0]  ;;  %v7082_v10 = vld [vmem:[#allocation19 + $0x2d4] sm:$0xf] }
 0x666   :  { %3869 = vmatpush.bf16.msra.mxu1 %v6307_v42  ;;  %3888 = vmatpush.bf16.msra.mxu2 %v6055_v27  ;;  %v6211_v49 = vor.u32 %v7086_v25, %v6210_v46  ;;  %v6212_v43 = vld [vmem:[#allocation19 + $0x2f0] sm:$0xf0]  ;;  %v7014_v12 = vld [vmem:[#allocation19 + $0xac] sm:$0xf0]  ;;  %v7051_v46 = vld [vmem:[#allocation19 + $0x1dc] sm:$0xf] }
 0x667   :  { %v2872_v11 = vsel %vm8782_vm4, %v8754_v59, %v2868_v44  ;;  %v6276_v59 = vld [vmem:[#allocation19 + $0x370] sm:$0xf0]  ;;  %3907 = vmatpush.bf16.msra.mxu3 %v6311_v16  ;;  %v5959_v44 = vor.u32 %v7018_v26, %v5956_v17  ;;  %v6215_v58 = vor.u32 %v7082_v10, %v6212_v43  ;;  %v6178_v42 = vld [vmem:[#allocation19 + $0x290] sm:$0xf]  ;;  %v7115_v17 = vld [vmem:[#allocation19 + $0x3dc] sm:$0xf] }
 0x668   :  { %v2879_v61 = vmul.f32 %v2872_v11, %v8675_v56  ;;  %v2880_v4 = vmul.f32 %v2872_v11, %v8677_v39  ;;  %v6279_v56 = vor.u32 %v7098_v34, %v6276_v59  ;;  %v6242_v39 = vld [vmem:[#allocation19 + $0x310] sm:$0xf]  ;;  %v7010_v50 = vld [vmem:[#allocation19 + $0x94] sm:$0xf]  ;;  %v5923_v11 = vor.u32 %v7014_v12, %v5922_v13  ;;  %v7047_v43 = vld [vmem:[#allocation19 + $0x1b4] sm:$0xf0] }
 0x669   :  { %3851 = vmatpush.bf16.msra.mxu0 %v6019_v32  ;;  %v7078_v48 = vld [vmem:[#allocation19 + $0x2ac] sm:$0xf0]  ;;  %v5924_v60 = vld [vmem:[#allocation19 + $0xb0] sm:$0xf0]  ;;  %v6314_v13 = vld [vmem:[#allocation19 + $0x398] sm:$0xf] }
 0x66a   :  { %v2892_v19 = vmul.f32 %v8694_v51, %v2879_v61  ;;  %v2893_v1 = vmul.f32 %v8698_v24, %v2880_v4  ;;  %3870 = vmatpush.bf16.msra.mxu1 %v6275_v36  ;;  %3889 = vmatpush.bf16.msra.mxu2 %v6023_v5  ;;  %v7074_v0 = vld [vmem:[#allocation19 + $0x294] sm:$0xf]  ;;  %v6179_v27 = vor.u32 %v7078_v48, %v6178_v42  ;;  %v5890_v22 = vld [vmem:[#allocation19 + $0x50] sm:$0xf]  ;;  %v7043_v48 = vld [vmem:[#allocation19 + $0x19c] sm:$0xf] }
 0x66b   :  { %3908 = vmatpush.bf16.msra.mxu3 %v6279_v56  ;;  %v6180_v16 = vld [vmem:[#allocation19 + $0x2b0] sm:$0xf0]  ;;  %v7006_v18 = vld [vmem:[#allocation19 + $0x6c] sm:$0xf0]  ;;  %v5927_v33 = vor.u32 %v7010_v50, %v5924_v60  ;;  %v6060_v50 = vld [vmem:[#allocation19 + $0x1b8] sm:$0xf0] }
 0x66c   :  { %v8804_v51 = vadd.f32 %v8710_v29, %v2892_v19  ;;  %v8807_v24 = vadd.f32 %v8712_v23, %v2893_v1  ;;  %v6243_v29 = vor.u32 %v7094_v47, %v6242_v39  ;;  %v6247_v23 = vor.u32 %v7090_v52, %v6244_v6  ;;  %v6146_v61 = vld [vmem:[#allocation19 + $0x250] sm:$0xf]  ;;  %v7002_v32 = vld [vmem:[#allocation19 + $0x54] sm:$0xf]  ;;  %v7107_v60 = vld [vmem:[#allocation19 + $0x39c] sm:$0xf] }
 0x66d   :  { %3852 = vmatpush.bf16.msra.mxu0 %v5987_v45  ;;  %v6183_v9 = vor.u32 %v7074_v0, %v6180_v16  ;;  %v7070_v4 = vld [vmem:[#allocation19 + $0x26c] sm:$0xf0]  ;;  %v5892_v8 = vld [vmem:[#allocation19 + $0x70] sm:$0xf0]  ;;  %v5891_v36 = vor.u32 %v7006_v18, %v5890_v22  ;;  %v6063_v0 = vor.u32 %v7043_v48, %v6060_v50  ;;  %v7039_v16 = vld [vmem:[#allocation19 + $0x174] sm:$0xf0] }
 0x66e   :  { %v8811_v15 = vpack.c.bf16 %v8804_v51, %v8798_v37  ;;  %v8815_v63 = vpack.c.bf16 %v8807_v24, %v8801_v57  ;;  %3871 = vmatpush.bf16.msra.mxu1 %v6243_v29  ;;  %3890 = vmatpush.bf16.msra.mxu2 %v5991_v62  ;;  %v7066_v38 = vld [vmem:[#allocation19 + $0x254] sm:$0xf]  ;;  %v6147_v34 = vor.u32 %v7070_v4, %v6146_v61  ;;  %v5858_v59 = vld [vmem:[#allocation19 + $0x10] sm:$0xf]  ;;  %v6090_v29 = vld [vmem:[#allocation19 + $0x1d8] sm:$0xf] }
 0x66f   :  { %3909 = vmatpush.bf16.msra.mxu3 %v6247_v23  ;;  %v6148_v7 = vld [vmem:[#allocation19 + $0x270] sm:$0xf0]  ;;  %v6998_v19 = vld [vmem:[#allocation19 + $0x2c] sm:$0xf0]  ;;  %v5895_v1 = vor.u32 %v7002_v32, %v5892_v8  ;;  %v7055_v62 = vld [vmem:[#allocation19 + $0x1f4] sm:$0xf0] }
 0x670   :  { %3710 = vmatmul.bf16.gmra.mxu0 %v8811_v15  ;;  %3729 = vmatmul.bf16.gmra.mxu1 %v8815_v63  ;;  %v6151_v5 = vor.u32 %v7066_v38, %v6148_v7  ;;  %v6114_v55 = vld [vmem:[#allocation19 + $0x210] sm:$0xf]  ;;  %v6994_v56 = vld [vmem:[#allocation19 + $0x14] sm:$0xf]  ;;  %v5859_v28 = vor.u32 %v6998_v19, %v5858_v59  ;;  %v6346_v23 = vld [vmem:[#allocation19 + $0x3d8] sm:$0xf]  ;;  %v6091_v20 = vor.u32 %v7055_v62, %v6090_v29 }
 0x671   :  { %3748 = vmatmul.bf16.gmra.mxu2 %v8811_v15  ;;  %3767 = vmatmul.bf16.gmra.mxu3 %v8815_v63  ;;  %v7062_v3 = vld [vmem:[#allocation19 + $0x22c] sm:$0xf0]  ;;  %v5860_v39 = vld [vmem:[#allocation19 + $0x30] sm:$0xf0]  ;;  %v6347_v25 = vor.u32 %v7119_v2, %v6346_v23  ;;  %v6282_v18 = vld [vmem:[#allocation19 + $0x358] sm:$0xf] }
 0x672   :  { %3853 = vmatpush.bf16.msra.mxu0 %v5955_v54  ;;  %3872 = vmatpush.bf16.msra.mxu1 %v6211_v49  ;;  %v7058_v47 = vld [vmem:[#allocation19 + $0x214] sm:$0xf]  ;;  %v6115_v52 = vor.u32 %v7062_v3, %v6114_v55  ;;  %v5863_v6 = vor.u32 %v6994_v56, %v5860_v39  ;;  %v6092_v54 = vld [vmem:[#allocation19 + $0x1f8] sm:$0xf0]  ;;  %v7031_v59 = vld [vmem:[#allocation19 + $0x134] sm:$0xf0] }
 0x673   :  { %3891 = vmatpush.bf16.msra.mxu2 %v5959_v44  ;;  %3910 = vmatpush.bf16.msra.mxu3 %v6215_v58  ;;  %v6116_v31 = vld [vmem:[#allocation19 + $0x230] sm:$0xf0]  ;;  %v6095_v26 = vor.u32 %v7051_v46, %v6092_v54  ;;  %v6348_v49 = vld [vmem:[#allocation19 + $0x3f8] sm:$0xf0]  ;;  %v6058_v44 = vld [vmem:[#allocation19 + $0x198] sm:$0xf] }
 0x674   :  { %v6119_v45 = vor.u32 %v7058_v47, %v6116_v31  ;;  %v6351_v10 = vor.u32 %v7115_v17, %v6348_v49  ;;  %v7111_v58 = vld [vmem:[#allocation19 + $0x3b4] sm:$0xf0]  ;;  %v6059_v12 = vor.u32 %v7047_v43, %v6058_v44  ;;  %v6028_v4 = vld [vmem:[#allocation19 + $0x178] sm:$0xf0] }
 0x675   :  { %v6315_v42 = vor.u32 %v7111_v58, %v6314_v13  ;;  %v7099_v32 = vld [vmem:[#allocation19 + $0x35c] sm:$0xf]  ;;  %v6250_v19 = vld [vmem:[#allocation19 + $0x318] sm:$0xf] }
 0x676   :  { %3854 = vmatpush.bf16.msra.mxu0 %v5923_v11  ;;  %3873 = vmatpush.bf16.msra.mxu1 %v6179_v27  ;;  %v6316_v11 = vld [vmem:[#allocation19 + $0x3b8] sm:$0xf0]  ;;  %v6026_v27 = vld [vmem:[#allocation19 + $0x158] sm:$0xf] }
 0x677   :  { %3892 = vmatpush.bf16.msra.mxu2 %v5927_v33  ;;  %3911 = vmatpush.bf16.msra.mxu3 %v6183_v9  ;;  %v6319_v22 = vor.u32 %v7107_v60, %v6316_v11  ;;  %v7103_v33 = vld [vmem:[#allocation19 + $0x374] sm:$0xf0]  ;;  %v7035_v9 = vld [vmem:[#allocation19 + $0x15c] sm:$0xf]  ;;  %v6027_v61 = vor.u32 %v7039_v16, %v6026_v27 }
 0x678   :  { %v6284_v8 = vld [vmem:[#allocation19 + $0x378] sm:$0xf0]  ;;  %v6283_v38 = vor.u32 %v7103_v33, %v6282_v18  ;;  %v6031_v7 = vor.u32 %v7035_v9, %v6028_v4  ;;  %v7087_v62 = vld [vmem:[#allocation19 + $0x2f4] sm:$0xf0] }
 0x679   :  { %v5996_v55 = vld [vmem:[#allocation19 + $0x138] sm:$0xf0]  ;;  %v7015_v49 = vld [vmem:[#allocation19 + $0xb4] sm:$0xf0] }
 0x67a   :  { %3855 = vmatpush.bf16.msra.mxu0 %v5891_v36  ;;  %3874 = vmatpush.bf16.msra.mxu1 %v6147_v34  ;;  %v6287_v36 = vor.u32 %v7099_v32, %v6284_v8  ;;  %v5994_v34 = vld [vmem:[#allocation19 + $0x118] sm:$0xf]  ;;  %v7091_v3 = vld [vmem:[#allocation19 + $0x31c] sm:$0xf] }
 0x67b   :  { %3893 = vmatpush.bf16.msra.mxu2 %v5895_v1  ;;  %3912 = vmatpush.bf16.msra.mxu3 %v6151_v5  ;;  %v7095_v1 = vld [vmem:[#allocation19 + $0x334] sm:$0xf0]  ;;  %v7027_v5 = vld [vmem:[#allocation19 + $0x11c] sm:$0xf]  ;;  %v5995_v39 = vor.u32 %v7031_v59, %v5994_v34 }
 0x67c   :  { %v6252_v56 = vld [vmem:[#allocation19 + $0x338] sm:$0xf0]  ;;  %v6251_v47 = vor.u32 %v7095_v1, %v6250_v19  ;;  %v5999_v31 = vor.u32 %v7027_v5, %v5996_v55  ;;  %v6186_v44 = vld [vmem:[#allocation19 + $0x298] sm:$0xf] }
 0x67d   :  { %v7019_v23 = vld [vmem:[#allocation19 + $0xdc] sm:$0xf]  ;;  %v5898_v50 = vld [vmem:[#allocation19 + $0x58] sm:$0xf] }
 0x67e   :  { %3856 = vmatpush.bf16.msra.mxu0 %v5859_v28  ;;  %3875 = vmatpush.bf16.msra.mxu1 %v6115_v52  ;;  %v6255_v28 = vor.u32 %v7091_v3, %v6252_v56  ;;  %v5962_v52 = vld [vmem:[#allocation19 + $0xd8] sm:$0xf]  ;;  %v7083_v54 = vld [vmem:[#allocation19 + $0x2dc] sm:$0xf] }
 0x67f   :  { %3894 = vmatpush.bf16.msra.mxu2 %v5863_v6  ;;  %3913 = vmatpush.bf16.msra.mxu3 %v6119_v45  ;;  %v7023_v6 = vld [vmem:[#allocation19 + $0xf4] sm:$0xf0]  ;;  %v7011_v43 = vld [vmem:[#allocation19 + $0x9c] sm:$0xf] }
 0x680   :  { %3781 = vmatmul.bf16.vlgmr.msrb.gmra.mxu0 %v8759_v14  ;;  %3800 = vmatmul.bf16.vlgmr.msrb.gmra.mxu1 %v8763_v41  ;;  %v6218_v45 = vld [vmem:[#allocation19 + $0x2d8] sm:$0xf]  ;;  %v5963_v29 = vor.u32 %v7023_v6, %v5962_v52  ;;  %v5932_v13 = vld [vmem:[#allocation19 + $0xb8] sm:$0xf0]  ;;  %v6402_v52 = vld [vmem:[#allocation20 + $0x60] sm:$0xf] }
 0x681   :  { %3819 = vmatmul.bf16.vlgmr.msrb.gmra.mxu2 %v8759_v14  ;;  %3838 = vmatmul.bf16.vlgmr.msrb.gmra.mxu3 %v8763_v41  ;;  %v6219_v2 = vor.u32 %v7087_v62, %v6218_v45  ;;  %v7075_v58 = vld [vmem:[#allocation19 + $0x29c] sm:$0xf]  ;;  %v7007_v60 = vld [vmem:[#allocation19 + $0x74] sm:$0xf0]  ;;  %v7133_v6 = vld [vmem:[#allocation20 + $0x64] sm:$0xf0] }
 0x682   :  { %3925 = vmatpush.bf16.msrb.mxu0 %v6091_v20  ;;  %3944 = vmatpush.bf16.msrb.mxu1 %v6347_v25  ;;  %v5964_v20 = vld [vmem:[#allocation19 + $0xf8] sm:$0xf0]  ;;  %v6154_v27 = vld [vmem:[#allocation19 + $0x258] sm:$0xf]  ;;  %v6474_v45 = vld [vmem:[#allocation20 + $0xf0] sm:$0xf] }
 0x683   :  { %3963 = vmatpush.bf16.msrb.mxu2 %v6095_v26  ;;  %3982 = vmatpush.bf16.msrb.mxu3 %v6351_v10  ;;  %v5967_v46 = vor.u32 %v7019_v23, %v5964_v20  ;;  %v6220_v25 = vld [vmem:[#allocation19 + $0x2f8] sm:$0xf0]  ;;  %v5930_v26 = vld [vmem:[#allocation19 + $0x98] sm:$0xf]  ;;  %v6394_v23 = vld [vmem:[#allocation20 + $0x50] sm:$0xf] }
 0x684   :  { %v6223_v17 = vor.u32 %v7083_v54, %v6220_v25  ;;  %v7079_v10 = vld [vmem:[#allocation19 + $0x2b4] sm:$0xf0]  ;;  %v6188_v48 = vld [vmem:[#allocation19 + $0x2b8] sm:$0xf0]  ;;  %v7149_v54 = vld [vmem:[#allocation20 + $0xe4] sm:$0xf0] }
 0x685   :  { %v6191_v11 = vor.u32 %v7075_v58, %v6188_v48  ;;  %v7071_v16 = vld [vmem:[#allocation19 + $0x274] sm:$0xf0]  ;;  %v5900_v18 = vld [vmem:[#allocation19 + $0x78] sm:$0xf0]  ;;  %v6378_v58 = vld [vmem:[#allocation20 + $0x30] sm:$0xf] }
 0x686   :  { %3926 = vmatpush.bf16.msrb.mxu0 %v6059_v12  ;;  %3945 = vmatpush.bf16.msrb.mxu1 %v6315_v42  ;;  %v5931_v12 = vor.u32 %v7015_v49, %v5930_v26  ;;  %v6187_v42 = vor.u32 %v7079_v10, %v6186_v44  ;;  %v7067_v33 = vld [vmem:[#allocation19 + $0x25c] sm:$0xf]  ;;  %v6155_v4 = vor.u32 %v7071_v16, %v6154_v27  ;;  %v5866_v32 = vld [vmem:[#allocation19 + $0x18] sm:$0xf]  ;;  %v7129_v49 = vld [vmem:[#allocation20 + $0x44] sm:$0xf0] }
 0x687   :  { %3964 = vmatpush.bf16.msrb.mxu2 %v6063_v0  ;;  %3983 = vmatpush.bf16.msrb.mxu3 %v6319_v22  ;;  %v5935_v0 = vor.u32 %v7011_v43, %v5932_v13  ;;  %v7003_v22 = vld [vmem:[#allocation19 + $0x5c] sm:$0xf]  ;;  %v6999_v8 = vld [vmem:[#allocation19 + $0x34] sm:$0xf0]  ;;  %v6458_v10 = vld [vmem:[#allocation20 + $0xd0] sm:$0xf] }
 0x688   :  { %v6156_v9 = vld [vmem:[#allocation19 + $0x278] sm:$0xf0]  ;;  %v7063_v34 = vld [vmem:[#allocation19 + $0x234] sm:$0xf0]  ;;  %v5867_v55 = vor.u32 %v6999_v8, %v5866_v32  ;;  %v6450_v48 = vld [vmem:[#allocation20 + $0xc0] sm:$0xf] }
 0x689   :  { %v6995_v59 = vld [vmem:[#allocation19 + $0x1c] sm:$0xf]  ;;  %v7151_v62 = vld [vmem:[#allocation20 + $0xf4] sm:$0xf0]  ;;  %v6442_v16 = vld [vmem:[#allocation20 + $0xb0] sm:$0xf] }
 0x68a   :  { %3927 = vmatpush.bf16.msrb.mxu0 %v6027_v61  ;;  %3946 = vmatpush.bf16.msrb.mxu1 %v6283_v38  ;;  %v5899_v61 = vor.u32 %v7007_v60, %v5898_v50  ;;  %v5903_v38 = vor.u32 %v7003_v22, %v5900_v18  ;;  %v5868_v19 = vld [vmem:[#allocation19 + $0x38] sm:$0xf0]  ;;  %v7131_v20 = vld [vmem:[#allocation20 + $0x54] sm:$0xf0]  ;;  %v7145_v50 = vld [vmem:[#allocation20 + $0xc4] sm:$0xf0] }
 0x68b   :  { %3965 = vmatpush.bf16.msrb.mxu2 %v6031_v7  ;;  %3984 = vmatpush.bf16.msrb.mxu3 %v6287_v36  ;;  %v6159_v7 = vor.u32 %v7067_v33, %v6156_v9  ;;  %v6122_v36 = vld [vmem:[#allocation19 + $0x218] sm:$0xf]  ;;  %v7059_v1 = vld [vmem:[#allocation19 + $0x21c] sm:$0xf]  ;;  %v5871_v56 = vor.u32 %v6995_v59, %v5868_v19  ;;  %v6395_v25 = vor.u32 %v7131_v20, %v6394_v23  ;;  %v6362_v33 = vld [vmem:[#allocation20 + $0x10] sm:$0xf] }
 0x68c   :  { %v6124_v5 = vld [vmem:[#allocation19 + $0x238] sm:$0xf0]  ;;  %v6123_v3 = vor.u32 %v7063_v34, %v6122_v36  ;;  %v7147_v43 = vld [vmem:[#allocation20 + $0xd4] sm:$0xf0]  ;;  %v6451_v60 = vor.u32 %v7145_v50, %v6450_v48  ;;  %v7141_v32 = vld [vmem:[#allocation20 + $0xa4] sm:$0xf0] }
 0x68d   :  { %v6459_v13 = vor.u32 %v7147_v43, %v6458_v10  ;;  %v7143_v22 = vld [vmem:[#allocation20 + $0xb4] sm:$0xf0]  ;;  %v6538_v59 = vld [vmem:[#allocation20 + $0x170] sm:$0xf]  ;;  %v7181_v23 = vld [vmem:[#allocation20 + $0x1e4] sm:$0xf0] }
 0x68e   :  { %3928 = vmatpush.bf16.msrb.mxu0 %v5995_v39  ;;  %3947 = vmatpush.bf16.msrb.mxu1 %v6251_v47  ;;  %v6127_v39 = vor.u32 %v7059_v1, %v6124_v5  ;;  %v6410_v47 = vld [vmem:[#allocation20 + $0x70] sm:$0xf]  ;;  %v6443_v18 = vor.u32 %v7143_v22, %v6442_v16  ;;  %v7123_v9 = vld [vmem:[#allocation20 + $0x14] sm:$0xf0]  ;;  %v6418_v5 = vld [vmem:[#allocation20 + $0x80] sm:$0xf] }
 0x68f   :  { %3966 = vmatpush.bf16.msrb.mxu2 %v5999_v31  ;;  %3985 = vmatpush.bf16.msrb.mxu3 %v6255_v28  ;;  %v7135_v31 = vld [vmem:[#allocation20 + $0x74] sm:$0xf0]  ;;  %v6514_v20 = vld [vmem:[#allocation20 + $0x140] sm:$0xf]  ;;  %v6506_v10 = vld [vmem:[#allocation20 + $0x130] sm:$0xf] }
 0x690   :  { %3786 = vmatmul.bf16.gmra.mxu0 %v8811_v15  ;;  %3805 = vmatmul.bf16.gmra.mxu1 %v8815_v63  ;;  %v6411_v28 = vor.u32 %v7135_v31, %v6410_v47  ;;  %v7139_v36 = vld [vmem:[#allocation20 + $0x94] sm:$0xf0]  ;;  %v6602_v31 = vld [vmem:[#allocation20 + $0x1f0] sm:$0xf] }
 0x691   :  { %3824 = vmatmul.bf16.gmra.mxu2 %v8811_v15  ;;  %3843 = vmatmul.bf16.gmra.mxu3 %v8815_v63  ;;  %v7167_v19 = vld [vmem:[#allocation20 + $0x174] sm:$0xf0] }
 0x692   :  { %3929 = vmatpush.bf16.msrb.mxu0 %v5963_v29  ;;  %3948 = vmatpush.bf16.msrb.mxu1 %v6219_v2  ;;  %v6403_v29 = vor.u32 %v7133_v6, %v6402_v52  ;;  %v6475_v2 = vor.u32 %v7151_v62, %v6474_v45  ;;  %v6539_v1 = vor.u32 %v7167_v19, %v6538_v59  ;;  %v6522_v6 = vld [vmem:[#allocation20 + $0x150] sm:$0xf]  ;;  %v7163_v45 = vld [vmem:[#allocation20 + $0x154] sm:$0xf0]  ;;  %v6594_v62 = vld [vmem:[#allocation20 + $0x1e0] sm:$0xf] }
 0x693   :  { %3967 = vmatpush.bf16.msrb.mxu2 %v5967_v46  ;;  %3986 = vmatpush.bf16.msrb.mxu3 %v6223_v17  ;;  %v6466_v46 = vld [vmem:[#allocation20 + $0xe0] sm:$0xf]  ;;  %v7159_v43 = vld [vmem:[#allocation20 + $0x134] sm:$0xf0]  ;;  %v7173_v19 = vld [vmem:[#allocation20 + $0x1a4] sm:$0xf0] }
 0x694   :  { %v6467_v26 = vor.u32 %v7149_v54, %v6466_v46  ;;  %v6386_v17 = vld [vmem:[#allocation20 + $0x40] sm:$0xf] }
 0x695   :  { %v6387_v44 = vor.u32 %v7129_v49, %v6386_v17  ;;  %v6586_v17 = vld [vmem:[#allocation20 + $0x1d0] sm:$0xf]  ;;  %v7179_v49 = vld [vmem:[#allocation20 + $0x1d4] sm:$0xf0]  ;;  %v6562_v59 = vld [vmem:[#allocation20 + $0x1a0] sm:$0xf] }
 0x696   :  { %3930 = vmatpush.bf16.msrb.mxu0 %v5931_v12  ;;  %3949 = vmatpush.bf16.msrb.mxu1 %v6187_v42  ;;  %v7127_v12 = vld [vmem:[#allocation20 + $0x34] sm:$0xf0] }
 0x697   :  { %3968 = vmatpush.bf16.msrb.mxu2 %v5935_v0  ;;  %3987 = vmatpush.bf16.msrb.mxu3 %v6191_v11  ;;  %v6379_v42 = vor.u32 %v7127_v12, %v6378_v58  ;;  %v6370_v0 = vld [vmem:[#allocation20 + $0x20] sm:$0xf]  ;;  %v7125_v11 = vld [vmem:[#allocation20 + $0x24] sm:$0xf0] }
 0x698   :  { %v6371_v27 = vor.u32 %v7125_v11, %v6370_v0  ;;  %v6578_v12 = vld [vmem:[#allocation20 + $0x1c0] sm:$0xf]  ;;  %v7157_v11 = vld [vmem:[#allocation20 + $0x124] sm:$0xf0] }
 0x699   :  { %v6498_v0 = vld [vmem:[#allocation20 + $0x120] sm:$0xf] }
 0x69a   :  { %3931 = vmatpush.bf16.msrb.mxu0 %v5899_v61  ;;  %3950 = vmatpush.bf16.msrb.mxu1 %v6155_v4  ;;  %v6363_v61 = vor.u32 %v7123_v9, %v6362_v33  ;;  %v6434_v4 = vld [vmem:[#allocation20 + $0xa0] sm:$0xf] }
 0x69b   :  { %3969 = vmatpush.bf16.msrb.mxu2 %v5903_v38  ;;  %3988 = vmatpush.bf16.msrb.mxu3 %v6159_v7  ;;  %v6435_v8 = vor.u32 %v7141_v32, %v6434_v4  ;;  %v6426_v7 = vld [vmem:[#allocation20 + $0x90] sm:$0xf]  ;;  %v7175_v4 = vld [vmem:[#allocation20 + $0x1b4] sm:$0xf0] }
 0x69c   :  { %v6427_v34 = vor.u32 %v7139_v36, %v6426_v7 }
 0x69e   :  { %3932 = vmatpush.bf16.msrb.mxu0 %v5867_v55  ;;  %3951 = vmatpush.bf16.msrb.mxu1 %v6123_v3  ;;  %v7137_v55 = vld [vmem:[#allocation20 + $0x84] sm:$0xf0] }
 0x69f   :  { %3970 = vmatpush.bf16.msrb.mxu2 %v5871_v56  ;;  %3989 = vmatpush.bf16.msrb.mxu3 %v6127_v39  ;;  %v6419_v3 = vor.u32 %v7137_v55, %v6418_v5  ;;  %v6530_v56 = vld [vmem:[#allocation20 + $0x160] sm:$0xf]  ;;  %v7165_v39 = vld [vmem:[#allocation20 + $0x164] sm:$0xf0] }
 0x6a0   :  { %3857 = vmatmul.bf16.vlgmr.msra.gmra.mxu0 %v8759_v14  ;;  %3876 = vmatmul.bf16.vlgmr.msra.gmra.mxu1 %v8763_v41  ;;  %v6531_v47 = vor.u32 %v7165_v39, %v6530_v56  ;;  %v6482_v56 = vld [vmem:[#allocation20 + $0x100] sm:$0xf]  ;;  %v7153_v39 = vld [vmem:[#allocation20 + $0x104] sm:$0xf0] }
 0x6a1   :  { %3895 = vmatmul.bf16.vlgmr.msra.gmra.mxu2 %v8759_v14  ;;  %3914 = vmatmul.bf16.vlgmr.msra.gmra.mxu3 %v8763_v41 }
 0x6a2   :  { %4823 = vmatpush.bf16.msra.mxu0 %v6411_v28  ;;  %4842 = vmatpush.bf16.msra.mxu1 %v6475_v2  ;;  %v7183_v28 = vld [vmem:[#allocation20 + $0x1f4] sm:$0xf0]  ;;  %v7161_v2 = vld [vmem:[#allocation20 + $0x144] sm:$0xf0] }
 0x6a3   :  { %4861 = vmatpush.bf16.msra.mxu2 %v6539_v1  ;;  %v6603_v52 = vor.u32 %v7183_v28, %v6602_v31  ;;  %v6563_v1 = vor.u32 %v7173_v19, %v6562_v59  ;;  %v6483_v28 = vor.u32 %v7153_v39, %v6482_v56  ;;  %v6714_v39 = vld [vmem:[#allocation20 + $0x2d0] sm:$0xf] }
 0x6a5   :  { %4880 = vmatpush.bf16.msra.mxu3 %v6603_v52 }
 0x6a6   :  { %4824 = vmatpush.bf16.msra.mxu0 %v6403_v29  ;;  %4843 = vmatpush.bf16.msra.mxu1 %v6467_v26  ;;  %v6523_v29 = vor.u32 %v7163_v45, %v6522_v6  ;;  %v6554_v45 = vld [vmem:[#allocation20 + $0x190] sm:$0xf] }
 0x6a7   :  { %4862 = vmatpush.bf16.msra.mxu2 %v6531_v47 }
 0x6aa   :  { %4825 = vmatpush.bf16.msra.mxu0 %v6395_v25  ;;  %4844 = vmatpush.bf16.msra.mxu1 %v6459_v13  ;;  %v6515_v25 = vor.u32 %v7161_v2, %v6514_v20  ;;  %v6507_v13 = vor.u32 %v7159_v43, %v6506_v10  ;;  %v7199_v20 = vld [vmem:[#allocation20 + $0x274] sm:$0xf0]  ;;  %v6658_v43 = vld [vmem:[#allocation20 + $0x260] sm:$0xf] }
 0x6ab   :  { %4863 = vmatpush.bf16.msra.mxu2 %v6523_v29  ;;  %v7171_v29 = vld [vmem:[#allocation20 + $0x194] sm:$0xf0] }
 0x6ae   :  { %4826 = vmatpush.bf16.msra.mxu0 %v6387_v44  ;;  %4845 = vmatpush.bf16.msra.mxu1 %v6451_v60  ;;  %v6587_v44 = vor.u32 %v7179_v49, %v6586_v17  ;;  %v7169_v17 = vld [vmem:[#allocation20 + $0x184] sm:$0xf0] }
 0x6af   :  { %4864 = vmatpush.bf16.msra.mxu2 %v6515_v25  ;;  %v6546_v25 = vld [vmem:[#allocation20 + $0x180] sm:$0xf] }
 0x6b0   :  { %3862 = vmatmul.bf16.gmra.mxu0 %v8811_v15  ;;  %3881 = vmatmul.bf16.gmra.mxu1 %v8815_v63  ;;  %v6547_v10 = vor.u32 %v7169_v17, %v6546_v25  ;;  %v7189_v25 = vld [vmem:[#allocation20 + $0x224] sm:$0xf0] }
 0x6b1   :  { %3900 = vmatmul.bf16.gmra.mxu2 %v8811_v15  ;;  %3919 = vmatmul.bf16.gmra.mxu3 %v8815_v63 }
 0x6b2   :  { %4827 = vmatpush.bf16.msra.mxu0 %v6379_v42  ;;  %4846 = vmatpush.bf16.msra.mxu1 %v6443_v18  ;;  %v7177_v42 = vld [vmem:[#allocation20 + $0x1c4] sm:$0xf0]  ;;  %v6499_v18 = vor.u32 %v7157_v11, %v6498_v0  ;;  %v7215_v0 = vld [vmem:[#allocation20 + $0x2f4] sm:$0xf0] }
 0x6b3   :  { %4865 = vmatpush.bf16.msra.mxu2 %v6507_v13  ;;  %v6579_v48 = vor.u32 %v7177_v42, %v6578_v12  ;;  %v7197_v13 = vld [vmem:[#allocation20 + $0x264] sm:$0xf0] }
 0x6b4   :  { %v6659_v42 = vor.u32 %v7197_v13, %v6658_v43 }
 0x6b6   :  { %4828 = vmatpush.bf16.msra.mxu0 %v6371_v27  ;;  %4847 = vmatpush.bf16.msra.mxu1 %v6435_v8 }
 0x6b7   :  { %4866 = vmatpush.bf16.msra.mxu2 %v6499_v18  ;;  %v6650_v18 = vld [vmem:[#allocation20 + $0x250] sm:$0xf] }
 0x6ba   :  { %4829 = vmatpush.bf16.msra.mxu0 %v6363_v61  ;;  %4848 = vmatpush.bf16.msra.mxu1 %v6427_v34  ;;  %v6570_v61 = vld [vmem:[#allocation20 + $0x1b0] sm:$0xf] }
 0x6bb   :  { %v6571_v32 = vor.u32 %v7175_v4, %v6570_v61 }
 0x6be   :  { %4849 = vmatpush.bf16.msra.mxu1 %v6419_v3 }
 0x6c0   :  { %3933 = vmatmul.bf16.vlgmr.msrb.gmra.mxu0 %v8759_v14  ;;  %3952 = vmatmul.bf16.vlgmr.msrb.gmra.mxu1 %v8763_v41 }
 0x6c1   :  { %3971 = vmatmul.bf16.vlgmr.msrb.gmra.mxu2 %v8759_v14  ;;  %3990 = vmatmul.bf16.vlgmr.msrb.gmra.mxu3 %v8763_v41  ;;  %v6354_v14 = vld [vmem:[#allocation20] sm:$0xf]  ;;  %v7121_v41 = vld [vmem:[#allocation20 + $0x4] sm:$0xf0] }
 0x6c2   :  { %v6355_v38 = vor.u32 %v7121_v41, %v6354_v14  ;;  %v6490_v14 = vld [vmem:[#allocation20 + $0x110] sm:$0xf]  ;;  %v7155_v41 = vld [vmem:[#allocation20 + $0x114] sm:$0xf0] }
 0x6c3   :  { %v6491_v7 = vor.u32 %v7155_v41, %v6490_v14 }
 0x6c4   :  { %4830 = vmatpush.bf16.msra.mxu0 %v6355_v38 }
 0x6c5   :  { %4867 = vmatpush.bf16.msra.mxu2 %v6491_v7  ;;  %v6642_v7 = vld [vmem:[#allocation20 + $0x240] sm:$0xf] }
 0x6c9   :  { %4868 = vmatpush.bf16.msra.mxu2 %v6483_v28 }
 0x6d0   :  { %3938 = vmatmul.bf16.gmra.mxu0 %v8811_v15  ;;  %3957 = vmatmul.bf16.gmra.mxu1 %v8815_v63 }
 0x6d1   :  { %3976 = vmatmul.bf16.gmra.mxu2 %v8811_v15  ;;  %3995 = vmatmul.bf16.gmra.mxu3 %v8815_v63  ;;  %v8848_v15 = vld [vmem:[%s9077_s12] sm:$0xff]  ;;  %v6595_v63 = vor.u32 %v7181_v23, %v6594_v62  ;;  %v6555_v23 = vor.u32 %v7171_v29, %v6554_v45 }
 0x6d2   :  { %v8851_v26 = vperm.slane %v8848_v15, 0  ;;  %v8855_v27 = vperm.slane %v8848_v15, 1  ;;  %v7191_v45 = vld [vmem:[#allocation20 + $0x234] sm:$0xf0]  ;;  %v8880_v43 = vperm.slane %v8848_v15, 3 }
 0x6d3   :  { %4881 = vmatpush.bf16.msra.mxu3 %v6595_v63  ;;  %v6666_v63 = vld [vmem:[#allocation20 + $0x270] sm:$0xf] }
 0x6d7   :  { %4882 = vmatpush.bf16.msra.mxu3 %v6587_v44 }
 0x6db   :  { %4883 = vmatpush.bf16.msra.mxu3 %v6579_v48 }
 0x6dc   :  { %v3706_v46 = vpop.f32.mrf.mxu0  ;;  %v3725_v54 = vpop.f32.mrf.mxu1 }
 0x6dd   :  { %v3707_v58 = vadd.f32 %v3706_v46, %v8851_v26 }
 0x6df   :  { %v3726_v33 = vadd.f32 %v3725_v54, %v3707_v58  ;;  %4884 = vmatpush.bf16.msra.mxu3 %v6571_v32  ;;  %v6667_v54 = vor.u32 %v7199_v20, %v6666_v63  ;;  %v6722_v32 = vld [vmem:[#allocation20 + $0x2e0] sm:$0xf] }
 0x6e0   :  { %v6706_v63 = vld [vmem:[#allocation20 + $0x2c0] sm:$0xf] }
 0x6e1   :  { %v4001_v36 = vmax.f32 %v3726_v33, 0.0  ;;  %4899 = vmatpush.bf16.msrb.mxu0 %v6667_v54  ;;  %v7195_v33 = vld [vmem:[#allocation20 + $0x254] sm:$0xf0]  ;;  %v6626_v54 = vld [vmem:[#allocation20 + $0x220] sm:$0xf] }
 0x6e2   :  { %v6651_v61 = vor.u32 %v7195_v33, %v6650_v18  ;;  %v6690_v33 = vld [vmem:[#allocation20 + $0x2a0] sm:$0xf] }
 0x6e3   :  { %v3744_v50 = vpop.f32.mrf.mxu2  ;;  %v3763_v60 = vpop.f32.mrf.mxu3  ;;  %4885 = vmatpush.bf16.msra.mxu3 %v6563_v1 }
 0x6e4   :  { %v3708_v16 = vpop.f32.mrf.mxu0  ;;  %v3727_v22 = vpop.f32.mrf.mxu1  ;;  %v3745_v38 = vadd.f32 %v3744_v50, %v8855_v27 }
 0x6e5   :  { %v3709_v9 = vadd.f32 %v3708_v16, %v8851_v26  ;;  %4900 = vmatpush.bf16.msrb.mxu0 %v6659_v42  ;;  %v7207_v42 = vld [vmem:[#allocation20 + $0x2b4] sm:$0xf0] }
 0x6e6   :  { %v3764_v47 = vadd.f32 %v3763_v60, %v3745_v38  ;;  %v6730_v60 = vld [vmem:[#allocation20 + $0x2f0] sm:$0xf] }
 0x6e7   :  { %v3728_v8 = vadd.f32 %v3727_v22, %v3709_v9  ;;  %4886 = vmatpush.bf16.msra.mxu3 %v6555_v23  ;;  %v6731_v22 = vor.u32 %v7215_v0, %v6730_v60  ;;  %v6618_v0 = vld [vmem:[#allocation20 + $0x210] sm:$0xf] }
 0x6e8   :  { %v4002_v2 = vmax.f32 %v3764_v47, 0.0  ;;  %v7211_v47 = vld [vmem:[#allocation20 + $0x2d4] sm:$0xf0] }
 0x6e9   :  { %v4009_v34 = vmax.f32 %v3728_v8, 0.0  ;;  %4918 = vmatpush.bf16.msrb.mxu1 %v6731_v22  ;;  %v7213_v8 = vld [vmem:[#allocation20 + $0x2e4] sm:$0xf0]  ;;  %4901 = vmatpush.bf16.msrb.mxu0 %v6651_v61  ;;  %v6715_v28 = vor.u32 %v7211_v47, %v6714_v39  ;;  %v6794_v47 = vld [vmem:[#allocation20 + $0x370] sm:$0xf] }
 0x6ea   :  { %v6723_v38 = vor.u32 %v7213_v8, %v6722_v32  ;;  %v6610_v8 = vld [vmem:[#allocation20 + $0x200] sm:$0xf] }
 0x6eb   :  { %v8859_v5 = vpack.c.bf16 %v4009_v34, %v4001_v36  ;;  %v3746_v55 = vpop.f32.mrf.mxu2  ;;  %v3765_v3 = vpop.f32.mrf.mxu3  ;;  %4887 = vmatpush.bf16.msra.mxu3 %v6547_v10  ;;  %v7193_v36 = vld [vmem:[#allocation20 + $0x244] sm:$0xf0]  ;;  %v6627_v10 = vor.u32 %v7189_v25, %v6626_v54  ;;  %v6786_v25 = vld [vmem:[#allocation20 + $0x360] sm:$0xf] }
 0x6ec   :  { %v3747_v31 = vadd.f32 %v3746_v55, %v8855_v27  ;;  %v6643_v19 = vor.u32 %v7193_v36, %v6642_v7 }
 0x6ed   :  { %v3711_v52 = vpop.f32.mrf.mxu0  ;;  %v3730_v6 = vpop.f32.mrf.mxu1  ;;  %4831 = vmatmul.bf16.vlgmr.msra.gmra.mxu0 %v8859_v5  ;;  %4919 = vmatpush.bf16.msrb.mxu1 %v6723_v38 }
 0x6ee   :  { %v3766_v62 = vadd.f32 %v3765_v3, %v3747_v31  ;;  %v3712_v44 = vadd.f32 %v3711_v52, %v8851_v26  ;;  %v8873_v31 = vperm.slane %v8848_v15, 2  ;;  %4902 = vmatpush.bf16.msrb.mxu0 %v6643_v19 }
 0x6f0   :  { %v4010_v46 = vmax.f32 %v3766_v62, 0.0  ;;  %v3731_v11 = vadd.f32 %v3730_v6, %v3712_v44  ;;  %v6634_v6 = vld [vmem:[#allocation20 + $0x230] sm:$0xf] }
 0x6f1   :  { %4920 = vmatpush.bf16.msrb.mxu1 %v6715_v28  ;;  %v6635_v29 = vor.u32 %v7191_v45, %v6634_v6  ;;  %v7231_v28 = vld [vmem:[#allocation20 + $0x374] sm:$0xf0]  ;;  %v6412_v45 = vld [vmem:[#allocation20 + $0x78] sm:$0xf0] }
 0x6f2   :  { %v8863_v49 = vpack.c.bf16 %v4010_v46, %v4002_v2  ;;  %v4017_v14 = vmax.f32 %v3731_v11, 0.0  ;;  %v7187_v11 = vld [vmem:[#allocation20 + $0x214] sm:$0xf0]  ;;  %v6795_v6 = vor.u32 %v7231_v28, %v6794_v47  ;;  %v7225_v47 = vld [vmem:[#allocation20 + $0x344] sm:$0xf0] }
 0x6f3   :  { %4903 = vmatpush.bf16.msrb.mxu0 %v6635_v29  ;;  %v6619_v22 = vor.u32 %v7187_v11, %v6618_v0  ;;  %v7247_v0 = vld [vmem:[#allocation20 + $0x3f4] sm:$0xf0]  ;;  %v7150_v11 = vld [vmem:[#allocation20 + $0xf4] sm:$0xf]  ;;  %v7128_v28 = vld [vmem:[#allocation20 + $0x44] sm:$0xf] }
 0x6f4   :  { %v3749_v58 = vpop.f32.mrf.mxu2  ;;  %v3768_v12 = vpop.f32.mrf.mxu3  ;;  %4850 = vmatmul.bf16.vlgmr.msra.gmra.mxu1 %v8863_v49  ;;  %4937 = vmatpush.bf16.msrb.mxu2 %v6795_v6 }
 0x6f5   :  { %v3713_v48 = vpop.f32.mrf.mxu0  ;;  %v3732_v50 = vpop.f32.mrf.mxu1  ;;  %v3750_v4 = vadd.f32 %v3749_v58, %v8855_v27 }
 0x6f6   :  { %v3714_v16 = vadd.f32 %v3713_v48, %v8851_v26 }
 0x6f7   :  { %v3769_v1 = vadd.f32 %v3768_v12, %v3750_v4  ;;  %v6698_v12 = vld [vmem:[#allocation20 + $0x2b0] sm:$0xf]  ;;  %4904 = vmatpush.bf16.msrb.mxu0 %v6627_v10 }
 0x6f8   :  { %v3733_v9 = vadd.f32 %v3732_v50, %v3714_v16  ;;  %v6699_v60 = vor.u32 %v7207_v42, %v6698_v12  ;;  %v6404_v12 = vld [vmem:[#allocation20 + $0x68] sm:$0xf0] }
 0x6f9   :  { %v4018_v62 = vmax.f32 %v3769_v1, 0.0 }
 0x6fa   :  { %v4025_v41 = vmax.f32 %v3733_v9, 0.0  ;;  %v7205_v9 = vld [vmem:[#allocation20 + $0x2a4] sm:$0xf0] }
 0x6fb   :  { %v6691_v32 = vor.u32 %v7205_v9, %v6690_v33  ;;  %4905 = vmatpush.bf16.msrb.mxu0 %v6619_v22  ;;  %v6476_v33 = vld [vmem:[#allocation20 + $0xf8] sm:$0xf0] }
 0x6fc   :  { %v3751_v34 = vpop.f32.mrf.mxu2  ;;  %v3770_v59 = vpop.f32.mrf.mxu3  ;;  %v8869_v26 = vpack.c.bf16 %v4025_v41, %v4017_v14  ;;  %v7185_v14 = vld [vmem:[#allocation20 + $0x204] sm:$0xf0]  ;;  %v6479_v9 = vor.u32 %v7150_v11, %v6476_v33 }
 0x6fd   :  { %v3752_v55 = vadd.f32 %v3751_v34, %v8855_v27  ;;  %v3782_v3 = vpop.f32.mrf.mxu0  ;;  %v3801_v56 = vpop.f32.mrf.mxu1  ;;  %v7209_v27 = vld [vmem:[#allocation20 + $0x2c4] sm:$0xf0]  ;;  %v6611_v36 = vor.u32 %v7185_v14, %v6610_v8 }
 0x6fe   :  { %4836 = vmatmul.bf16.gmra.mxu0 %v8869_v26  ;;  %v3783_v20 = vadd.f32 %v3782_v3, %v8873_v31  ;;  %v6707_v2 = vor.u32 %v7209_v27, %v6706_v63  ;;  %v7203_v3 = vld [vmem:[#allocation20 + $0x294] sm:$0xf0]  ;;  %v6674_v63 = vld [vmem:[#allocation20 + $0x280] sm:$0xf]  ;;  %v7201_v27 = vld [vmem:[#allocation20 + $0x284] sm:$0xf0] }
 0x6ff   :  { %v3771_v52 = vadd.f32 %v3770_v59, %v3752_v55  ;;  %v6682_v55 = vld [vmem:[#allocation20 + $0x290] sm:$0xf]  ;;  %4906 = vmatpush.bf16.msrb.mxu0 %v6611_v36  ;;  %v7241_v33 = vld [vmem:[#allocation20 + $0x3c4] sm:$0xf0] }
 0x700   :  { %4921 = vmatpush.bf16.msrb.mxu1 %v6707_v2  ;;  %v3802_v48 = vadd.f32 %v3801_v56, %v3783_v20  ;;  %v6683_v56 = vor.u32 %v7203_v3, %v6682_v55  ;;  %v6675_v2 = vor.u32 %v7201_v27, %v6674_v63  ;;  %v7148_v55 = vld [vmem:[#allocation20 + $0xe4] sm:$0xf]  ;;  %v6468_v3 = vld [vmem:[#allocation20 + $0xe8] sm:$0xf0] }
 0x701   :  { %v4026_v23 = vmax.f32 %v3771_v52, 0.0  ;;  %v7134_v52 = vld [vmem:[#allocation20 + $0x74] sm:$0xf] }
 0x702   :  { %v4003_v61 = vmax.f32 %v3802_v48, 0.0 }
 0x703   :  { %v8877_v46 = vpack.c.bf16 %v4026_v23, %v4018_v62  ;;  %v6415_v23 = vor.u32 %v7134_v52, %v6412_v45 }
 0x704   :  { %v3820_v17 = vpop.f32.mrf.mxu2  ;;  %v3839_v44 = vpop.f32.mrf.mxu3  ;;  %4922 = vmatpush.bf16.msrb.mxu1 %v6699_v60  ;;  %v6858_v60 = vld [vmem:[#allocation20 + $0x3f0] sm:$0xf] }
 0x705   :  { %4855 = vmatmul.bf16.gmra.mxu1 %v8877_v46  ;;  %v3784_v13 = vpop.f32.mrf.mxu0  ;;  %v3803_v58 = vpop.f32.mrf.mxu1  ;;  %v3821_v18 = vadd.f32 %v3820_v17, %v8880_v43  ;;  %4975 = vmatpush.bf16.msra.mxu0 %v6415_v23  ;;  %v7229_v17 = vld [vmem:[#allocation20 + $0x364] sm:$0xf0] }
 0x706   :  { %v3785_v50 = vadd.f32 %v3784_v13, %v8873_v31 }
 0x707   :  { %v3840_v34 = vadd.f32 %v3839_v44, %v3821_v18  ;;  %v7132_v44 = vld [vmem:[#allocation20 + $0x64] sm:$0xf]  ;;  %v6859_v18 = vor.u32 %v7247_v0, %v6858_v60  ;;  %v7126_v60 = vld [vmem:[#allocation20 + $0x34] sm:$0xf]  ;;  %v6380_v0 = vld [vmem:[#allocation20 + $0x38] sm:$0xf0] }
 0x708   :  { %v3804_v16 = vadd.f32 %v3803_v58, %v3785_v50  ;;  %4923 = vmatpush.bf16.msrb.mxu1 %v6691_v32  ;;  %v6787_v58 = vor.u32 %v7229_v17, %v6786_v25  ;;  %v6407_v50 = vor.u32 %v7132_v44, %v6404_v12  ;;  %v7130_v32 = vld [vmem:[#allocation20 + $0x54] sm:$0xf]  ;;  %v6842_v25 = vld [vmem:[#allocation20 + $0x3d0] sm:$0xf]  ;;  %v7243_v17 = vld [vmem:[#allocation20 + $0x3d4] sm:$0xf0] }
 0x709   :  { %v4004_v29 = vmax.f32 %v3840_v34, 0.0  ;;  %4956 = vmatpush.bf16.msrb.mxu3 %v6859_v18  ;;  %v6850_v34 = vld [vmem:[#allocation20 + $0x3e0] sm:$0xf]  ;;  %v7146_v44 = vld [vmem:[#allocation20 + $0xd4] sm:$0xf] }
 0x70a   :  { %v4011_v4 = vmax.f32 %v3804_v16, 0.0  ;;  %4938 = vmatpush.bf16.msrb.mxu2 %v6787_v58  ;;  %4976 = vmatpush.bf16.msra.mxu0 %v6407_v50  ;;  %v6843_v58 = vor.u32 %v7243_v17, %v6842_v25  ;;  %v6460_v12 = vld [vmem:[#allocation20 + $0xd8] sm:$0xf0]  ;;  %v6834_v18 = vld [vmem:[#allocation20 + $0x3c0] sm:$0xf] }
 0x70c   :  { %v8885_v41 = vpack.c.bf16 %v4011_v4, %v4003_v61  ;;  %v3822_v38 = vpop.f32.mrf.mxu2  ;;  %v3841_v7 = vpop.f32.mrf.mxu3  ;;  %4924 = vmatpush.bf16.msrb.mxu1 %v6683_v56  ;;  %v6778_v61 = vld [vmem:[#allocation20 + $0x350] sm:$0xf]  ;;  %v7227_v4 = vld [vmem:[#allocation20 + $0x354] sm:$0xf0]  ;;  %v6471_v56 = vor.u32 %v7148_v55, %v6468_v3 }
 0x70d   :  { %v3823_v59 = vadd.f32 %v3822_v38, %v8880_v43  ;;  %v3787_v19 = vpop.f32.mrf.mxu0  ;;  %v3806_v1 = vpop.f32.mrf.mxu1  ;;  %v6779_v14 = vor.u32 %v7227_v4, %v6778_v61  ;;  %v6396_v38 = vld [vmem:[#allocation20 + $0x58] sm:$0xf0]  ;;  %v6835_v61 = vor.u32 %v7241_v33, %v6834_v18  ;;  %v7144_v4 = vld [vmem:[#allocation20 + $0xc4] sm:$0xf] }
 0x70e   :  { %4869 = vmatmul.bf16.vlgmr.msra.gmra.mxu2 %v8885_v41  ;;  %v3788_v20 = vadd.f32 %v3787_v19, %v8873_v31  ;;  %v6399_v36 = vor.u32 %v7130_v32, %v6396_v38  ;;  %v6452_v32 = vld [vmem:[#allocation20 + $0xc8] sm:$0xf0]  ;;  %v6754_v38 = vld [vmem:[#allocation20 + $0x320] sm:$0xf] }
 0x70f   :  { %v3842_v39 = vadd.f32 %v3841_v7, %v3823_v59  ;;  %v7245_v59 = vld [vmem:[#allocation20 + $0x3e4] sm:$0xf0]  ;;  %4939 = vmatpush.bf16.msrb.mxu2 %v6779_v14  ;;  %v6455_v14 = vor.u32 %v7144_v4, %v6452_v32  ;;  %v6356_v4 = vld [vmem:[#allocation20 + $0x8] sm:$0xf0] }
 0x710   :  { %4925 = vmatpush.bf16.msrb.mxu1 %v6675_v2  ;;  %v3807_v16 = vadd.f32 %v3806_v1, %v3788_v20  ;;  %v6851_v1 = vor.u32 %v7245_v59, %v6850_v34  ;;  %4977 = vmatpush.bf16.msra.mxu0 %v6399_v36  ;;  %v8906_v36 = vperm.slane %v8848_v15, 5 }
 0x711   :  { %v4012_v62 = vmax.f32 %v3842_v39, 0.0  ;;  %v6770_v39 = vld [vmem:[#allocation20 + $0x340] sm:$0xf] }
 0x712   :  { %v4019_v19 = vmax.f32 %v3807_v16, 0.0  ;;  %4957 = vmatpush.bf16.msrb.mxu3 %v6851_v1  ;;  %v6372_v1 = vld [vmem:[#allocation20 + $0x28] sm:$0xf0] }
 0x713   :  { %v8890_v54 = vpack.c.bf16 %v4012_v62, %v4004_v29  ;;  %v6771_v29 = vor.u32 %v7225_v47, %v6770_v39  ;;  %v6388_v62 = vld [vmem:[#allocation20 + $0x48] sm:$0xf0]  ;;  %v6826_v39 = vld [vmem:[#allocation20 + $0x3b0] sm:$0xf]  ;;  %v7239_v47 = vld [vmem:[#allocation20 + $0x3b4] sm:$0xf0] }
 0x714   :  { %v3825_v10 = vpop.f32.mrf.mxu2  ;;  %v3844_v13 = vpop.f32.mrf.mxu3  ;;  %4994 = vmatpush.bf16.msra.mxu1 %v6479_v9  ;;  %v6391_v2 = vor.u32 %v7128_v28, %v6388_v62  ;;  %v7142_v28 = vld [vmem:[#allocation20 + $0xb4] sm:$0xf]  ;;  %v6444_v62 = vld [vmem:[#allocation20 + $0xb8] sm:$0xf0] }
 0x715   :  { %4888 = vmatmul.bf16.vlgmr.msra.gmra.mxu3 %v8890_v54  ;;  %v3789_v42 = vpop.f32.mrf.mxu0  ;;  %v3808_v48 = vpop.f32.mrf.mxu1  ;;  %v3826_v7 = vadd.f32 %v3825_v10, %v8880_v43  ;;  %v8899_v10 = vperm.slane %v8848_v15, 4  ;;  %4940 = vmatpush.bf16.msrb.mxu2 %v6771_v29  ;;  %v6827_v29 = vor.u32 %v7239_v47, %v6826_v39  ;;  %v7166_v47 = vld [vmem:[#allocation20 + $0x174] sm:$0xf] }
 0x716   :  { %v3790_v22 = vadd.f32 %v3789_v42, %v8873_v31  ;;  %4978 = vmatpush.bf16.msra.mxu0 %v6391_v2  ;;  %4958 = vmatpush.bf16.msrb.mxu3 %v6843_v58  ;;  %v7122_v2 = vld [vmem:[#allocation20 + $0x14] sm:$0xf] }
 0x717   :  { %v3845_v23 = vadd.f32 %v3844_v13, %v3826_v7  ;;  %v6463_v13 = vor.u32 %v7146_v44, %v6460_v12  ;;  %v7221_v7 = vld [vmem:[#allocation20 + $0x324] sm:$0xf0]  ;;  %v6364_v44 = vld [vmem:[#allocation20 + $0x18] sm:$0xf0] }
 0x718   :  { %v3809_v8 = vadd.f32 %v3808_v48, %v3790_v22  ;;  %4995 = vmatpush.bf16.msra.mxu1 %v6471_v56  ;;  %v6762_v48 = vld [vmem:[#allocation20 + $0x330] sm:$0xf]  ;;  %v6383_v22 = vor.u32 %v7126_v60, %v6380_v0  ;;  %v6367_v12 = vor.u32 %v7122_v2, %v6364_v44  ;;  %v6436_v60 = vld [vmem:[#allocation20 + $0xa8] sm:$0xf0] }
 0x719   :  { %v4020_v11 = vmax.f32 %v3845_v23, 0.0  ;;  %v6447_v23 = vor.u32 %v7142_v28, %v6444_v62  ;;  %v6540_v28 = vld [vmem:[#allocation20 + $0x178] sm:$0xf0]  ;;  %v6420_v44 = vld [vmem:[#allocation20 + $0x88] sm:$0xf0] }
 0x71a   :  { %v4027_v31 = vmax.f32 %v3809_v8, 0.0  ;;  %4979 = vmatpush.bf16.msra.mxu0 %v6383_v22  ;;  %4959 = vmatpush.bf16.msrb.mxu3 %v6835_v61  ;;  %v7120_v22 = vld [vmem:[#allocation20 + $0x4] sm:$0xf] }
 0x71c   :  { %v3827_v52 = vpop.f32.mrf.mxu2  ;;  %v3846_v6 = vpop.f32.mrf.mxu3  ;;  %v8895_v45 = vpack.c.bf16 %v4027_v31, %v4019_v19  ;;  %4996 = vmatpush.bf16.msra.mxu1 %v6463_v13  ;;  %v6755_v19 = vor.u32 %v7221_v7, %v6754_v38  ;;  %v7124_v31 = vld [vmem:[#allocation20 + $0x24] sm:$0xf] }
 0x71d   :  { %v3828_v63 = vadd.f32 %v3827_v52, %v8880_v43  ;;  %v3858_v27 = vpop.f32.mrf.mxu0  ;;  %v3877_v20 = vpop.f32.mrf.mxu1  ;;  %v7223_v43 = vld [vmem:[#allocation20 + $0x334] sm:$0xf0]  ;;  %v6375_v56 = vor.u32 %v7124_v31, %v6372_v1  ;;  %v7138_v1 = vld [vmem:[#allocation20 + $0x94] sm:$0xf] }
 0x71e   :  { %4874 = vmatmul.bf16.gmra.mxu2 %v8895_v45  ;;  %v6763_v50 = vor.u32 %v7223_v43, %v6762_v48  ;;  %v3859_v9 = vadd.f32 %v3858_v27, %v8899_v10  ;;  %v7219_v27 = vld [vmem:[#allocation20 + $0x314] sm:$0xf0]  ;;  %4960 = vmatpush.bf16.msrb.mxu3 %v6827_v29 }
 0x71f   :  { %v3847_v42 = vadd.f32 %v3846_v6, %v3828_v63  ;;  %4980 = vmatpush.bf16.msra.mxu0 %v6375_v56  ;;  %v6746_v63 = vld [vmem:[#allocation20 + $0x310] sm:$0xf]  ;;  %v7235_v31 = vld [vmem:[#allocation20 + $0x394] sm:$0xf0] }
 0x720   :  { %4941 = vmatpush.bf16.msrb.mxu2 %v6763_v50  ;;  %4997 = vmatpush.bf16.msra.mxu1 %v6455_v14  ;;  %v3878_v52 = vadd.f32 %v3877_v20, %v3859_v9  ;;  %v6747_v17 = vor.u32 %v7219_v27, %v6746_v63  ;;  %v7237_v20 = vld [vmem:[#allocation20 + $0x3a4] sm:$0xf0]  ;;  %v7140_v50 = vld [vmem:[#allocation20 + $0xa4] sm:$0xf]  ;;  %v6802_v63 = vld [vmem:[#allocation20 + $0x380] sm:$0xf] }
 0x721   :  { %v4028_v16 = vmax.f32 %v3847_v42, 0.0  ;;  %v6818_v42 = vld [vmem:[#allocation20 + $0x3a0] sm:$0xf]  ;;  %v6439_v0 = vor.u32 %v7140_v50, %v6436_v60  ;;  %v7233_v27 = vld [vmem:[#allocation20 + $0x384] sm:$0xf0] }
 0x722   :  { %v4005_v13 = vmax.f32 %v3878_v52, 0.0  ;;  %v6819_v43 = vor.u32 %v7237_v20, %v6818_v42  ;;  %v6543_v52 = vor.u32 %v7166_v47, %v6540_v28  ;;  %v7164_v42 = vld [vmem:[#allocation20 + $0x164] sm:$0xf]  ;;  %v6532_v20 = vld [vmem:[#allocation20 + $0x168] sm:$0xf0] }
 0x723   :  { %v8903_v8 = vpack.c.bf16 %v4028_v16, %v4020_v11  ;;  %4981 = vmatpush.bf16.msra.mxu0 %v6367_v12  ;;  %v6738_v11 = vld [vmem:[#allocation20 + $0x300] sm:$0xf]  ;;  %v7217_v16 = vld [vmem:[#allocation20 + $0x304] sm:$0xf0]  ;;  %v6535_v50 = vor.u32 %v7164_v42, %v6532_v20  ;;  %v6660_v60 = vld [vmem:[#allocation20 + $0x268] sm:$0xf0] }
 0x724   :  { %v3896_v34 = vpop.f32.mrf.mxu2  ;;  %v3915_v59 = vpop.f32.mrf.mxu3  ;;  %4942 = vmatpush.bf16.msrb.mxu2 %v6755_v19  ;;  %4998 = vmatpush.bf16.msra.mxu1 %v6447_v23  ;;  %v6739_v61 = vor.u32 %v7217_v16, %v6738_v11  ;;  %v6810_v19 = vld [vmem:[#allocation20 + $0x390] sm:$0xf]  ;;  %v6596_v47 = vld [vmem:[#allocation20 + $0x1e8] sm:$0xf0] }
 0x725   :  { %4893 = vmatmul.bf16.gmra.mxu3 %v8903_v8  ;;  %v3860_v55 = vpop.f32.mrf.mxu0  ;;  %v3879_v3 = vpop.f32.mrf.mxu1  ;;  %v3897_v58 = vadd.f32 %v3896_v34, %v8906_v36  ;;  %v6359_v34 = vor.u32 %v7120_v22, %v6356_v4  ;;  %v7182_v22 = vld [vmem:[#allocation20 + $0x1f4] sm:$0xf] }
 0x726   :  { %v3861_v6 = vadd.f32 %v3860_v55, %v8899_v10  ;;  %4961 = vmatpush.bf16.msrb.mxu3 %v6819_v43  ;;  %v6811_v55 = vor.u32 %v7235_v31, %v6810_v19  ;;  %v6524_v19 = vld [vmem:[#allocation20 + $0x158] sm:$0xf0]  ;;  %v7194_v31 = vld [vmem:[#allocation20 + $0x254] sm:$0xf] }
 0x727   :  { %v3916_v32 = vadd.f32 %v3915_v59, %v3897_v58  ;;  %4982 = vmatpush.bf16.msra.mxu0 %v6359_v34  ;;  %v7198_v59 = vld [vmem:[#allocation20 + $0x274] sm:$0xf] }
 0x728   :  { %v3880_v25 = vadd.f32 %v3879_v3, %v3861_v6  ;;  %4943 = vmatpush.bf16.msrb.mxu2 %v6747_v17  ;;  %4999 = vmatpush.bf16.msra.mxu1 %v6439_v0  ;;  %v6428_v3 = vld [vmem:[#allocation20 + $0x98] sm:$0xf0]  ;;  %v7136_v17 = vld [vmem:[#allocation20 + $0x84] sm:$0xf]  ;;  %v7162_v34 = vld [vmem:[#allocation20 + $0x154] sm:$0xf] }
 0x729   :  { %v6431_v39 = vor.u32 %v7138_v1, %v6428_v3  ;;  %v6668_v6 = vld [vmem:[#allocation20 + $0x278] sm:$0xf0]  ;;  %v4006_v29 = vmax.f32 %v3916_v32, 0.0  ;;  %v6423_v12 = vor.u32 %v7136_v17, %v6420_v44  ;;  %v6644_v44 = vld [vmem:[#allocation20 + $0x248] sm:$0xf0] }
 0x72a   :  { %v4013_v48 = vmax.f32 %v3880_v25, 0.0  ;;  %4962 = vmatpush.bf16.msrb.mxu3 %v6811_v55  ;;  %v6671_v23 = vor.u32 %v7198_v59, %v6668_v6  ;;  %v6803_v25 = vor.u32 %v7233_v27, %v6802_v63  ;;  %v6527_v55 = vor.u32 %v7162_v34, %v6524_v19  ;;  %v6652_v3 = vld [vmem:[#allocation20 + $0x258] sm:$0xf0]  ;;  %v6724_v6 = vld [vmem:[#allocation20 + $0x2e8] sm:$0xf0] }
 0x72b   :  { %v7192_v63 = vld [vmem:[#allocation20 + $0x244] sm:$0xf] }
 0x72c   :  { %v8911_v18 = vpack.c.bf16 %v4013_v48, %v4005_v13  ;;  %v3898_v33 = vpop.f32.mrf.mxu2  ;;  %v3917_v9 = vpop.f32.mrf.mxu3  ;;  %4944 = vmatpush.bf16.msrb.mxu2 %v6739_v61  ;;  %5000 = vmatpush.bf16.msra.mxu1 %v6431_v39  ;;  %v7196_v13 = vld [vmem:[#allocation20 + $0x264] sm:$0xf]  ;;  %v6655_v39 = vor.u32 %v7194_v31, %v6652_v3  ;;  %v6580_v31 = vld [vmem:[#allocation20 + $0x1c8] sm:$0xf0] }
 0x72d   :  { %v3899_v14 = vadd.f32 %v3898_v33, %v8906_v36  ;;  %v3863_v38 = vpop.f32.mrf.mxu0  ;;  %v3882_v7 = vpop.f32.mrf.mxu1  ;;  %v6663_v16 = vor.u32 %v7196_v13, %v6660_v60  ;;  %v6604_v33 = vld [vmem:[#allocation20 + $0x1f8] sm:$0xf0]  ;;  %v7176_v19 = vld [vmem:[#allocation20 + $0x1c4] sm:$0xf] }
 0x72e   :  { %4907 = vmatmul.bf16.vlgmr.msrb.gmra.mxu0 %v8911_v18  ;;  %v3864_v2 = vadd.f32 %v3863_v38, %v8899_v10  ;;  %4963 = vmatpush.bf16.msrb.mxu3 %v6803_v25  ;;  %v6607_v32 = vor.u32 %v7182_v22, %v6604_v33  ;;  %v6588_v60 = vld [vmem:[#allocation20 + $0x1d8] sm:$0xf0]  ;;  %v7208_v3 = vld [vmem:[#allocation20 + $0x2c4] sm:$0xf] }
 0x72f   :  { %v3918_v56 = vadd.f32 %v3917_v9, %v3899_v14  ;;  %5051 = vmatpush.bf16.msrb.mxu0 %v6671_v23  ;;  %v7214_v9 = vld [vmem:[#allocation20 + $0x2f4] sm:$0xf]  ;;  %v6732_v14 = vld [vmem:[#allocation20 + $0x2f8] sm:$0xf0]  ;;  %v6516_v23 = vld [vmem:[#allocation20 + $0x148] sm:$0xf0] }
 0x730   :  { %5013 = vmatpush.bf16.msra.mxu2 %v6543_v52  ;;  %v3883_v61 = vadd.f32 %v3882_v7, %v3864_v2  ;;  %5001 = vmatpush.bf16.msra.mxu1 %v6423_v12  ;;  %v6735_v38 = vor.u32 %v7214_v9, %v6732_v14  ;;  %v7180_v7 = vld [vmem:[#allocation20 + $0x1e4] sm:$0xf]  ;;  %v6716_v22 = vld [vmem:[#allocation20 + $0x2d8] sm:$0xf0]  ;;  %v7158_v9 = vld [vmem:[#allocation20 + $0x134] sm:$0xf] }
 0x731   :  { %v4014_v62 = vmax.f32 %v3918_v56, 0.0  ;;  %v6599_v59 = vor.u32 %v7180_v7, %v6596_v47  ;;  %v7212_v52 = vld [vmem:[#allocation20 + $0x2e4] sm:$0xf] }
 0x732   :  { %5032 = vmatpush.bf16.msra.mxu3 %v6607_v32  ;;  %v6636_v32 = vld [vmem:[#allocation20 + $0x238] sm:$0xf0]  ;;  %v7156_v47 = vld [vmem:[#allocation20 + $0x124] sm:$0xf] }
 0x733   :  { %v8916_v58 = vpack.c.bf16 %v4014_v62, %v4006_v29  ;;  %5052 = vmatpush.bf16.msrb.mxu0 %v6663_v16  ;;  %v6727_v29 = vor.u32 %v7212_v52, %v6724_v6  ;;  %v7160_v62 = vld [vmem:[#allocation20 + $0x144] sm:$0xf] }
 0x734   :  { %v3901_v48 = vpop.f32.mrf.mxu2  ;;  %v3920_v43 = vpop.f32.mrf.mxu3  ;;  %5014 = vmatpush.bf16.msra.mxu2 %v6535_v50  ;;  %v6519_v17 = vor.u32 %v7160_v62, %v6516_v23  ;;  %v7178_v50 = vld [vmem:[#allocation20 + $0x1d4] sm:$0xf]  ;;  %v6628_v62 = vld [vmem:[#allocation20 + $0x228] sm:$0xf0] }
 0x735   :  { %4926 = vmatmul.bf16.vlgmr.msrb.gmra.mxu1 %v8916_v58  ;;  %v3865_v0 = vpop.f32.mrf.mxu0  ;;  %v3884_v11 = vpop.f32.mrf.mxu1  ;;  %v3902_v56 = vadd.f32 %v3901_v48, %v8906_v36  ;;  %v6647_v48 = vor.u32 %v7192_v63, %v6644_v44  ;;  %v6591_v16 = vor.u32 %v7178_v50, %v6588_v60  ;;  %v7206_v44 = vld [vmem:[#allocation20 + $0x2b4] sm:$0xf]  ;;  %v6492_v50 = vld [vmem:[#allocation20 + $0x118] sm:$0xf0] }
 0x736   :  { %v3866_v4 = vadd.f32 %v3865_v0, %v8899_v10  ;;  %5070 = vmatpush.bf16.msrb.mxu1 %v6735_v38  ;;  %v4021_v10 = vmax.f32 %v3883_v61, 0.0  ;;  %5033 = vmatpush.bf16.msra.mxu3 %v6599_v59  ;;  %v7210_v0 = vld [vmem:[#allocation20 + $0x2d4] sm:$0xf]  ;;  %v8932_v59 = vperm.slane %v8848_v15, 7 }
 0x737   :  { %5053 = vmatpush.bf16.msrb.mxu0 %v6655_v39  ;;  %v3921_v12 = vadd.f32 %v3920_v43, %v3902_v56  ;;  %v6719_v43 = vor.u32 %v7210_v0, %v6716_v22  ;;  %v7190_v61 = vld [vmem:[#allocation20 + $0x234] sm:$0xf]  ;;  %v6708_v56 = vld [vmem:[#allocation20 + $0x2c8] sm:$0xf0]  ;;  %v6620_v22 = vld [vmem:[#allocation20 + $0x218] sm:$0xf0] }
 0x738   :  { %v3885_v1 = vadd.f32 %v3884_v11, %v3866_v4  ;;  %5015 = vmatpush.bf16.msra.mxu2 %v6527_v55  ;;  %v8925_v11 = vperm.slane %v8848_v15, 6  ;;  %v6639_v34 = vor.u32 %v7190_v61, %v6636_v32  ;;  %v6583_v55 = vor.u32 %v7176_v19, %v6580_v31  ;;  %v7204_v61 = vld [vmem:[#allocation20 + $0x2a4] sm:$0xf]  ;;  %v6484_v31 = vld [vmem:[#allocation20 + $0x108] sm:$0xf0] }
 0x739   :  { %v4022_v14 = vmax.f32 %v3921_v12, 0.0  ;;  %v6711_v7 = vor.u32 %v7208_v3, %v6708_v56  ;;  %v7152_v19 = vld [vmem:[#allocation20 + $0x104] sm:$0xf] }
 0x73a   :  { %v4029_v28 = vmax.f32 %v3885_v1, 0.0  ;;  %5071 = vmatpush.bf16.msrb.mxu1 %v6727_v29  ;;  %5034 = vmatpush.bf16.msra.mxu3 %v6591_v16  ;;  %v7186_v16 = vld [vmem:[#allocation20 + $0x214] sm:$0xf] }
 0x73b   :  { %5054 = vmatpush.bf16.msrb.mxu0 %v6647_v48  ;;  %v7154_v48 = vld [vmem:[#allocation20 + $0x114] sm:$0xf] }
 0x73c   :  { %v8921_v27 = vpack.c.bf16 %v4029_v28, %v4021_v10  ;;  %v3903_v2 = vpop.f32.mrf.mxu2  ;;  %v3922_v25 = vpop.f32.mrf.mxu3  ;;  %5016 = vmatpush.bf16.msra.mxu2 %v6519_v17  ;;  %v6500_v10 = vld [vmem:[#allocation20 + $0x128] sm:$0xf0]  ;;  %v7188_v28 = vld [vmem:[#allocation20 + $0x224] sm:$0xf]  ;;  %v6572_v17 = vld [vmem:[#allocation20 + $0x1b8] sm:$0xf0]  ;;  %v6495_v0 = vor.u32 %v7154_v48, %v6492_v50 }
 0x73d   :  { %v3904_v42 = vadd.f32 %v3903_v2, %v8906_v36  ;;  %v3934_v20 = vpop.f32.mrf.mxu0  ;;  %v3953_v13 = vpop.f32.mrf.mxu1  ;;  %v6508_v36 = vld [vmem:[#allocation20 + $0x138] sm:$0xf0]  ;;  %v6503_v29 = vor.u32 %v7156_v47, %v6500_v10  ;;  %v6631_v2 = vor.u32 %v7188_v28, %v6628_v62  ;;  %v6612_v47 = vld [vmem:[#allocation20 + $0x208] sm:$0xf0]  ;;  %v7170_v10 = vld [vmem:[#allocation20 + $0x194] sm:$0xf] }
 0x73e   :  { %4912 = vmatmul.bf16.gmra.mxu0 %v8921_v27  ;;  %v6511_v4 = vor.u32 %v7158_v9, %v6508_v36  ;;  %5072 = vmatpush.bf16.msrb.mxu1 %v6719_v43  ;;  %v3935_v1 = vadd.f32 %v3934_v20, %v8925_v11  ;;  %v6700_v20 = vld [vmem:[#allocation20 + $0x2b8] sm:$0xf0]  ;;  %v6623_v9 = vor.u32 %v7186_v16, %v6620_v22  ;;  %v6564_v36 = vld [vmem:[#allocation20 + $0x1a8] sm:$0xf0]  ;;  %v7168_v50 = vld [vmem:[#allocation20 + $0x184] sm:$0xf] }
 0x73f   :  { %v3923_v33 = vadd.f32 %v3922_v25, %v3904_v42  ;;  %5055 = vmatpush.bf16.msrb.mxu0 %v6639_v34  ;;  %5035 = vmatpush.bf16.msra.mxu3 %v6583_v55  ;;  %v7174_v25 = vld [vmem:[#allocation20 + $0x1b4] sm:$0xf]  ;;  %v6703_v60 = vor.u32 %v7206_v44, %v6700_v20  ;;  %v6556_v28 = vld [vmem:[#allocation20 + $0x198] sm:$0xf0]  ;;  %v7200_v22 = vld [vmem:[#allocation20 + $0x284] sm:$0xf] }
 0x740   :  { %5017 = vmatpush.bf16.msra.mxu2 %v6511_v4  ;;  %v3954_v12 = vadd.f32 %v3953_v13, %v3935_v1  ;;  %v6575_v15 = vor.u32 %v7174_v25, %v6572_v17  ;;  %v6692_v13 = vld [vmem:[#allocation20 + $0x2a8] sm:$0xf0]  ;;  %v7184_v1 = vld [vmem:[#allocation20 + $0x204] sm:$0xf]  ;;  %v7202_v25 = vld [vmem:[#allocation20 + $0x294] sm:$0xf] }
 0x741   :  { %v4030_v38 = vmax.f32 %v3923_v33, 0.0  ;;  %v7172_v33 = vld [vmem:[#allocation20 + $0x1a4] sm:$0xf]  ;;  %v6695_v34 = vor.u32 %v7204_v61, %v6692_v13  ;;  %v6684_v17 = vld [vmem:[#allocation20 + $0x298] sm:$0xf0] }
 0x742   :  { %5073 = vmatpush.bf16.msrb.mxu1 %v6711_v7  ;;  %v6567_v32 = vor.u32 %v7172_v33, %v6564_v36  ;;  %v6487_v7 = vor.u32 %v7152_v19, %v6484_v31  ;;  %v7230_v44 = vld [vmem:[#allocation20 + $0x374] sm:$0xf]  ;;  %v6676_v33 = vld [vmem:[#allocation20 + $0x288] sm:$0xf0] }
 0x743   :  { %v8929_v39 = vpack.c.bf16 %v4030_v38, %v4022_v14  ;;  %5056 = vmatpush.bf16.msrb.mxu0 %v6631_v2  ;;  %5036 = vmatpush.bf16.msra.mxu3 %v6575_v15  ;;  %v4007_v14 = vmax.f32 %v3954_v12, 0.0  ;;  %v6559_v2 = vor.u32 %v7170_v10, %v6556_v28  ;;  %v6796_v12 = vld [vmem:[#allocation20 + $0x378] sm:$0xf0]  ;;  %v6687_v15 = vor.u32 %v7202_v25, %v6684_v17  ;;  %v6788_v36 = vld [vmem:[#allocation20 + $0x368] sm:$0xf0] }
 0x744   :  { %v3972_v52 = vpop.f32.mrf.mxu2  ;;  %v3991_v6 = vpop.f32.mrf.mxu3  ;;  %5018 = vmatpush.bf16.msra.mxu2 %v6503_v29  ;;  %v6799_v20 = vor.u32 %v7230_v44, %v6796_v12  ;;  %v7244_v28 = vld [vmem:[#allocation20 + $0x3e4] sm:$0xf]  ;;  %v7242_v17 = vld [vmem:[#allocation20 + $0x3d4] sm:$0xf]  ;;  %v6844_v44 = vld [vmem:[#allocation20 + $0x3d8] sm:$0xf0] }
 0x745   :  { %4931 = vmatmul.bf16.gmra.mxu1 %v8929_v39  ;;  %v3936_v23 = vpop.f32.mrf.mxu0  ;;  %v3955_v63 = vpop.f32.mrf.mxu1  ;;  %v3973_v4 = vadd.f32 %v3972_v52, %v8932_v59 }
 0x746   :  { %v3937_v42 = vadd.f32 %v3936_v23, %v8925_v11  ;;  %5074 = vmatpush.bf16.msrb.mxu1 %v6703_v60  ;;  %v6548_v60 = vld [vmem:[#allocation20 + $0x188] sm:$0xf0] }
 0x747   :  { %5057 = vmatpush.bf16.msrb.mxu0 %v6623_v9  ;;  %5037 = vmatpush.bf16.msra.mxu3 %v6567_v32  ;;  %v3992_v52 = vadd.f32 %v3991_v6, %v3973_v4  ;;  %v6551_v16 = vor.u32 %v7168_v50, %v6548_v60  ;;  %v7228_v9 = vld [vmem:[#allocation20 + $0x364] sm:$0xf] }
 0x748   :  { %v3956_v43 = vadd.f32 %v3955_v63, %v3937_v42  ;;  %5019 = vmatpush.bf16.msra.mxu2 %v6495_v0  ;;  %v6615_v63 = vor.u32 %v7184_v1, %v6612_v47  ;;  %v6791_v4 = vor.u32 %v7228_v9, %v6788_v36  ;;  %v6756_v36 = vld [vmem:[#allocation20 + $0x328] sm:$0xf0] }
 0x749   :  { %v4008_v6 = vmax.f32 %v3992_v52, 0.0  ;;  %v6852_v52 = vld [vmem:[#allocation20 + $0x3e8] sm:$0xf0] }
 0x74a   :  { %v4015_v38 = vmax.f32 %v3956_v43, 0.0  ;;  %5075 = vmatpush.bf16.msrb.mxu1 %v6695_v34  ;;  %v6679_v43 = vor.u32 %v7200_v22, %v6676_v33  ;;  %v7226_v34 = vld [vmem:[#allocation20 + $0x354] sm:$0xf]  ;;  %v7240_v22 = vld [vmem:[#allocation20 + $0x3c4] sm:$0xf] }
 0x74b   :  { %5058 = vmatpush.bf16.msrb.mxu0 %v6615_v63  ;;  %5038 = vmatpush.bf16.msra.mxu3 %v6559_v2  ;;  %v7224_v63 = vld [vmem:[#allocation20 + $0x344] sm:$0xf]  ;;  %v6836_v33 = vld [vmem:[#allocation20 + $0x3c8] sm:$0xf0] }
 0x74c   :  { %v8937_v55 = vpack.c.bf16 %v4015_v38, %v4007_v14  ;;  %v3974_v3 = vpop.f32.mrf.mxu2  ;;  %v3993_v56 = vpop.f32.mrf.mxu3  ;;  %5020 = vmatpush.bf16.msra.mxu2 %v6487_v7  ;;  %v7246_v14 = vld [vmem:[#allocation20 + $0x3f4] sm:$0xf]  ;;  %v6860_v38 = vld [vmem:[#allocation20 + $0x3f8] sm:$0xf0] }
 0x74d   :  { %v3975_v29 = vadd.f32 %v3974_v3, %v8932_v59  ;;  %v3939_v62 = vpop.f32.mrf.mxu0  ;;  %v3958_v23 = vpop.f32.mrf.mxu1  ;;  %v6863_v1 = vor.u32 %v7246_v14, %v6860_v38  ;;  %v6780_v3 = vld [vmem:[#allocation20 + $0x358] sm:$0xf0] }
 0x74e   :  { %4945 = vmatmul.bf16.vlgmr.msrb.gmra.mxu2 %v8937_v55  ;;  %4983 = vmatmul.bf16.vlgmr.msra.gmra.mxu0 %v8859_v5  ;;  %v3940_v0 = vadd.f32 %v3939_v62, %v8925_v11  ;;  %v6783_v7 = vor.u32 %v7226_v34, %v6780_v3  ;;  %v6855_v62 = vor.u32 %v7244_v28, %v6852_v52  ;;  %v6748_v14 = vld [vmem:[#allocation20 + $0x318] sm:$0xf0]  ;;  %v8961_v34 = vld [vmem:[%s9079_s14] sm:$0x3] }
 0x74f   :  { %v3994_v42 = vadd.f32 %v3993_v56, %v3975_v29  ;;  %5076 = vmatpush.bf16.msrb.mxu1 %v6687_v15  ;;  %5039 = vmatpush.bf16.msra.mxu3 %v6551_v16  ;;  %v6847_v15 = vor.u32 %v7242_v17, %v6844_v44  ;;  %v6812_v28 = vld [vmem:[#allocation20 + $0x398] sm:$0xf0] }
 0x750   :  { %5089 = vmatpush.bf16.msrb.mxu2 %v6799_v20  ;;  %v3959_v19 = vadd.f32 %v3958_v23, %v3940_v0  ;;  %v6772_v23 = vld [vmem:[#allocation20 + $0x348] sm:$0xf0] }
 0x751   :  { %v4016_v48 = vmax.f32 %v3994_v42, 0.0  ;;  %v6775_v25 = vor.u32 %v7224_v63, %v6772_v23  ;;  %v6804_v63 = vld [vmem:[#allocation20 + $0x388] sm:$0xf0] }
 0x753   :  { %v8943_v5 = vpack.c.bf16 %v4016_v48, %v4008_v6  ;;  %5077 = vmatpush.bf16.msrb.mxu1 %v6679_v43  ;;  %v7222_v6 = vld [vmem:[#allocation20 + $0x334] sm:$0xf]  ;;  %v6764_v48 = vld [vmem:[#allocation20 + $0x338] sm:$0xf0]  ;;  %v6839_v43 = vor.u32 %v7240_v22, %v6836_v33 }
 0x754   :  { %v3977_v61 = vpop.f32.mrf.mxu2  ;;  %v3996_v13 = vpop.f32.mrf.mxu3  ;;  %5090 = vmatpush.bf16.msrb.mxu2 %v6791_v4  ;;  %v6767_v60 = vor.u32 %v7222_v6, %v6764_v48  ;;  %v7218_v4 = vld [vmem:[#allocation20 + $0x314] sm:$0xf] }
 0x755   :  { %4964 = vmatmul.bf16.vlgmr.msrb.gmra.mxu3 %v8943_v5  ;;  %5002 = vmatmul.bf16.vlgmr.msra.gmra.mxu1 %v8863_v49  ;;  %v3941_v32 = vpop.f32.mrf.mxu0  ;;  %v3960_v56 = vpop.f32.mrf.mxu1  ;;  %v3978_v10 = vadd.f32 %v3977_v61, %v8932_v59  ;;  %v4023_v49 = vmax.f32 %v3959_v19, 0.0  ;;  %v6751_v38 = vor.u32 %v7218_v4, %v6748_v14  ;;  %v7236_v19 = vld [vmem:[#allocation20 + $0x3a4] sm:$0xf] }
 0x756   :  { %v3942_v31 = vadd.f32 %v3941_v32, %v8925_v11  ;;  %5108 = vmatpush.bf16.msrb.mxu3 %v6863_v1 }
 0x757   :  { %v3997_v12 = vadd.f32 %v3996_v13, %v3978_v10  ;;  %v6828_v13 = vld [vmem:[#allocation20 + $0x3b8] sm:$0xf0] }
 0x758   :  { %v3961_v47 = vadd.f32 %v3960_v56, %v3942_v31  ;;  %5091 = vmatpush.bf16.msrb.mxu2 %v6783_v7  ;;  %v6820_v31 = vld [vmem:[#allocation20 + $0x3a8] sm:$0xf0]  ;;  %v7216_v56 = vld [vmem:[#allocation20 + $0x304] sm:$0xf]  ;;  %v7234_v7 = vld [vmem:[#allocation20 + $0x394] sm:$0xf] }
 0x759   :  { %v4024_v0 = vmax.f32 %v3997_v12, 0.0  ;;  %v6823_v3 = vor.u32 %v7236_v19, %v6820_v31  ;;  %v6815_v52 = vor.u32 %v7234_v7, %v6812_v28 }
 0x75a   :  { %v4031_v29 = vmax.f32 %v3961_v47, 0.0  ;;  %5109 = vmatpush.bf16.msrb.mxu3 %v6855_v62  ;;  %v4179_v47 = vperm.slane %v8961_v34, 0  ;;  %v7232_v62 = vld [vmem:[#allocation20 + $0x384] sm:$0xf] }
 0x75c   :  { %v8949_v2 = vpack.c.bf16 %v4031_v29, %v4023_v49  ;;  %v3979_v11 = vpop.f32.mrf.mxu2  ;;  %v3998_v20 = vpop.f32.mrf.mxu3  ;;  %5092 = vmatpush.bf16.msrb.mxu2 %v6775_v25  ;;  %v6807_v25 = vor.u32 %v7232_v62, %v6804_v63 }
 0x75d   :  { %v3980_v42 = vadd.f32 %v3979_v11, %v8932_v59  ;;  %v7220_v59 = vld [vmem:[#allocation20 + $0x324] sm:$0xf] }
 0x75e   :  { %4950 = vmatmul.bf16.gmra.mxu2 %v8949_v2  ;;  %4988 = vmatmul.bf16.gmra.mxu0 %v8869_v26  ;;  %v6759_v61 = vor.u32 %v7220_v59, %v6756_v36  ;;  %v7238_v26 = vld [vmem:[#allocation20 + $0x3b4] sm:$0xf] }
 0x75f   :  { %v3999_v50 = vadd.f32 %v3998_v20, %v3980_v42  ;;  %5110 = vmatpush.bf16.msrb.mxu3 %v6847_v15  ;;  %v6831_v32 = vor.u32 %v7238_v26, %v6828_v13 }
 0x760   :  { %5093 = vmatpush.bf16.msrb.mxu2 %v6767_v60 }
 0x761   :  { %v4032_v16 = vmax.f32 %v3999_v50, 0.0 }
 0x763   :  { %v8954_v9 = vpack.c.bf16 %v4032_v16, %v4024_v0  ;;  %5111 = vmatpush.bf16.msrb.mxu3 %v6839_v43 }
 0x764   :  { %5094 = vmatpush.bf16.msrb.mxu2 %v6759_v61 }
 0x765   :  { %4969 = vmatmul.bf16.gmra.mxu3 %v8954_v9  ;;  %5007 = vmatmul.bf16.gmra.mxu1 %v8877_v46  ;;  %v6740_v46 = vld [vmem:[#allocation20 + $0x308] sm:$0xf0] }
 0x766   :  { %v6743_v10 = vor.u32 %v7216_v56, %v6740_v46 }
 0x767   :  { %5112 = vmatpush.bf16.msrb.mxu3 %v6831_v32 }
 0x768   :  { %5095 = vmatpush.bf16.msrb.mxu2 %v6751_v38 }
 0x76a   :  { %v4832_v1 = vpop.f32.mrf.mxu0 }
 0x76b   :  { %5113 = vmatpush.bf16.msrb.mxu3 %v6823_v3  ;;  %v4833_v49 = vadd.f32 %v4832_v1, %v4179_v47 }
 0x76c   :  { %5096 = vmatpush.bf16.msrb.mxu2 %v6743_v10 }
 0x76e   :  { %5021 = vmatmul.bf16.vlgmr.msra.gmra.mxu2 %v8885_v41  ;;  %5059 = vmatmul.bf16.vlgmr.msrb.gmra.mxu0 %v8911_v18 }
 0x76f   :  { %5114 = vmatpush.bf16.msrb.mxu3 %v6815_v52 }
 0x771   :  { %v4851_v29 = vpop.f32.mrf.mxu1 }
 0x772   :  { %v4852_v23 = vadd.f32 %v4851_v29, %v4833_v49  ;;  %v4834_v11 = vpop.f32.mrf.mxu0 }
 0x773   :  { %5115 = vmatpush.bf16.msrb.mxu3 %v6807_v25  ;;  %v4835_v17 = vadd.f32 %v4834_v11, %v4179_v47 }
 0x775   :  { %5040 = vmatmul.bf16.vlgmr.msra.gmra.mxu3 %v8890_v54  ;;  %5078 = vmatmul.bf16.vlgmr.msrb.gmra.mxu1 %v8916_v58 }
 0x779   :  { %v4853_v44 = vpop.f32.mrf.mxu1 }
 0x77a   :  { %v4854_v12 = vadd.f32 %v4853_v44, %v4835_v17 }
 0x77b   :  { %v4837_v41 = vpop.f32.mrf.mxu0 }
 0x77c   :  { %v4838_v18 = vadd.f32 %v4837_v41, %v4179_v47 }
 0x77e   :  { %5026 = vmatmul.bf16.gmra.mxu2 %v8895_v45  ;;  %5064 = vmatmul.bf16.gmra.mxu0 %v8921_v27 }
 0x782   :  { %v4856_v42 = vpop.f32.mrf.mxu1 }
 0x783   :  { %v4857_v15 = vadd.f32 %v4856_v42, %v4838_v18  ;;  %v4839_v20 = vpop.f32.mrf.mxu0 }
 0x784   :  { %v4840_v6 = vadd.f32 %v4839_v20, %v4179_v47 }
 0x785   :  { %5045 = vmatmul.bf16.gmra.mxu3 %v8903_v8  ;;  %5083 = vmatmul.bf16.gmra.mxu1 %v8929_v39 }
 0x78a   :  { %v4858_v54 = vpop.f32.mrf.mxu1 }
 0x78b   :  { %v4859_v48 = vadd.f32 %v4858_v54, %v4840_v6 }
 0x78e   :  { %5097 = vmatmul.bf16.vlgmr.msrb.gmra.mxu2 %v8937_v55 }
 0x791   :  { %v4870_v58 = vpop.f32.mrf.mxu2 }
 0x792   :  { %v4871_v50 = vadd.f32 %v4870_v58, %v4852_v23 }
 0x795   :  { %5116 = vmatmul.bf16.vlgmr.msrb.gmra.mxu3 %v8943_v5 }
 0x798   :  { %v4889_v45 = vpop.f32.mrf.mxu3 }
 0x799   :  { %v4890_v60 = vadd.f32 %v4889_v45, %v4871_v50  ;;  %v4872_v27 = vpop.f32.mrf.mxu2 }
 0x79a   :  { %v4873_v0 = vadd.f32 %v4872_v27, %v4854_v12 }
 0x79e   :  { %5102 = vmatmul.bf16.gmra.mxu2 %v8949_v2 }
 0x7a0   :  { %v4891_v16 = vpop.f32.mrf.mxu3 }
 0x7a1   :  { %v4892_v8 = vadd.f32 %v4891_v16, %v4873_v0  ;;  %v4875_v22 = vpop.f32.mrf.mxu2  ;;  %v4180_v16 = vperm.slane %v8961_v34, 1 }
 0x7a2   :  { %v4876_v39 = vadd.f32 %v4875_v22, %v4857_v15 }
 0x7a5   :  { %5121 = vmatmul.bf16.gmra.mxu3 %v8954_v9 }
 0x7a8   :  { %v4894_v33 = vpop.f32.mrf.mxu3 }
 0x7a9   :  { %v4895_v43 = vadd.f32 %v4894_v33, %v4876_v39  ;;  %v4877_v59 = vpop.f32.mrf.mxu2 }
 0x7aa   :  { %v4878_v55 = vadd.f32 %v4877_v59, %v4859_v48 }
 0x7ab   :  { %v4908_v36 = vpop.f32.mrf.mxu0 }
 0x7ac   :  { %v4909_v61 = vadd.f32 %v4908_v36, %v4890_v60 }
 0x7b0   :  { %v4896_v26 = vpop.f32.mrf.mxu3 }
 0x7b1   :  { %v4897_v5 = vadd.f32 %v4896_v26, %v4878_v55 }
 0x7b2   :  { %v4927_v13 = vpop.f32.mrf.mxu1 }
 0x7b3   :  { %v4928_v4 = vadd.f32 %v4927_v13, %v4909_v61  ;;  %v4910_v32 = vpop.f32.mrf.mxu0 }
 0x7b4   :  { %v4911_v14 = vadd.f32 %v4910_v32, %v4892_v8 }
 0x7ba   :  { %v4929_v38 = vpop.f32.mrf.mxu1 }
 0x7bb   :  { %v4930_v2 = vadd.f32 %v4929_v38, %v4911_v14  ;;  %v4913_v19 = vpop.f32.mrf.mxu0 }
 0x7bc   :  { %v4914_v31 = vadd.f32 %v4913_v19, %v4895_v43 }
 0x7c2   :  { %v4932_v1 = vpop.f32.mrf.mxu1 }
 0x7c3   :  { %v4933_v3 = vadd.f32 %v4932_v1, %v4914_v31  ;;  %v4915_v56 = vpop.f32.mrf.mxu0 }
 0x7c4   :  { %v4916_v9 = vadd.f32 %v4915_v56, %v4897_v5 }
 0x7ca   :  { %v4934_v46 = vpop.f32.mrf.mxu1 }
 0x7cb   :  { %v4935_v7 = vadd.f32 %v4934_v46, %v4916_v9  ;;  %v4984_v11 = vpop.f32.mrf.mxu0 }
 0x7cc   :  { %v4985_v22 = vadd.f32 %v4984_v11, %v4180_v16 }
 0x7d1   :  { %v4946_v47 = vpop.f32.mrf.mxu2 }
 0x7d2   :  { %v4947_v10 = vadd.f32 %v4946_v47, %v4928_v4  ;;  %v5003_v17 = vpop.f32.mrf.mxu1 }
 0x7d3   :  { %v4986_v42 = vpop.f32.mrf.mxu0  ;;  %v5004_v33 = vadd.f32 %v5003_v17, %v4985_v22 }
 0x7d4   :  { %v4987_v26 = vadd.f32 %v4986_v42, %v4180_v16 }
 0x7d8   :  { %v4965_v28 = vpop.f32.mrf.mxu3 }
 0x7d9   :  { %v4966_v52 = vadd.f32 %v4965_v28, %v4947_v10  ;;  %v4948_v49 = vpop.f32.mrf.mxu2 }
 0x7da   :  { %v4949_v29 = vadd.f32 %v4948_v49, %v4930_v2  ;;  %v5005_v15 = vpop.f32.mrf.mxu1 }
 0x7db   :  { %v4989_v48 = vpop.f32.mrf.mxu0  ;;  %v5006_v13 = vadd.f32 %v5005_v15, %v4987_v26  ;;  %v5127_v47 = vadd.f32 %v4966_v52, %v8743_v35 }
 0x7dc   :  { %v4990_v31 = vadd.f32 %v4989_v48, %v4180_v16 }
 0x7e0   :  { %v4967_v62 = vpop.f32.mrf.mxu3 }
 0x7e1   :  { %v8976_v63 = vadd.f32 %v4967_v62, %v4949_v29  ;;  %v4951_v23 = vpop.f32.mrf.mxu2 }
 0x7e2   :  { %v4952_v25 = vadd.f32 %v4951_v23, %v4933_v3  ;;  %v5008_v45 = vpop.f32.mrf.mxu1 }
 0x7e3   :  { %v4991_v60 = vpop.f32.mrf.mxu0  ;;  %v5009_v56 = vadd.f32 %v5008_v45, %v4990_v31 }
 0x7e4   :  { %v4992_v11 = vadd.f32 %v4991_v60, %v4180_v16 }
 0x7e8   :  { %v4970_v44 = vpop.f32.mrf.mxu3 }
 0x7e9   :  { %v8978_v12 = vadd.f32 %v4970_v44, %v4952_v25  ;;  %v4953_v41 = vpop.f32.mrf.mxu2 }
 0x7ea   :  { %v4954_v18 = vadd.f32 %v4953_v41, %v4935_v7  ;;  %v5010_v8 = vpop.f32.mrf.mxu1 }
 0x7eb   :  { %v5060_v59 = vpop.f32.mrf.mxu0  ;;  %v5011_v44 = vadd.f32 %v5010_v8, %v4992_v11 }
 0x7f0   :  { %v4972_v20 = vpop.f32.mrf.mxu3 }
 0x7f1   :  { %v8980_v6 = vadd.f32 %v4972_v20, %v4954_v18  ;;  %v5022_v54 = vpop.f32.mrf.mxu2  ;;  %v5129_v20 = vadd.f32 %v8976_v63, %v8749_v30 }
 0x7f2   :  { %v5023_v55 = vadd.f32 %v5022_v54, %v5004_v33  ;;  %v5079_v61 = vpop.f32.mrf.mxu1 }
 0x7f3   :  { %v5062_v38 = vpop.f32.mrf.mxu0 }
 0x7f8   :  { %v5041_v58 = vpop.f32.mrf.mxu3 }
 0x7f9   :  { %v5024_v50 = vpop.f32.mrf.mxu2  ;;  %v5042_v36 = vadd.f32 %v5041_v58, %v5023_v55 }
 0x7fa   :  { %v5025_v14 = vadd.f32 %v5024_v50, %v5006_v13  ;;  %v5081_v1 = vpop.f32.mrf.mxu1 }
 0x7fb   :  { %v5061_v4 = vadd.f32 %v5060_v59, %v5042_v36  ;;  %v5065_v23 = vpop.f32.mrf.mxu0 }
 0x7fd   :  { %v5080_v19 = vadd.f32 %v5079_v61, %v5061_v4 }
 0x800   :  { %v5043_v27 = vpop.f32.mrf.mxu3 }
 0x801   :  { %v5027_v0 = vpop.f32.mrf.mxu2  ;;  %v5044_v2 = vadd.f32 %v5043_v27, %v5025_v14 }
 0x802   :  { %v5028_v10 = vadd.f32 %v5027_v0, %v5009_v56  ;;  %v5084_v42 = vpop.f32.mrf.mxu1  ;;  %v5131_v0 = vadd.f32 %v8978_v12, %v8798_v37 }
 0x803   :  { %v5063_v9 = vadd.f32 %v5062_v38, %v5044_v2  ;;  %v5067_v50 = vpop.f32.mrf.mxu0 }
 0x805   :  { %v5082_v29 = vadd.f32 %v5081_v1, %v5063_v9 }
 0x808   :  { %v5046_v39 = vpop.f32.mrf.mxu3 }
 0x809   :  { %v5029_v43 = vpop.f32.mrf.mxu2  ;;  %v5047_v49 = vadd.f32 %v5046_v39, %v5028_v10 }
 0x80a   :  { %v5030_v35 = vadd.f32 %v5029_v43, %v5011_v44  ;;  %v5086_v8 = vpop.f32.mrf.mxu1  ;;  %v5133_v43 = vadd.f32 %v8980_v6, %v8804_v51 }
 0x80b   :  { %v5066_v41 = vadd.f32 %v5065_v23, %v5047_v49 }
 0x80d   :  { %v5085_v54 = vadd.f32 %v5084_v42, %v5066_v41 }
 0x810   :  { %v5048_v5 = vpop.f32.mrf.mxu3 }
 0x811   :  { %v5098_v32 = vpop.f32.mrf.mxu2 }
 0x812   :  { %v5099_v34 = vadd.f32 %v5098_v32, %v5080_v19 }
 0x818   :  { %v5117_v3 = vpop.f32.mrf.mxu3 }
 0x819   :  { %v5118_v46 = vadd.f32 %v5117_v3, %v5099_v34  ;;  %v5100_v7 = vpop.f32.mrf.mxu2 }
 0x81a   :  { %v5101_v25 = vadd.f32 %v5100_v7, %v5082_v29 }
 0x81b   :  { %v5128_v28 = vadd.f32 %v5118_v46, %v8746_v53  ;;  %v5049_v53 = vadd.f32 %v5048_v5, %v5030_v35 }
 0x81d   :  { %v5137_v62 = vadd.f32 %v5128_v28, %v5127_v47  ;;  %v5068_v60 = vadd.f32 %v5067_v50, %v5049_v53 }
 0x81f   :  { %5138 = vadd.xlane.f32.xlu0 %v5137_v62  ;;  %v5087_v30 = vadd.f32 %v5086_v8, %v5068_v60 }
 0x820   :  { %v5119_v17 = vpop.f32.mrf.mxu3 }
 0x821   :  { %v5120_v18 = vadd.f32 %v5119_v17, %v5101_v25  ;;  %v5103_v15 = vpop.f32.mrf.mxu2 }
 0x822   :  { %v5104_v58 = vadd.f32 %v5103_v15, %v5085_v54  ;;  %v5136_v54 = vld [vmem:[#allocation22] sm:$0x3] }
 0x823   :  { %v5130_v52 = vadd.f32 %v5120_v18, %v8752_v21 }
 0x825   :  { %v5140_v48 = vadd.f32 %v5130_v52, %v5129_v20 }
 0x827   :  { %5141 = vadd.xlane.f32.xlu2 %v5140_v48 }
 0x828   :  { %v5122_v45 = vpop.f32.mrf.mxu3 }
 0x829   :  { %v5123_v27 = vadd.f32 %v5122_v45, %v5104_v58  ;;  %v5105_v22 = vpop.f32.mrf.mxu2 }
 0x82a   :  { %v5106_v39 = vadd.f32 %v5105_v22, %v5087_v30 }
 0x82b   :  { %v5132_v16 = vadd.f32 %v5123_v27, %v8801_v57 }
 0x82d   :  { %v5143_v63 = vadd.f32 %v5132_v16, %v5131_v0 }
 0x82f   :  { %5144 = vadd.xlane.f32.xlu1 %v5143_v63 }
 0x830   :  { %v5124_v21 = vpop.f32.mrf.mxu3 }
 0x831   :  { %v5125_v33 = vadd.f32 %v5124_v21, %v5106_v39 }
 0x833   :  { %v5134_v59 = vadd.f32 %v5125_v33, %v8807_v24 }
 0x835   :  { %v5146_v55 = vadd.f32 %v5134_v59, %v5133_v43 }
 0x837   :  { %5147 = vadd.xlane.f32.xlu0 %v5146_v55 }
 0x892   :  { %v5139_v36 = vpop.xlane.xlu0 %5138 }
 0x893   :  { %v5149_v37 = vmul.f32 %v5139_v36, %v8645_v40 }
 0x895   :  { %v5153_v12 = vsub.f32 %v5127_v47, %v5149_v37  ;;  %v5154_v57 = vsub.f32 %v5128_v28, %v5149_v37 }
 0x897   :  { %v5161_v61 = vmul.f32 %v5153_v12, %v5153_v12  ;;  %v5162_v26 = vmul.f32 %v5154_v57, %v5154_v57 }
 0x899   :  { %v5169_v5 = vadd.f32 %v5162_v26, %v5161_v61 }
 0x89a   :  { %v5142_v13 = vpop.xlane.xlu2 %5141 }
 0x89b   :  { %v5150_v4 = vmul.f32 %v5142_v13, %v8645_v40  ;;  %5170 = vadd.xlane.f32.xlu2 %v5169_v5 }
 0x89d   :  { %v8996_v32 = vsub.f32 %v5129_v20, %v5150_v4  ;;  %v8998_v14 = vsub.f32 %v5130_v52, %v5150_v4  ;;  %v5135_v20 = vld [vmem:[%s9080_s15] sm:$0x3]  ;;  %s7861_s15 = smov [#allocation23]  }
 0x89e   :  { %v9028_v50 = vperm.slane %v5135_v20, 0  ;;  %v9030_v45 = vperm.slane %v5135_v20, 1  ;;  %s5275_s29 = sshll.u32 %s7861_s15, 4  ;;  %s5276_s29 = int_to_ptr.vmem [resolvable:$true] %s5275_s29 }
 0x89f   :  { %v5163_v51 = vmul.f32 %v8996_v32, %v8996_v32  ;;  %v5164_v24 = vmul.f32 %v8998_v14, %v8998_v14 }
 0x8a1   :  { %v5172_v6 = vadd.f32 %v5164_v24, %v5163_v51 }
 0x8a2   :  { %v5145_v38 = vpop.xlane.xlu1 %5144 }
 0x8a3   :  { %v5151_v2 = vmul.f32 %v5145_v38, %v8645_v40  ;;  %5173 = vadd.xlane.f32.xlu1 %v5172_v6 }
 0x8a5   :  { %v9005_v19 = vsub.f32 %v5131_v0, %v5151_v2  ;;  %v9007_v31 = vsub.f32 %v5132_v16, %v5151_v2  ;;  %v9032_v0 = vperm.slane %v5136_v54, 0  ;;  %v9034_v16 = vperm.slane %v5136_v54, 1 }
 0x8a7   :  { %v5165_v34 = vmul.f32 %v9005_v19, %v9005_v19  ;;  %v5166_v1 = vmul.f32 %v9007_v31, %v9007_v31 }
 0x8a9   :  { %v5175_v3 = vadd.f32 %v5166_v1, %v5165_v34 }
 0x8aa   :  { %v5148_v56 = vpop.xlane.xlu0 %5147 }
 0x8ab   :  { %v5152_v9 = vmul.f32 %v5148_v56, %v8645_v40  ;;  %5176 = vadd.xlane.f32.xlu0 %v5175_v3 }
 0x8ad   :  { %v9014_v46 = vsub.f32 %v5133_v43, %v5152_v9  ;;  %v9016_v7 = vsub.f32 %v5134_v59, %v5152_v9 }
 0x8af   :  { %v5167_v47 = vmul.f32 %v9014_v46, %v9014_v46  ;;  %v5168_v10 = vmul.f32 %v9016_v7, %v9016_v7 }
 0x8b1   :  { %v5178_v28 = vadd.f32 %v5168_v10, %v5167_v47 }
 0x8b3   :  { %5179 = vadd.xlane.f32.xlu2 %v5178_v28 }
 0x90e   :  { %v5171_v49 = vpop.xlane.xlu2 %5170 }
 0x90f   :  { %v5181_v29 = vmul.f32 %v5171_v49, %v8645_v40 }
 0x911   :  { %v5185_v62 = vadd.f32 1e-05, %v5181_v29 }
 0x913   :  { %7470 = vrsqrt.f32 %v5185_v62  ;;  %vm5195_vm6 = vweird.f32 %v5185_v62 }
 0x916   :  { %v5174_v23 = vpop.xlane.xlu1 %5173 }
 0x917   :  { %v5182_v11 = vmul.f32 %v5174_v23, %v8645_v40 }
 0x919   :  { %v7471_v25 = vpop.eup %7470  ;;  %v5186_v17 = vadd.f32 1e-05, %v5182_v11 }
 0x91a   :  { %v5190_v44 = vmul.f32 %v7471_v25, %v5185_v62  ;;  %vm5196_vm5 = vweird.f32 %v7471_v25 }
 0x91b   :  { %7472 = vrsqrt.f32 %v5186_v17  ;;  %vm5197_vm7 = vmor %vm5195_vm6, %vm5196_vm5  ;;  %vm5205_vm9 = vweird.f32 %v5186_v17 }
 0x91c   :  { %v5191_v41 = vmul.f32 %v7471_v25, %v5190_v44 }
 0x91e   :  { %v5192_v18 = vmul.f32 0.5, %v5191_v41  ;;  %v5177_v42 = vpop.xlane.xlu0 %5176 }
 0x91f   :  { %v5183_v15 = vmul.f32 %v5177_v42, %v8645_v40 }
 0x920   :  { %v5193_v35 = vsub.f32 1.5, %v5192_v18 }
 0x921   :  { %v7473_v52 = vpop.eup %7472  ;;  %v5187_v53 = vadd.f32 1e-05, %v5183_v15 }
 0x922   :  { %v5194_v48 = vmul.f32 %v7471_v25, %v5193_v35  ;;  %v5200_v58 = vmul.f32 %v7473_v52, %v5186_v17  ;;  %vm5206_vm8 = vweird.f32 %v7473_v52 }
 0x923   :  { %7474 = vrsqrt.f32 %v5187_v53  ;;  %vm5207_vm10 = vmor %vm5205_vm9, %vm5206_vm8  ;;  %vm5215_vm12 = vweird.f32 %v5187_v53 }
 0x924   :  { %v5198_v60 = vsel %vm5197_vm7, %v7471_v25, %v5194_v48  ;;  %v5201_v27 = vmul.f32 %v7473_v52, %v5200_v58 }
 0x925   :  { %v5229_v8 = vmul.f32 %v5198_v60, %v5153_v12  ;;  %v5230_v22 = vmul.f32 %v5198_v60, %v5154_v57 }
 0x926   :  { %v5202_v30 = vmul.f32 0.5, %v5201_v27  ;;  %v5180_v63 = vpop.xlane.xlu2 %5179 }
 0x927   :  { %v5242_v39 = vmul.f32 %v9028_v50, %v5229_v8  ;;  %v5243_v21 = vmul.f32 %v9030_v45, %v5230_v22  ;;  %v5184_v33 = vmul.f32 %v5180_v63, %v8645_v40 }
 0x928   :  { %v5203_v43 = vsub.f32 1.5, %v5202_v30 }
 0x929   :  { %v7475_v59 = vpop.eup %7474  ;;  %v5255_v55 = vadd.f32 %v9032_v0, %v5242_v39  ;;  %v5256_v36 = vadd.f32 %v9034_v16, %v5243_v21  ;;  %v5188_v37 = vadd.f32 1e-05, %v5184_v33 }
 0x92a   :  { %v5204_v61 = vmul.f32 %v7473_v52, %v5203_v43  ;;  %v5210_v12 = vmul.f32 %v7475_v59, %v5187_v53  ;;  %vm5216_vm11 = vweird.f32 %v7475_v59 }
 0x92b   :  { %5263 = vst [vmem:[#allocation23] sm:$0xff] %v5255_v55  ;;  %7476 = vrsqrt.f32 %v5188_v37  ;;  %vm5217_vm13 = vmor %vm5215_vm12, %vm5216_vm11  ;;  %vm5225_vm15 = vweird.f32 %v5188_v37 }
 0x92c   :  { %5264 = vst [vmem:[#allocation23 + $0x8] sm:$0xff] %v5256_v36  ;;  %v5208_v57 = vsel %vm5207_vm10, %v7473_v52, %v5204_v61  ;;  %v5211_v26 = vmul.f32 %v7475_v59, %v5210_v12 }
 0x92d   :  { %v5231_v5 = vmul.f32 %v5208_v57, %v8996_v32  ;;  %v5232_v40 = vmul.f32 %v5208_v57, %v8998_v14 }
 0x92e   :  { %v5212_v13 = vmul.f32 0.5, %v5211_v26 }
 0x92f   :  { %v5244_v4 = vmul.f32 %v9028_v50, %v5231_v5  ;;  %v5245_v51 = vmul.f32 %v9030_v45, %v5232_v40 }
 0x930   :  { %v5213_v24 = vsub.f32 1.5, %v5212_v13 }
 0x931   :  { %v7477_v6 = vpop.eup %7476  ;;  %v5257_v38 = vadd.f32 %v9032_v0, %v5244_v4  ;;  %v5258_v2 = vadd.f32 %v9034_v16, %v5245_v51 }
 0x932   :  { %v5214_v34 = vmul.f32 %v7475_v59, %v5213_v24  ;;  %v5220_v1 = vmul.f32 %v7477_v6, %v5188_v37  ;;  %vm5226_vm14 = vweird.f32 %v7477_v6 }
 0x933   :  { %5265 = vst [vmem:[#allocation23 + $0x10] sm:$0xff] %v5257_v38  ;;  %vm5227_vm0 = vmor %vm5225_vm15, %vm5226_vm14 }
 0x934   :  { %5266 = vst [vmem:[#allocation23 + $0x18] sm:$0xff] %v5258_v2  ;;  %v5218_v32 = vsel %vm5217_vm13, %v7475_v59, %v5214_v34  ;;  %v5221_v14 = vmul.f32 %v7477_v6, %v5220_v1 }
 0x935   :  { %v5233_v3 = vmul.f32 %v5218_v32, %v9005_v19  ;;  %v5234_v56 = vmul.f32 %v5218_v32, %v9007_v31 }
 0x936   :  { %v5222_v9 = vmul.f32 0.5, %v5221_v14 }
 0x937   :  { %v5246_v47 = vmul.f32 %v9028_v50, %v5233_v3  ;;  %v5247_v10 = vmul.f32 %v9030_v45, %v5234_v56 }
 0x938   :  { %v5223_v28 = vsub.f32 1.5, %v5222_v9 }
 0x939   :  { %v5259_v49 = vadd.f32 %v9032_v0, %v5246_v47  ;;  %v5260_v29 = vadd.f32 %v9034_v16, %v5247_v10 }
 0x93a   :  { %v5224_v62 = vmul.f32 %v7477_v6, %v5223_v28 }
 0x93b   :  { %5267 = vst [vmem:[#allocation23 + $0x20] sm:$0xff] %v5259_v49 }
 0x93c   :  { %5268 = vst [vmem:[#allocation23 + $0x28] sm:$0xff] %v5260_v29  ;;  %v5228_v23 = vsel %vm5227_vm0, %v7477_v6, %v5224_v62 }
 0x93d   :  { %v5235_v19 = vmul.f32 %v5228_v23, %v9014_v46  ;;  %v5236_v31 = vmul.f32 %v5228_v23, %v9016_v7 }
 0x93f   :  { %v5248_v11 = vmul.f32 %v9028_v50, %v5235_v19  ;;  %v5249_v25 = vmul.f32 %v9030_v45, %v5236_v31 }
 0x941   :  { %v5261_v17 = vadd.f32 %v9032_v0, %v5248_v11  ;;  %v5262_v44 = vadd.f32 %v9034_v16, %v5249_v25 }
 0x943   :  { %5269 = vst [vmem:[#allocation23 + $0x30] sm:$0xff] %v5261_v17 }
 0x944   :  { %5270 = vst [vmem:[#allocation23 + $0x38] sm:$0xff] %v5262_v44 }
 0x945   :  { %5283 = dma.vmem_to_hbm [thread:$0]  %s5276_s29, 1024, %s5278_s20, [#allocation4], %s9092_s24, %s9092_s24, %s9091_s21  }
 0x946   :  { %7836 = dma.done.wait [#allocation4], 1024  }
 0x947   :  { %7837 = vsyncadd [#allocation4], 4294966272 }
 0x948   :  { %5288 = vsyncpa [#allocation3], 1 }
 0x949   :  { %5289 = vsyncpa [#allocation6], 1 }
 0x94a   :  { %5290 = vsyncpa [#allocation9], 1 }
 0x94b   :  { %5291 = vsyncpa [#allocation12], 1 }
 0x94c   :  { %5292 = vsyncpa [#allocation15], 1 }
 0x94d   :  { %5293 = vsyncpa [#allocation18], 1 }
 0x94e   :  { %5294 = vsyncpa [#allocation21], 1 }
 0x94f   :  { %5295 = vsyncpa [#allocation4], 1 }

</bundles_post_ra>
